<compile_context>
chip_gen: v7x
topology: tpu7x:2x2x1
jax: 0.10.0
libtpu: 0.0.40
codegen_flags: <defaults>
</compile_context>

<pallas_src>
import jax
import jax.numpy as jnp
from jax.experimental import pallas as pl
from jax.experimental.pallas import tpu as pltpu

EPS = 1e-5                      # nn.InstanceNorm1d default eps
IN_CH = 192
MID_CH = 80
ADV_CH = 20
MID_PAD = 128                   # mid channels padded 80 -> 128 (lane width)
ADV_PAD = 128                   # le_adv out channels padded 20 -> 128
_KS = (9, 8, 8, 5, 5)           # kernel sizes: le1..le4, le_adv
_SD = (1, 2, 2, 1, 1)           # strides
_PAD = tuple((k - s) // 2 for k, s in zip(_KS, _SD))   # (4, 3, 3, 2, 2)


# ------------------------------ kernel helpers ------------------------------


def _inorm(h):
    # InstanceNorm1d (affine=False): per-channel stats over length, biased var.
    mean = jnp.mean(h, axis=0, keepdims=True)
    var = jnp.mean(jnp.square(h - mean), axis=0, keepdims=True)
    return (h - mean) * jax.lax.rsqrt(var + EPS)


def _glu_from_fused(h):
    """h: (lout, 2*MID_PAD) f32 conv output, value = [:, :128], gate = [:, 128:].

    Per-channel InstanceNorm commutes with the channel split; padded (zero)
    channels stay exactly zero through norm * sigmoid(norm).
    """
    hv = h[:, :MID_PAD]
    hg = h[:, MID_PAD:]
    return _inorm(hv) * jax.nn.sigmoid(_inorm(hg))


def _conv_stride1(src_ref, w_ref, lout):
    """Stride-1 conv as `ks` accumulated shifted MXU matmuls (one fused dot/tap).

    src_ref: (Lpad, Cin) zero-padded activation (bf16).
    w_ref:   (ks, Cin, Cout) bf16.
    Returns f32 (lout, Cout).
    """
    ks = w_ref.shape[0]
    acc = None
    for k in range(ks):
        xk = src_ref[pl.ds(k, lout), :].astype(jnp.bfloat16)
        hk = jnp.dot(xk, w_ref[k], preferred_element_type=jnp.float32)
        acc = hk if acc is None else acc + hk
    return acc


def _conv_stride2(src_ref, w_ref, lout):
    """Stride-2 conv: split the padded input into even/odd parity planes with
    two strided reads; every tap is then a contiguous slice of a plane.

    out[t] = sum_k w[k] x_p[2t + k]:
      k even = 2m -> even_plane[t + m];  k odd = 2m+1 -> odd_plane[t + m].
    """
    lpad = src_ref.shape[0]
    n_even = (lpad + 1) // 2
    n_odd = lpad // 2
    even = src_ref[pl.ds(0, n_even, stride=2), :].astype(jnp.bfloat16)
    odd = src_ref[pl.ds(1, n_odd, stride=2), :].astype(jnp.bfloat16)
    ks = w_ref.shape[0]
    acc = None
    for k in range(ks):
        plane = even if k % 2 == 0 else odd
        m = k // 2
        xk = plane[m:m + lout, :]
        hk = jnp.dot(xk, w_ref[k], preferred_element_type=jnp.float32)
        acc = hk if acc is None else acc + hk
    return acc


def _disc_kernel(x_ref, w1, w2, w3, w4, wadv, out_ref, buf2, buf3, buf4, buf5):
    """One batch element: le1..le4 (ConvGLU1D) + le_adv, fully in VMEM.

    x_ref : (L + 2*PAD1, 192) bf16, already zero-padded for le1.
    bufN  : VMEM scratch holding the zero-padded input of layer N
            (buf2/buf3 f32 for parity-strided reads; buf4/buf5 bf16).
    out   : (Lout, ADV_PAD) f32 (lane-dense; real channels are [:, :20]).
    """
    l1 = buf2.shape[0] - 2 * _PAD[1]     # le1 output length (== L)
    l2 = buf3.shape[0] - 2 * _PAD[2]     # le2 output length
    l3 = buf4.shape[0] - 2 * _PAD[3]     # le3 output length
    l4 = buf5.shape[0] - 2 * _PAD[4]     # le4 output length
    l5 = out_ref.shape[0]                # le_adv output length

    # Zero only the 2*pad halo rows (the interior is fully overwritten every
    # grid step).  Done every iteration rather than under
    # @pl.when(pl.program_id(0) == 0) so it stays correct when the "parallel"
    # batch axis is split across megacore TensorCores.
    def zero_halo(buf, pad, lin):
        c = buf.shape[1]
        buf[0:pad, :] = jnp.zeros((pad, c), buf.dtype)
        buf[pad + lin:pad + lin + pad, :] = jnp.zeros((pad, c), buf.dtype)

    zero_halo(buf2, _PAD[1], l1)
    zero_halo(buf3, _PAD[2], l2)
    zero_halo(buf4, _PAD[3], l3)
    zero_halo(buf5, _PAD[4], l4)

    # TODO(synk): training-mode dropout (p=0.1) between layers is not applied.
    g1 = _glu_from_fused(_conv_stride1(x_ref, w1, l1))
    buf2[_PAD[1]:_PAD[1] + l1, :] = g1.astype(buf2.dtype)

    g2 = _glu_from_fused(_conv_stride2(buf2, w2, l2))
    buf3[_PAD[2]:_PAD[2] + l2, :] = g2.astype(buf3.dtype)

    g3 = _glu_from_fused(_conv_stride2(buf3, w3, l3))
    buf4[_PAD[3]:_PAD[3] + l3, :] = g3.astype(buf4.dtype)

    g4 = _glu_from_fused(_conv_stride1(buf4, w4, l4))
    buf5[_PAD[4]:_PAD[4] + l4, :] = g4.astype(buf5.dtype)

    # le_adv: plain conv1d, bias=False; Cout padded to 128 -> lane-dense store.
    out_ref[...] = _conv_stride1(buf5, wadv, l5).astype(out_ref.dtype)


# ------------------------------ wrappers -------------------------------------


def preprocess_params(params):
    """One-time layout/dtype prep.

    - Each ConvGLU weight (2*mid, cin, ks) is fused into a single
      (ks, cin_pad, 2*MID_PAD) bf16 weight: value half -> cols [0, 128),
      gate half -> cols [128, 256); padded rows/cols are zero.
    - le1..le4 conv biases are DROPPED: a per-channel constant is exactly
      cancelled by the affine-free InstanceNorm1d that follows.
    - le_adv weight zero-padded to (5, MID_PAD, ADV_PAD) for a lane-dense
      final matmul/store; the wrapper slices the real 20 channels.
    """
    def fuse_glu(w):
        two_mid, cin, ks = w.shape
        mid = two_mid // 2
        cin_p = cin if cin > MID_PAD else MID_PAD
        wt = jnp.transpose(w, (2, 1, 0))                      # (ks, cin, 2*mid)
        out = jnp.zeros((ks, cin_p, 2 * MID_PAD), jnp.float32)
        out = out.at[:, :cin, :mid].set(wt[:, :, :mid])                   # value
        out = out.at[:, :cin, MID_PAD:MID_PAD + mid].set(wt[:, :, mid:])  # gate
        return out.astype(jnp.bfloat16)

    adv = jnp.transpose(params["adv_w"], (2, 1, 0))           # (5, mid, 20)
    ks, cin, cout = adv.shape
    adv_p = jnp.zeros((ks, MID_PAD, ADV_PAD), jnp.float32)
    adv_p = adv_p.at[:, :cin, :cout].set(adv).astype(jnp.bfloat16)

    return {
        "w1": fuse_glu(params["le1_w"]),
        "w2": fuse_glu(params["le2_w"]),
        "w3": fuse_glu(params["le3_w"]),
        "w4": fuse_glu(params["le4_w"]),
        "wadv": adv_p,
    }


def _out_len(lin, ks, sd, pad):
    return (lin + 2 * pad - ks) // sd + 1


def discriminator_forward(prep, x_ncl):
    """x_ncl: (B, 192, L) PyTorch NCL -> out_adv: (B, 20, ~L//4)."""
    B, cin, L = x_ncl.shape
    l1 = _out_len(L, _KS[0], _SD[0], _PAD[0])
    l2 = _out_len(l1, _KS[1], _SD[1], _PAD[1])
    l3 = _out_len(l2, _KS[2], _SD[2], _PAD[2])
    l4 = _out_len(l3, _KS[3], _SD[3], _PAD[3])
    l5 = _out_len(l4, _KS[4], _SD[4], _PAD[4])
    l0p = L + 2 * _PAD[0]

    # NLC layout, zero pad once for le1, bf16 MXU inputs (halves HBM read).
    x = jnp.transpose(x_ncl, (0, 2, 1))
    xp = jnp.pad(x, ((0, 0), (_PAD[0], _PAD[0]), (0, 0))).astype(jnp.bfloat16)

    full3 = lambda b: (0, 0, 0)
    in_specs = [
        pl.BlockSpec((None, l0p, cin), lambda b: (b, 0, 0)),
        pl.BlockSpec(prep["w1"].shape, full3),
        pl.BlockSpec(prep["w2"].shape, full3),
        pl.BlockSpec(prep["w3"].shape, full3),
        pl.BlockSpec(prep["w4"].shape, full3),
        pl.BlockSpec(prep["wadv"].shape, full3),
    ]

    out = pl.pallas_call(
        _disc_kernel,
        out_shape=jax.ShapeDtypeStruct((B, l5, ADV_PAD), jnp.float32),
        grid=(B,),
        in_specs=in_specs,
        out_specs=pl.BlockSpec((None, l5, ADV_PAD), lambda b: (b, 0, 0)),
        scratch_shapes=[
            pltpu.VMEM((l1 + 2 * _PAD[1], MID_PAD), jnp.float32),   # feeds le2
            pltpu.VMEM((l2 + 2 * _PAD[2], MID_PAD), jnp.float32),   # feeds le3
            pltpu.VMEM((l3 + 2 * _PAD[3], MID_PAD), jnp.bfloat16),  # feeds le4
            pltpu.VMEM((l4 + 2 * _PAD[4], MID_PAD), jnp.bfloat16),  # feeds adv
        ],
        compiler_params=pltpu.CompilerParams(
            dimension_semantics=("parallel",),
            vmem_limit_bytes=48 * 1024 * 1024,
        ),
    )(xp, prep["w1"], prep["w2"], prep["w3"], prep["w4"], prep["wadv"])
    # Drop the zero-padded adv channels, back to NCL.
    return jnp.transpose(out[:, :, :ADV_CH], (0, 2, 1))


# --------------------------- parameters --------------------------------------


def init_params(key, in_ch=IN_CH, mid_ch=MID_CH):
    def xavier(k, out_c, in_c, ks, gain=0.1):
        fan_in, fan_out = in_c * ks, out_c * ks
        std = gain * (2.0 / (fan_in + fan_out)) ** 0.5
        return std * jax.random.normal(k, (out_c, in_c, ks), jnp.float32)

    def bias_init(k, out_c, in_c, ks):
        bound = 1.0 / (in_c * ks) ** 0.5
        return jax.random.uniform(k, (out_c,), jnp.float32, -bound, bound)

    ks_ = jax.random.split(key, 9)
    # Biases are kept here for fidelity with the PyTorch module but are
    # ignored by preprocess_params (exactly cancelled by InstanceNorm).
    return {
        "le1_w": xavier(ks_[0], mid_ch * 2, in_ch, 9),
        "le1_b": bias_init(ks_[1], mid_ch * 2, in_ch, 9),
        "le2_w": xavier(ks_[2], mid_ch * 2, mid_ch, 8),
        "le2_b": bias_init(ks_[3], mid_ch * 2, mid_ch, 8),
        "le3_w": xavier(ks_[4], mid_ch * 2, mid_ch, 8),
        "le3_b": bias_init(ks_[5], mid_ch * 2, mid_ch, 8),
        "le4_w": xavier(ks_[6], mid_ch * 2, mid_ch, 5),
        "le4_b": bias_init(ks_[7], mid_ch * 2, mid_ch, 5),
        "adv_w": xavier(ks_[8], ADV_CH, mid_ch, 5),
    }


if __name__ == "__main__":
    key = jax.random.PRNGKey(0)
    k_param, k_x = jax.random.split(key)
    B, L = 2, 16
    params = init_params(k_param)
    prep = preprocess_params(params)          # one-time layout/dtype conversion
    x = jax.random.normal(k_x, (B, IN_CH, L), jnp.float32)
    out = jax.jit(discriminator_forward)(prep, x)
    jax.block_until_ready(out)
    assert out.shape == (B, ADV_CH, 4), out.shape
    print("KERNEL_OK")
</pallas_src>

<mosaic_0001>
module attributes {stable_mosaic.version = 11 : i64} {
  func.func @_disc_kernel(%arg0: i32, %arg1: memref<1x24x192xbf16, #tpu.memory_space<vmem>>, %arg2: memref<9x192x256xbf16, #tpu.memory_space<vmem>>, %arg3: memref<8x128x256xbf16, #tpu.memory_space<vmem>>, %arg4: memref<8x128x256xbf16, #tpu.memory_space<vmem>>, %arg5: memref<5x128x256xbf16, #tpu.memory_space<vmem>>, %arg6: memref<5x128x128xbf16, #tpu.memory_space<vmem>>, %arg7: memref<1x4x128xf32, #tpu.memory_space<vmem>>, %arg8: memref<22x128xf32, #tpu.memory_space<vmem>>, %arg9: memref<14x128xf32, #tpu.memory_space<vmem>>, %arg10: memref<8x128xbf16, #tpu.memory_space<vmem>>, %arg11: memref<8x128xbf16, #tpu.memory_space<vmem>>) attributes {dimension_semantics = [#tpu.dimension_semantics<parallel>], iteration_bounds = array<i64: 2>, scalar_prefetch = 0 : i64, scratch_operands = 4 : i64, tpu.core_type = #tpu.core_type<tc>, window_params = [{transform_indices = @transform_0, window_bounds = array<i64: 1, 24, 192>}, {pipeline_mode = #tpu.pipeline_mode<synchronous>, transform_indices = @transform_1, window_bounds = array<i64: 9, 192, 256>}, {pipeline_mode = #tpu.pipeline_mode<synchronous>, transform_indices = @transform_2, window_bounds = array<i64: 8, 128, 256>}, {pipeline_mode = #tpu.pipeline_mode<synchronous>, transform_indices = @transform_3, window_bounds = array<i64: 8, 128, 256>}, {pipeline_mode = #tpu.pipeline_mode<synchronous>, transform_indices = @transform_4, window_bounds = array<i64: 5, 128, 256>}, {pipeline_mode = #tpu.pipeline_mode<synchronous>, transform_indices = @transform_5, window_bounds = array<i64: 5, 128, 128>}, {transform_indices = @transform_6, window_bounds = array<i64: 1, 4, 128>}]} {
    %cst = arith.constant 0.000000e+00 : f32
    %0 = vector.broadcast %cst : f32 to vector<3x128xf32>
    %c0 = arith.constant 0 : index
    %c0_0 = arith.constant 0 : index
    %1 = vector.load %arg8[%c0, %c0_0] : memref<22x128xf32, #tpu.memory_space<vmem>>, vector<3x128xf32>
    tpu.vector_store %arg8[%c0, %c0_0], %0 {strides = array<i32>} : memref<22x128xf32, #tpu.memory_space<vmem>>, vector<3x128xf32>,
    %cst_1 = arith.constant 0.000000e+00 : f32
    %2 = vector.broadcast %cst_1 : f32 to vector<3x128xf32>
    %c19 = arith.constant 19 : index
    %c0_2 = arith.constant 0 : index
    %3 = vector.load %arg8[%c19, %c0_2] : memref<22x128xf32, #tpu.memory_space<vmem>>, vector<3x128xf32>
    tpu.vector_store %arg8[%c19, %c0_2], %2 {strides = array<i32>} : memref<22x128xf32, #tpu.memory_space<vmem>>, vector<3x128xf32>,
    %cst_3 = arith.constant 0.000000e+00 : f32
    %4 = vector.broadcast %cst_3 : f32 to vector<3x128xf32>
    %c0_4 = arith.constant 0 : index
    %c0_5 = arith.constant 0 : index
    %5 = vector.load %arg9[%c0_4, %c0_5] : memref<14x128xf32, #tpu.memory_space<vmem>>, vector<3x128xf32>
    tpu.vector_store %arg9[%c0_4, %c0_5], %4 {strides = array<i32>} : memref<14x128xf32, #tpu.memory_space<vmem>>, vector<3x128xf32>,
    %cst_6 = arith.constant 0.000000e+00 : f32
    %6 = vector.broadcast %cst_6 : f32 to vector<3x128xf32>
    %c11 = arith.constant 11 : index
    %c0_7 = arith.constant 0 : index
    %7 = vector.load %arg9[%c11, %c0_7] : memref<14x128xf32, #tpu.memory_space<vmem>>, vector<3x128xf32>
    tpu.vector_store %arg9[%c11, %c0_7], %6 {strides = array<i32>} : memref<14x128xf32, #tpu.memory_space<vmem>>, vector<3x128xf32>,
    %cst_8 = arith.constant 0.000000e+00 : bf16
    %8 = vector.broadcast %cst_8 : bf16 to vector<2x128xbf16>
    %c0_9 = arith.constant 0 : index
    %c0_10 = arith.constant 0 : index
    %9 = vector.load %arg10[%c0_9, %c0_10] : memref<8x128xbf16, #tpu.memory_space<vmem>>, vector<2x128xbf16>
    tpu.vector_store %arg10[%c0_9, %c0_10], %8 {strides = array<i32>} : memref<8x128xbf16, #tpu.memory_space<vmem>>, vector<2x128xbf16>,
    %cst_11 = arith.constant 0.000000e+00 : bf16
    %10 = vector.broadcast %cst_11 : bf16 to vector<2x128xbf16>
    %c6 = arith.constant 6 : index
    %c0_12 = arith.constant 0 : index
    %11 = vector.load %arg10[%c6, %c0_12] : memref<8x128xbf16, #tpu.memory_space<vmem>>, vector<2x128xbf16>
    tpu.vector_store %arg10[%c6, %c0_12], %10 {strides = array<i32>} : memref<8x128xbf16, #tpu.memory_space<vmem>>, vector<2x128xbf16>,
    %cst_13 = arith.constant 0.000000e+00 : bf16
    %12 = vector.broadcast %cst_13 : bf16 to vector<2x128xbf16>
    %c0_14 = arith.constant 0 : index
    %c0_15 = arith.constant 0 : index
    %13 = vector.load %arg11[%c0_14, %c0_15] : memref<8x128xbf16, #tpu.memory_space<vmem>>, vector<2x128xbf16>
    tpu.vector_store %arg11[%c0_14, %c0_15], %12 {strides = array<i32>} : memref<8x128xbf16, #tpu.memory_space<vmem>>, vector<2x128xbf16>,
    %cst_16 = arith.constant 0.000000e+00 : bf16
    %14 = vector.broadcast %cst_16 : bf16 to vector<2x128xbf16>
    %c6_17 = arith.constant 6 : index
    %c0_18 = arith.constant 0 : index
    %15 = vector.load %arg11[%c6_17, %c0_18] : memref<8x128xbf16, #tpu.memory_space<vmem>>, vector<2x128xbf16>
    tpu.vector_store %arg11[%c6_17, %c0_18], %14 {strides = array<i32>} : memref<8x128xbf16, #tpu.memory_space<vmem>>, vector<2x128xbf16>,
    %c0_19 = arith.constant 0 : index
    %c0_20 = arith.constant 0 : index
    %c0_21 = arith.constant 0 : index
    %16 = vector.load %arg1[%c0_19, %c0_20, %c0_21] : memref<1x24x192xbf16, #tpu.memory_space<vmem>>, vector<1x16x192xbf16>
    %17 = vector.shape_cast %16 : vector<1x16x192xbf16> to vector<16x192xbf16>
    %c0_22 = arith.constant 0 : index
    %c0_23 = arith.constant 0 : index
    %c0_24 = arith.constant 0 : index
    %18 = vector.load %arg2[%c0_22, %c0_23, %c0_24] : memref<9x192x256xbf16, #tpu.memory_space<vmem>>, vector<1x192x256xbf16>
    %19 = vector.shape_cast %18 : vector<1x192x256xbf16> to vector<192x256xbf16>
    %cst_25 = arith.constant dense<0.000000e+00> : vector<16x256xf32>
    %20 = tpu.matmul %17, %19, %cst_25 {dimension_numbers = #tpu.dot_dimension_numbers<[1], [0], [0], [1], [0, 0, 1, 1], [], []>} : vector<16x192xbf16>, vector<192x256xbf16>, vector<16x256xf32> -> vector<16x256xf32>
    %c0_26 = arith.constant 0 : index
    %c1 = arith.constant 1 : index
    %c0_27 = arith.constant 0 : index
    %21 = vector.load %arg1[%c0_26, %c1, %c0_27] : memref<1x24x192xbf16, #tpu.memory_space<vmem>>, vector<1x16x192xbf16>
    %22 = vector.shape_cast %21 : vector<1x16x192xbf16> to vector<16x192xbf16>
    %c1_28 = arith.constant 1 : index
    %c0_29 = arith.constant 0 : index
    %c0_30 = arith.constant 0 : index
    %23 = vector.load %arg2[%c1_28, %c0_29, %c0_30] : memref<9x192x256xbf16, #tpu.memory_space<vmem>>, vector<1x192x256xbf16>
    %24 = vector.shape_cast %23 : vector<1x192x256xbf16> to vector<192x256xbf16>
    %cst_31 = arith.constant dense<0.000000e+00> : vector<16x256xf32>
    %25 = tpu.matmul %22, %24, %cst_31 {dimension_numbers = #tpu.dot_dimension_numbers<[1], [0], [0], [1], [0, 0, 1, 1], [], []>} : vector<16x192xbf16>, vector<192x256xbf16>, vector<16x256xf32> -> vector<16x256xf32>
    %26 = arith.addf %20, %25 : vector<16x256xf32>
    %c0_32 = arith.constant 0 : index
    %c2 = arith.constant 2 : index
    %c0_33 = arith.constant 0 : index
    %27 = vector.load %arg1[%c0_32, %c2, %c0_33] : memref<1x24x192xbf16, #tpu.memory_space<vmem>>, vector<1x16x192xbf16>
    %28 = vector.shape_cast %27 : vector<1x16x192xbf16> to vector<16x192xbf16>
    %c2_34 = arith.constant 2 : index
    %c0_35 = arith.constant 0 : index
    %c0_36 = arith.constant 0 : index
    %29 = vector.load %arg2[%c2_34, %c0_35, %c0_36] : memref<9x192x256xbf16, #tpu.memory_space<vmem>>, vector<1x192x256xbf16>
    %30 = vector.shape_cast %29 : vector<1x192x256xbf16> to vector<192x256xbf16>
    %cst_37 = arith.constant dense<0.000000e+00> : vector<16x256xf32>
    %31 = tpu.matmul %28, %30, %cst_37 {dimension_numbers = #tpu.dot_dimension_numbers<[1], [0], [0], [1], [0, 0, 1, 1], [], []>} : vector<16x192xbf16>, vector<192x256xbf16>, vector<16x256xf32> -> vector<16x256xf32>
    %32 = arith.addf %26, %31 : vector<16x256xf32>
    %c0_38 = arith.constant 0 : index
    %c3 = arith.constant 3 : index
    %c0_39 = arith.constant 0 : index
    %33 = vector.load %arg1[%c0_38, %c3, %c0_39] : memref<1x24x192xbf16, #tpu.memory_space<vmem>>, vector<1x16x192xbf16>
    %34 = vector.shape_cast %33 : vector<1x16x192xbf16> to vector<16x192xbf16>
    %c3_40 = arith.constant 3 : index
    %c0_41 = arith.constant 0 : index
    %c0_42 = arith.constant 0 : index
    %35 = vector.load %arg2[%c3_40, %c0_41, %c0_42] : memref<9x192x256xbf16, #tpu.memory_space<vmem>>, vector<1x192x256xbf16>
    %36 = vector.shape_cast %35 : vector<1x192x256xbf16> to vector<192x256xbf16>
    %cst_43 = arith.constant dense<0.000000e+00> : vector<16x256xf32>
    %37 = tpu.matmul %34, %36, %cst_43 {dimension_numbers = #tpu.dot_dimension_numbers<[1], [0], [0], [1], [0, 0, 1, 1], [], []>} : vector<16x192xbf16>, vector<192x256xbf16>, vector<16x256xf32> -> vector<16x256xf32>
    %38 = arith.addf %32, %37 : vector<16x256xf32>
    %c0_44 = arith.constant 0 : index
    %c4 = arith.constant 4 : index
    %c0_45 = arith.constant 0 : index
    %39 = vector.load %arg1[%c0_44, %c4, %c0_45] : memref<1x24x192xbf16, #tpu.memory_space<vmem>>, vector<1x16x192xbf16>
    %40 = vector.shape_cast %39 : vector<1x16x192xbf16> to vector<16x192xbf16>
    %c4_46 = arith.constant 4 : index
    %c0_47 = arith.constant 0 : index
    %c0_48 = arith.constant 0 : index
    %41 = vector.load %arg2[%c4_46, %c0_47, %c0_48] : memref<9x192x256xbf16, #tpu.memory_space<vmem>>, vector<1x192x256xbf16>
    %42 = vector.shape_cast %41 : vector<1x192x256xbf16> to vector<192x256xbf16>
    %cst_49 = arith.constant dense<0.000000e+00> : vector<16x256xf32>
    %43 = tpu.matmul %40, %42, %cst_49 {dimension_numbers = #tpu.dot_dimension_numbers<[1], [0], [0], [1], [0, 0, 1, 1], [], []>} : vector<16x192xbf16>, vector<192x256xbf16>, vector<16x256xf32> -> vector<16x256xf32>
    %44 = arith.addf %38, %43 : vector<16x256xf32>
    %c0_50 = arith.constant 0 : index
    %c5 = arith.constant 5 : index
    %c0_51 = arith.constant 0 : index
    %45 = vector.load %arg1[%c0_50, %c5, %c0_51] : memref<1x24x192xbf16, #tpu.memory_space<vmem>>, vector<1x16x192xbf16>
    %46 = vector.shape_cast %45 : vector<1x16x192xbf16> to vector<16x192xbf16>
    %c5_52 = arith.constant 5 : index
    %c0_53 = arith.constant 0 : index
    %c0_54 = arith.constant 0 : index
    %47 = vector.load %arg2[%c5_52, %c0_53, %c0_54] : memref<9x192x256xbf16, #tpu.memory_space<vmem>>, vector<1x192x256xbf16>
    %48 = vector.shape_cast %47 : vector<1x192x256xbf16> to vector<192x256xbf16>
    %cst_55 = arith.constant dense<0.000000e+00> : vector<16x256xf32>
    %49 = tpu.matmul %46, %48, %cst_55 {dimension_numbers = #tpu.dot_dimension_numbers<[1], [0], [0], [1], [0, 0, 1, 1], [], []>} : vector<16x192xbf16>, vector<192x256xbf16>, vector<16x256xf32> -> vector<16x256xf32>
    %50 = arith.addf %44, %49 : vector<16x256xf32>
    %c0_56 = arith.constant 0 : index
    %c6_57 = arith.constant 6 : index
    %c0_58 = arith.constant 0 : index
    %51 = vector.load %arg1[%c0_56, %c6_57, %c0_58] : memref<1x24x192xbf16, #tpu.memory_space<vmem>>, vector<1x16x192xbf16>
    %52 = vector.shape_cast %51 : vector<1x16x192xbf16> to vector<16x192xbf16>
    %c6_59 = arith.constant 6 : index
    %c0_60 = arith.constant 0 : index
    %c0_61 = arith.constant 0 : index
    %53 = vector.load %arg2[%c6_59, %c0_60, %c0_61] : memref<9x192x256xbf16, #tpu.memory_space<vmem>>, vector<1x192x256xbf16>
    %54 = vector.shape_cast %53 : vector<1x192x256xbf16> to vector<192x256xbf16>
    %cst_62 = arith.constant dense<0.000000e+00> : vector<16x256xf32>
    %55 = tpu.matmul %52, %54, %cst_62 {dimension_numbers = #tpu.dot_dimension_numbers<[1], [0], [0], [1], [0, 0, 1, 1], [], []>} : vector<16x192xbf16>, vector<192x256xbf16>, vector<16x256xf32> -> vector<16x256xf32>
    %56 = arith.addf %50, %55 : vector<16x256xf32>
    %c0_63 = arith.constant 0 : index
    %c7 = arith.constant 7 : index
    %c0_64 = arith.constant 0 : index
    %57 = vector.load %arg1[%c0_63, %c7, %c0_64] : memref<1x24x192xbf16, #tpu.memory_space<vmem>>, vector<1x16x192xbf16>
    %58 = vector.shape_cast %57 : vector<1x16x192xbf16> to vector<16x192xbf16>
    %c7_65 = arith.constant 7 : index
    %c0_66 = arith.constant 0 : index
    %c0_67 = arith.constant 0 : index
    %59 = vector.load %arg2[%c7_65, %c0_66, %c0_67] : memref<9x192x256xbf16, #tpu.memory_space<vmem>>, vector<1x192x256xbf16>
    %60 = vector.shape_cast %59 : vector<1x192x256xbf16> to vector<192x256xbf16>
    %cst_68 = arith.constant dense<0.000000e+00> : vector<16x256xf32>
    %61 = tpu.matmul %58, %60, %cst_68 {dimension_numbers = #tpu.dot_dimension_numbers<[1], [0], [0], [1], [0, 0, 1, 1], [], []>} : vector<16x192xbf16>, vector<192x256xbf16>, vector<16x256xf32> -> vector<16x256xf32>
    %62 = arith.addf %56, %61 : vector<16x256xf32>
    %c0_69 = arith.constant 0 : index
    %c8 = arith.constant 8 : index
    %c0_70 = arith.constant 0 : index
    %63 = vector.load %arg1[%c0_69, %c8, %c0_70] : memref<1x24x192xbf16, #tpu.memory_space<vmem>>, vector<1x16x192xbf16>
    %64 = vector.shape_cast %63 : vector<1x16x192xbf16> to vector<16x192xbf16>
    %c8_71 = arith.constant 8 : index
    %c0_72 = arith.constant 0 : index
    %c0_73 = arith.constant 0 : index
    %65 = vector.load %arg2[%c8_71, %c0_72, %c0_73] : memref<9x192x256xbf16, #tpu.memory_space<vmem>>, vector<1x192x256xbf16>
    %66 = vector.shape_cast %65 : vector<1x192x256xbf16> to vector<192x256xbf16>
    %cst_74 = arith.constant dense<0.000000e+00> : vector<16x256xf32>
    %67 = tpu.matmul %64, %66, %cst_74 {dimension_numbers = #tpu.dot_dimension_numbers<[1], [0], [0], [1], [0, 0, 1, 1], [], []>} : vector<16x192xbf16>, vector<192x256xbf16>, vector<16x256xf32> -> vector<16x256xf32>
    %68 = arith.addf %62, %67 : vector<16x256xf32>
    %69 = vector.extract_strided_slice %68 {offsets = [0, 0], sizes = [16, 128], strides = [1, 1]} : vector<16x256xf32> to vector<16x128xf32>
    %70 = vector.extract_strided_slice %68 {offsets = [0, 128], sizes = [16, 128], strides = [1, 1]} : vector<16x256xf32> to vector<16x128xf32>
    %cst_75 = arith.constant dense<0.000000e+00> : vector<128xf32>
    %71 = vector.multi_reduction <add>, %69, %cst_75 [0] : vector<16x128xf32> to vector<128xf32>
    %72 = vector.shape_cast %71 : vector<128xf32> to vector<1x128xf32>
    %cst_76 = arith.constant 1.600000e+01 : f32
    %73 = vector.broadcast %cst_76 : f32 to vector<1x128xf32>
    %74 = arith.divf %72, %73 : vector<1x128xf32>
    %75 = vector.broadcast %74 : vector<1x128xf32> to vector<16x128xf32>
    %76 = arith.subf %69, %75 : vector<16x128xf32>
    %77 = arith.mulf %76, %76 : vector<16x128xf32>
    %cst_77 = arith.constant dense<0.000000e+00> : vector<128xf32>
    %78 = vector.multi_reduction <add>, %77, %cst_77 [0] : vector<16x128xf32> to vector<128xf32>
    %79 = vector.shape_cast %78 : vector<128xf32> to vector<1x128xf32>
    %cst_78 = arith.constant 1.600000e+01 : f32
    %80 = vector.broadcast %cst_78 : f32 to vector<1x128xf32>
    %81 = arith.divf %79, %80 : vector<1x128xf32>
    %82 = vector.broadcast %74 : vector<1x128xf32> to vector<16x128xf32>
    %83 = arith.subf %69, %82 : vector<16x128xf32>
    %cst_79 = arith.constant 9.99999974E-6 : f32
    %84 = vector.broadcast %cst_79 : f32 to vector<1x128xf32>
    %85 = arith.addf %81, %84 : vector<1x128xf32>
    %86 = math.rsqrt %85 : vector<1x128xf32>
    %87 = vector.broadcast %86 : vector<1x128xf32> to vector<16x128xf32>
    %88 = arith.mulf %83, %87 : vector<16x128xf32>
    %cst_80 = arith.constant dense<0.000000e+00> : vector<128xf32>
    %89 = vector.multi_reduction <add>, %70, %cst_80 [0] : vector<16x128xf32> to vector<128xf32>
    %90 = vector.shape_cast %89 : vector<128xf32> to vector<1x128xf32>
    %cst_81 = arith.constant 1.600000e+01 : f32
    %91 = vector.broadcast %cst_81 : f32 to vector<1x128xf32>
    %92 = arith.divf %90, %91 : vector<1x128xf32>
    %93 = vector.broadcast %92 : vector<1x128xf32> to vector<16x128xf32>
    %94 = arith.subf %70, %93 : vector<16x128xf32>
    %95 = arith.mulf %94, %94 : vector<16x128xf32>
    %cst_82 = arith.constant dense<0.000000e+00> : vector<128xf32>
    %96 = vector.multi_reduction <add>, %95, %cst_82 [0] : vector<16x128xf32> to vector<128xf32>
    %97 = vector.shape_cast %96 : vector<128xf32> to vector<1x128xf32>
    %cst_83 = arith.constant 1.600000e+01 : f32
    %98 = vector.broadcast %cst_83 : f32 to vector<1x128xf32>
    %99 = arith.divf %97, %98 : vector<1x128xf32>
    %100 = vector.broadcast %92 : vector<1x128xf32> to vector<16x128xf32>
    %101 = arith.subf %70, %100 : vector<16x128xf32>
    %cst_84 = arith.constant 9.99999974E-6 : f32
    %102 = vector.broadcast %cst_84 : f32 to vector<1x128xf32>
    %103 = arith.addf %99, %102 : vector<1x128xf32>
    %104 = math.rsqrt %103 : vector<1x128xf32>
    %105 = vector.broadcast %104 : vector<1x128xf32> to vector<16x128xf32>
    %106 = arith.mulf %101, %105 : vector<16x128xf32>
    %107 = arith.negf %106 : vector<16x128xf32>
    %108 = math.exp %107 : vector<16x128xf32>
    %cst_85 = arith.constant 1.000000e+00 : f32
    %109 = vector.broadcast %cst_85 : f32 to vector<16x128xf32>
    %110 = arith.addf %109, %108 : vector<16x128xf32>
    %111 = arith.divf %109, %110 : vector<16x128xf32>
    %112 = arith.mulf %88, %111 : vector<16x128xf32>
    %c3_86 = arith.constant 3 : index
    %c0_87 = arith.constant 0 : index
    %113 = vector.load %arg8[%c3_86, %c0_87] : memref<22x128xf32, #tpu.memory_space<vmem>>, vector<16x128xf32>
    tpu.vector_store %arg8[%c3_86, %c0_87], %112 {strides = array<i32>} : memref<22x128xf32, #tpu.memory_space<vmem>>, vector<16x128xf32>,
    %c0_88 = arith.constant 0 : index
    %c0_89 = arith.constant 0 : index
    %114 = tpu.strided_load %arg8[%c0_88, %c0_89] {strides = array<i32: 2, 1>} : memref<22x128xf32, #tpu.memory_space<vmem>>, vector<11x128xf32>
    %115 = arith.truncf %114 : vector<11x128xf32> to vector<11x128xbf16>
    %c1_90 = arith.constant 1 : index
    %c0_91 = arith.constant 0 : index
    %116 = tpu.strided_load %arg8[%c1_90, %c0_91] {strides = array<i32: 2, 1>} : memref<22x128xf32, #tpu.memory_space<vmem>>, vector<11x128xf32>
    %117 = arith.truncf %116 : vector<11x128xf32> to vector<11x128xbf16>
    %118 = vector.extract_strided_slice %115 {offsets = [0, 0], sizes = [8, 128], strides = [1, 1]} : vector<11x128xbf16> to vector<8x128xbf16>
    %c0_92 = arith.constant 0 : index
    %c0_93 = arith.constant 0 : index
    %c0_94 = arith.constant 0 : index
    %119 = vector.load %arg3[%c0_92, %c0_93, %c0_94] : memref<8x128x256xbf16, #tpu.memory_space<vmem>>, vector<1x128x256xbf16>
    %120 = vector.shape_cast %119 : vector<1x128x256xbf16> to vector<128x256xbf16>
    %cst_95 = arith.constant dense<0.000000e+00> : vector<8x256xf32>
    %121 = tpu.matmul %118, %120, %cst_95 {dimension_numbers = #tpu.dot_dimension_numbers<[1], [0], [0], [1], [0, 0, 1, 1], [], []>} : vector<8x128xbf16>, vector<128x256xbf16>, vector<8x256xf32> -> vector<8x256xf32>
    %122 = vector.extract_strided_slice %117 {offsets = [0, 0], sizes = [8, 128], strides = [1, 1]} : vector<11x128xbf16> to vector<8x128xbf16>
    %c1_96 = arith.constant 1 : index
    %c0_97 = arith.constant 0 : index
    %c0_98 = arith.constant 0 : index
    %123 = vector.load %arg3[%c1_96, %c0_97, %c0_98] : memref<8x128x256xbf16, #tpu.memory_space<vmem>>, vector<1x128x256xbf16>
    %124 = vector.shape_cast %123 : vector<1x128x256xbf16> to vector<128x256xbf16>
    %cst_99 = arith.constant dense<0.000000e+00> : vector<8x256xf32>
    %125 = tpu.matmul %122, %124, %cst_99 {dimension_numbers = #tpu.dot_dimension_numbers<[1], [0], [0], [1], [0, 0, 1, 1], [], []>} : vector<8x128xbf16>, vector<128x256xbf16>, vector<8x256xf32> -> vector<8x256xf32>
    %126 = arith.addf %121, %125 : vector<8x256xf32>
    %127 = vector.extract_strided_slice %115 {offsets = [1, 0], sizes = [8, 128], strides = [1, 1]} : vector<11x128xbf16> to vector<8x128xbf16>
    %c2_100 = arith.constant 2 : index
    %c0_101 = arith.constant 0 : index
    %c0_102 = arith.constant 0 : index
    %128 = vector.load %arg3[%c2_100, %c0_101, %c0_102] : memref<8x128x256xbf16, #tpu.memory_space<vmem>>, vector<1x128x256xbf16>
    %129 = vector.shape_cast %128 : vector<1x128x256xbf16> to vector<128x256xbf16>
    %cst_103 = arith.constant dense<0.000000e+00> : vector<8x256xf32>
    %130 = tpu.matmul %127, %129, %cst_103 {dimension_numbers = #tpu.dot_dimension_numbers<[1], [0], [0], [1], [0, 0, 1, 1], [], []>} : vector<8x128xbf16>, vector<128x256xbf16>, vector<8x256xf32> -> vector<8x256xf32>
    %131 = arith.addf %126, %130 : vector<8x256xf32>
    %132 = vector.extract_strided_slice %117 {offsets = [1, 0], sizes = [8, 128], strides = [1, 1]} : vector<11x128xbf16> to vector<8x128xbf16>
    %c3_104 = arith.constant 3 : index
    %c0_105 = arith.constant 0 : index
    %c0_106 = arith.constant 0 : index
    %133 = vector.load %arg3[%c3_104, %c0_105, %c0_106] : memref<8x128x256xbf16, #tpu.memory_space<vmem>>, vector<1x128x256xbf16>
    %134 = vector.shape_cast %133 : vector<1x128x256xbf16> to vector<128x256xbf16>
    %cst_107 = arith.constant dense<0.000000e+00> : vector<8x256xf32>
    %135 = tpu.matmul %132, %134, %cst_107 {dimension_numbers = #tpu.dot_dimension_numbers<[1], [0], [0], [1], [0, 0, 1, 1], [], []>} : vector<8x128xbf16>, vector<128x256xbf16>, vector<8x256xf32> -> vector<8x256xf32>
    %136 = arith.addf %131, %135 : vector<8x256xf32>
    %137 = vector.extract_strided_slice %115 {offsets = [2, 0], sizes = [8, 128], strides = [1, 1]} : vector<11x128xbf16> to vector<8x128xbf16>
    %c4_108 = arith.constant 4 : index
    %c0_109 = arith.constant 0 : index
    %c0_110 = arith.constant 0 : index
    %138 = vector.load %arg3[%c4_108, %c0_109, %c0_110] : memref<8x128x256xbf16, #tpu.memory_space<vmem>>, vector<1x128x256xbf16>
    %139 = vector.shape_cast %138 : vector<1x128x256xbf16> to vector<128x256xbf16>
    %cst_111 = arith.constant dense<0.000000e+00> : vector<8x256xf32>
    %140 = tpu.matmul %137, %139, %cst_111 {dimension_numbers = #tpu.dot_dimension_numbers<[1], [0], [0], [1], [0, 0, 1, 1], [], []>} : vector<8x128xbf16>, vector<128x256xbf16>, vector<8x256xf32> -> vector<8x256xf32>
    %141 = arith.addf %136, %140 : vector<8x256xf32>
    %142 = vector.extract_strided_slice %117 {offsets = [2, 0], sizes = [8, 128], strides = [1, 1]} : vector<11x128xbf16> to vector<8x128xbf16>
    %c5_112 = arith.constant 5 : index
    %c0_113 = arith.constant 0 : index
    %c0_114 = arith.constant 0 : index
    %143 = vector.load %arg3[%c5_112, %c0_113, %c0_114] : memref<8x128x256xbf16, #tpu.memory_space<vmem>>, vector<1x128x256xbf16>
    %144 = vector.shape_cast %143 : vector<1x128x256xbf16> to vector<128x256xbf16>
    %cst_115 = arith.constant dense<0.000000e+00> : vector<8x256xf32>
    %145 = tpu.matmul %142, %144, %cst_115 {dimension_numbers = #tpu.dot_dimension_numbers<[1], [0], [0], [1], [0, 0, 1, 1], [], []>} : vector<8x128xbf16>, vector<128x256xbf16>, vector<8x256xf32> -> vector<8x256xf32>
    %146 = arith.addf %141, %145 : vector<8x256xf32>
    %147 = vector.extract_strided_slice %115 {offsets = [3, 0], sizes = [8, 128], strides = [1, 1]} : vector<11x128xbf16> to vector<8x128xbf16>
    %c6_116 = arith.constant 6 : index
    %c0_117 = arith.constant 0 : index
    %c0_118 = arith.constant 0 : index
    %148 = vector.load %arg3[%c6_116, %c0_117, %c0_118] : memref<8x128x256xbf16, #tpu.memory_space<vmem>>, vector<1x128x256xbf16>
    %149 = vector.shape_cast %148 : vector<1x128x256xbf16> to vector<128x256xbf16>
    %cst_119 = arith.constant dense<0.000000e+00> : vector<8x256xf32>
    %150 = tpu.matmul %147, %149, %cst_119 {dimension_numbers = #tpu.dot_dimension_numbers<[1], [0], [0], [1], [0, 0, 1, 1], [], []>} : vector<8x128xbf16>, vector<128x256xbf16>, vector<8x256xf32> -> vector<8x256xf32>
    %151 = arith.addf %146, %150 : vector<8x256xf32>
    %152 = vector.extract_strided_slice %117 {offsets = [3, 0], sizes = [8, 128], strides = [1, 1]} : vector<11x128xbf16> to vector<8x128xbf16>
    %c7_120 = arith.constant 7 : index
    %c0_121 = arith.constant 0 : index
    %c0_122 = arith.constant 0 : index
    %153 = vector.load %arg3[%c7_120, %c0_121, %c0_122] : memref<8x128x256xbf16, #tpu.memory_space<vmem>>, vector<1x128x256xbf16>
    %154 = vector.shape_cast %153 : vector<1x128x256xbf16> to vector<128x256xbf16>
    %cst_123 = arith.constant dense<0.000000e+00> : vector<8x256xf32>
    %155 = tpu.matmul %152, %154, %cst_123 {dimension_numbers = #tpu.dot_dimension_numbers<[1], [0], [0], [1], [0, 0, 1, 1], [], []>} : vector<8x128xbf16>, vector<128x256xbf16>, vector<8x256xf32> -> vector<8x256xf32>
    %156 = arith.addf %151, %155 : vector<8x256xf32>
    %157 = vector.extract_strided_slice %156 {offsets = [0, 0], sizes = [8, 128], strides = [1, 1]} : vector<8x256xf32> to vector<8x128xf32>
    %158 = vector.extract_strided_slice %156 {offsets = [0, 128], sizes = [8, 128], strides = [1, 1]} : vector<8x256xf32> to vector<8x128xf32>
    %cst_124 = arith.constant dense<0.000000e+00> : vector<128xf32>
    %159 = vector.multi_reduction <add>, %157, %cst_124 [0] : vector<8x128xf32> to vector<128xf32>
    %160 = vector.shape_cast %159 : vector<128xf32> to vector<1x128xf32>
    %cst_125 = arith.constant 8.000000e+00 : f32
    %161 = vector.broadcast %cst_125 : f32 to vector<1x128xf32>
    %162 = arith.divf %160, %161 : vector<1x128xf32>
    %163 = vector.broadcast %162 : vector<1x128xf32> to vector<8x128xf32>
    %164 = arith.subf %157, %163 : vector<8x128xf32>
    %165 = arith.mulf %164, %164 : vector<8x128xf32>
    %cst_126 = arith.constant dense<0.000000e+00> : vector<128xf32>
    %166 = vector.multi_reduction <add>, %165, %cst_126 [0] : vector<8x128xf32> to vector<128xf32>
    %167 = vector.shape_cast %166 : vector<128xf32> to vector<1x128xf32>
    %cst_127 = arith.constant 8.000000e+00 : f32
    %168 = vector.broadcast %cst_127 : f32 to vector<1x128xf32>
    %169 = arith.divf %167, %168 : vector<1x128xf32>
    %170 = vector.broadcast %162 : vector<1x128xf32> to vector<8x128xf32>
    %171 = arith.subf %157, %170 : vector<8x128xf32>
    %cst_128 = arith.constant 9.99999974E-6 : f32
    %172 = vector.broadcast %cst_128 : f32 to vector<1x128xf32>
    %173 = arith.addf %169, %172 : vector<1x128xf32>
    %174 = math.rsqrt %173 : vector<1x128xf32>
    %175 = vector.broadcast %174 : vector<1x128xf32> to vector<8x128xf32>
    %176 = arith.mulf %171, %175 : vector<8x128xf32>
    %cst_129 = arith.constant dense<0.000000e+00> : vector<128xf32>
    %177 = vector.multi_reduction <add>, %158, %cst_129 [0] : vector<8x128xf32> to vector<128xf32>
    %178 = vector.shape_cast %177 : vector<128xf32> to vector<1x128xf32>
    %cst_130 = arith.constant 8.000000e+00 : f32
    %179 = vector.broadcast %cst_130 : f32 to vector<1x128xf32>
    %180 = arith.divf %178, %179 : vector<1x128xf32>
    %181 = vector.broadcast %180 : vector<1x128xf32> to vector<8x128xf32>
    %182 = arith.subf %158, %181 : vector<8x128xf32>
    %183 = arith.mulf %182, %182 : vector<8x128xf32>
    %cst_131 = arith.constant dense<0.000000e+00> : vector<128xf32>
    %184 = vector.multi_reduction <add>, %183, %cst_131 [0] : vector<8x128xf32> to vector<128xf32>
    %185 = vector.shape_cast %184 : vector<128xf32> to vector<1x128xf32>
    %cst_132 = arith.constant 8.000000e+00 : f32
    %186 = vector.broadcast %cst_132 : f32 to vector<1x128xf32>
    %187 = arith.divf %185, %186 : vector<1x128xf32>
    %188 = vector.broadcast %180 : vector<1x128xf32> to vector<8x128xf32>
    %189 = arith.subf %158, %188 : vector<8x128xf32>
    %cst_133 = arith.constant 9.99999974E-6 : f32
    %190 = vector.broadcast %cst_133 : f32 to vector<1x128xf32>
    %191 = arith.addf %187, %190 : vector<1x128xf32>
    %192 = math.rsqrt %191 : vector<1x128xf32>
    %193 = vector.broadcast %192 : vector<1x128xf32> to vector<8x128xf32>
    %194 = arith.mulf %189, %193 : vector<8x128xf32>
    %195 = arith.negf %194 : vector<8x128xf32>
    %196 = math.exp %195 : vector<8x128xf32>
    %cst_134 = arith.constant 1.000000e+00 : f32
    %197 = vector.broadcast %cst_134 : f32 to vector<8x128xf32>
    %198 = arith.addf %197, %196 : vector<8x128xf32>
    %199 = arith.divf %197, %198 : vector<8x128xf32>
    %200 = arith.mulf %176, %199 : vector<8x128xf32>
    %c3_135 = arith.constant 3 : index
    %c0_136 = arith.constant 0 : index
    %201 = vector.load %arg9[%c3_135, %c0_136] : memref<14x128xf32, #tpu.memory_space<vmem>>, vector<8x128xf32>
    tpu.vector_store %arg9[%c3_135, %c0_136], %200 {strides = array<i32>} : memref<14x128xf32, #tpu.memory_space<vmem>>, vector<8x128xf32>,
    %c0_137 = arith.constant 0 : index
    %c0_138 = arith.constant 0 : index
    %202 = tpu.strided_load %arg9[%c0_137, %c0_138] {strides = array<i32: 2, 1>} : memref<14x128xf32, #tpu.memory_space<vmem>>, vector<7x128xf32>
    %203 = arith.truncf %202 : vector<7x128xf32> to vector<7x128xbf16>
    %c1_139 = arith.constant 1 : index
    %c0_140 = arith.constant 0 : index
    %204 = tpu.strided_load %arg9[%c1_139, %c0_140] {strides = array<i32: 2, 1>} : memref<14x128xf32, #tpu.memory_space<vmem>>, vector<7x128xf32>
    %205 = arith.truncf %204 : vector<7x128xf32> to vector<7x128xbf16>
    %206 = vector.extract_strided_slice %203 {offsets = [0, 0], sizes = [4, 128], strides = [1, 1]} : vector<7x128xbf16> to vector<4x128xbf16>
    %c0_141 = arith.constant 0 : index
    %c0_142 = arith.constant 0 : index
    %c0_143 = arith.constant 0 : index
    %207 = vector.load %arg4[%c0_141, %c0_142, %c0_143] : memref<8x128x256xbf16, #tpu.memory_space<vmem>>, vector<1x128x256xbf16>
    %208 = vector.shape_cast %207 : vector<1x128x256xbf16> to vector<128x256xbf16>
    %cst_144 = arith.constant dense<0.000000e+00> : vector<4x256xf32>
    %209 = tpu.matmul %206, %208, %cst_144 {dimension_numbers = #tpu.dot_dimension_numbers<[1], [0], [0], [1], [0, 0, 1, 1], [], []>} : vector<4x128xbf16>, vector<128x256xbf16>, vector<4x256xf32> -> vector<4x256xf32>
    %210 = vector.extract_strided_slice %205 {offsets = [0, 0], sizes = [4, 128], strides = [1, 1]} : vector<7x128xbf16> to vector<4x128xbf16>
    %c1_145 = arith.constant 1 : index
    %c0_146 = arith.constant 0 : index
    %c0_147 = arith.constant 0 : index
    %211 = vector.load %arg4[%c1_145, %c0_146, %c0_147] : memref<8x128x256xbf16, #tpu.memory_space<vmem>>, vector<1x128x256xbf16>
    %212 = vector.shape_cast %211 : vector<1x128x256xbf16> to vector<128x256xbf16>
    %cst_148 = arith.constant dense<0.000000e+00> : vector<4x256xf32>
    %213 = tpu.matmul %210, %212, %cst_148 {dimension_numbers = #tpu.dot_dimension_numbers<[1], [0], [0], [1], [0, 0, 1, 1], [], []>} : vector<4x128xbf16>, vector<128x256xbf16>, vector<4x256xf32> -> vector<4x256xf32>
    %214 = arith.addf %209, %213 : vector<4x256xf32>
    %215 = vector.extract_strided_slice %203 {offsets = [1, 0], sizes = [4, 128], strides = [1, 1]} : vector<7x128xbf16> to vector<4x128xbf16>
    %c2_149 = arith.constant 2 : index
    %c0_150 = arith.constant 0 : index
    %c0_151 = arith.constant 0 : index
    %216 = vector.load %arg4[%c2_149, %c0_150, %c0_151] : memref<8x128x256xbf16, #tpu.memory_space<vmem>>, vector<1x128x256xbf16>
    %217 = vector.shape_cast %216 : vector<1x128x256xbf16> to vector<128x256xbf16>
    %cst_152 = arith.constant dense<0.000000e+00> : vector<4x256xf32>
    %218 = tpu.matmul %215, %217, %cst_152 {dimension_numbers = #tpu.dot_dimension_numbers<[1], [0], [0], [1], [0, 0, 1, 1], [], []>} : vector<4x128xbf16>, vector<128x256xbf16>, vector<4x256xf32> -> vector<4x256xf32>
    %219 = arith.addf %214, %218 : vector<4x256xf32>
    %220 = vector.extract_strided_slice %205 {offsets = [1, 0], sizes = [4, 128], strides = [1, 1]} : vector<7x128xbf16> to vector<4x128xbf16>
    %c3_153 = arith.constant 3 : index
    %c0_154 = arith.constant 0 : index
    %c0_155 = arith.constant 0 : index
    %221 = vector.load %arg4[%c3_153, %c0_154, %c0_155] : memref<8x128x256xbf16, #tpu.memory_space<vmem>>, vector<1x128x256xbf16>
    %222 = vector.shape_cast %221 : vector<1x128x256xbf16> to vector<128x256xbf16>
    %cst_156 = arith.constant dense<0.000000e+00> : vector<4x256xf32>
    %223 = tpu.matmul %220, %222, %cst_156 {dimension_numbers = #tpu.dot_dimension_numbers<[1], [0], [0], [1], [0, 0, 1, 1], [], []>} : vector<4x128xbf16>, vector<128x256xbf16>, vector<4x256xf32> -> vector<4x256xf32>
    %224 = arith.addf %219, %223 : vector<4x256xf32>
    %225 = vector.extract_strided_slice %203 {offsets = [2, 0], sizes = [4, 128], strides = [1, 1]} : vector<7x128xbf16> to vector<4x128xbf16>
    %c4_157 = arith.constant 4 : index
    %c0_158 = arith.constant 0 : index
    %c0_159 = arith.constant 0 : index
    %226 = vector.load %arg4[%c4_157, %c0_158, %c0_159] : memref<8x128x256xbf16, #tpu.memory_space<vmem>>, vector<1x128x256xbf16>
    %227 = vector.shape_cast %226 : vector<1x128x256xbf16> to vector<128x256xbf16>
    %cst_160 = arith.constant dense<0.000000e+00> : vector<4x256xf32>
    %228 = tpu.matmul %225, %227, %cst_160 {dimension_numbers = #tpu.dot_dimension_numbers<[1], [0], [0], [1], [0, 0, 1, 1], [], []>} : vector<4x128xbf16>, vector<128x256xbf16>, vector<4x256xf32> -> vector<4x256xf32>
    %229 = arith.addf %224, %228 : vector<4x256xf32>
    %230 = vector.extract_strided_slice %205 {offsets = [2, 0], sizes = [4, 128], strides = [1, 1]} : vector<7x128xbf16> to vector<4x128xbf16>
    %c5_161 = arith.constant 5 : index
    %c0_162 = arith.constant 0 : index
    %c0_163 = arith.constant 0 : index
    %231 = vector.load %arg4[%c5_161, %c0_162, %c0_163] : memref<8x128x256xbf16, #tpu.memory_space<vmem>>, vector<1x128x256xbf16>
    %232 = vector.shape_cast %231 : vector<1x128x256xbf16> to vector<128x256xbf16>
    %cst_164 = arith.constant dense<0.000000e+00> : vector<4x256xf32>
    %233 = tpu.matmul %230, %232, %cst_164 {dimension_numbers = #tpu.dot_dimension_numbers<[1], [0], [0], [1], [0, 0, 1, 1], [], []>} : vector<4x128xbf16>, vector<128x256xbf16>, vector<4x256xf32> -> vector<4x256xf32>
    %234 = arith.addf %229, %233 : vector<4x256xf32>
    %235 = vector.extract_strided_slice %203 {offsets = [3, 0], sizes = [4, 128], strides = [1, 1]} : vector<7x128xbf16> to vector<4x128xbf16>
    %c6_165 = arith.constant 6 : index
    %c0_166 = arith.constant 0 : index
    %c0_167 = arith.constant 0 : index
    %236 = vector.load %arg4[%c6_165, %c0_166, %c0_167] : memref<8x128x256xbf16, #tpu.memory_space<vmem>>, vector<1x128x256xbf16>
    %237 = vector.shape_cast %236 : vector<1x128x256xbf16> to vector<128x256xbf16>
    %cst_168 = arith.constant dense<0.000000e+00> : vector<4x256xf32>
    %238 = tpu.matmul %235, %237, %cst_168 {dimension_numbers = #tpu.dot_dimension_numbers<[1], [0], [0], [1], [0, 0, 1, 1], [], []>} : vector<4x128xbf16>, vector<128x256xbf16>, vector<4x256xf32> -> vector<4x256xf32>
    %239 = arith.addf %234, %238 : vector<4x256xf32>
    %240 = vector.extract_strided_slice %205 {offsets = [3, 0], sizes = [4, 128], strides = [1, 1]} : vector<7x128xbf16> to vector<4x128xbf16>
    %c7_169 = arith.constant 7 : index
    %c0_170 = arith.constant 0 : index
    %c0_171 = arith.constant 0 : index
    %241 = vector.load %arg4[%c7_169, %c0_170, %c0_171] : memref<8x128x256xbf16, #tpu.memory_space<vmem>>, vector<1x128x256xbf16>
    %242 = vector.shape_cast %241 : vector<1x128x256xbf16> to vector<128x256xbf16>
    %cst_172 = arith.constant dense<0.000000e+00> : vector<4x256xf32>
    %243 = tpu.matmul %240, %242, %cst_172 {dimension_numbers = #tpu.dot_dimension_numbers<[1], [0], [0], [1], [0, 0, 1, 1], [], []>} : vector<4x128xbf16>, vector<128x256xbf16>, vector<4x256xf32> -> vector<4x256xf32>
    %244 = arith.addf %239, %243 : vector<4x256xf32>
    %245 = vector.extract_strided_slice %244 {offsets = [0, 0], sizes = [4, 128], strides = [1, 1]} : vector<4x256xf32> to vector<4x128xf32>
    %246 = vector.extract_strided_slice %244 {offsets = [0, 128], sizes = [4, 128], strides = [1, 1]} : vector<4x256xf32> to vector<4x128xf32>
    %cst_173 = arith.constant dense<0.000000e+00> : vector<128xf32>
    %247 = vector.multi_reduction <add>, %245, %cst_173 [0] : vector<4x128xf32> to vector<128xf32>
    %248 = vector.shape_cast %247 : vector<128xf32> to vector<1x128xf32>
    %cst_174 = arith.constant 4.000000e+00 : f32
    %249 = vector.broadcast %cst_174 : f32 to vector<1x128xf32>
    %250 = arith.divf %248, %249 : vector<1x128xf32>
    %251 = vector.broadcast %250 : vector<1x128xf32> to vector<4x128xf32>
    %252 = arith.subf %245, %251 : vector<4x128xf32>
    %253 = arith.mulf %252, %252 : vector<4x128xf32>
    %cst_175 = arith.constant dense<0.000000e+00> : vector<128xf32>
    %254 = vector.multi_reduction <add>, %253, %cst_175 [0] : vector<4x128xf32> to vector<128xf32>
    %255 = vector.shape_cast %254 : vector<128xf32> to vector<1x128xf32>
    %cst_176 = arith.constant 4.000000e+00 : f32
    %256 = vector.broadcast %cst_176 : f32 to vector<1x128xf32>
    %257 = arith.divf %255, %256 : vector<1x128xf32>
    %258 = vector.broadcast %250 : vector<1x128xf32> to vector<4x128xf32>
    %259 = arith.subf %245, %258 : vector<4x128xf32>
    %cst_177 = arith.constant 9.99999974E-6 : f32
    %260 = vector.broadcast %cst_177 : f32 to vector<1x128xf32>
    %261 = arith.addf %257, %260 : vector<1x128xf32>
    %262 = math.rsqrt %261 : vector<1x128xf32>
    %263 = vector.broadcast %262 : vector<1x128xf32> to vector<4x128xf32>
    %264 = arith.mulf %259, %263 : vector<4x128xf32>
    %cst_178 = arith.constant dense<0.000000e+00> : vector<128xf32>
    %265 = vector.multi_reduction <add>, %246, %cst_178 [0] : vector<4x128xf32> to vector<128xf32>
    %266 = vector.shape_cast %265 : vector<128xf32> to vector<1x128xf32>
    %cst_179 = arith.constant 4.000000e+00 : f32
    %267 = vector.broadcast %cst_179 : f32 to vector<1x128xf32>
    %268 = arith.divf %266, %267 : vector<1x128xf32>
    %269 = vector.broadcast %268 : vector<1x128xf32> to vector<4x128xf32>
    %270 = arith.subf %246, %269 : vector<4x128xf32>
    %271 = arith.mulf %270, %270 : vector<4x128xf32>
    %cst_180 = arith.constant dense<0.000000e+00> : vector<128xf32>
    %272 = vector.multi_reduction <add>, %271, %cst_180 [0] : vector<4x128xf32> to vector<128xf32>
    %273 = vector.shape_cast %272 : vector<128xf32> to vector<1x128xf32>
    %cst_181 = arith.constant 4.000000e+00 : f32
    %274 = vector.broadcast %cst_181 : f32 to vector<1x128xf32>
    %275 = arith.divf %273, %274 : vector<1x128xf32>
    %276 = vector.broadcast %268 : vector<1x128xf32> to vector<4x128xf32>
    %277 = arith.subf %246, %276 : vector<4x128xf32>
    %cst_182 = arith.constant 9.99999974E-6 : f32
    %278 = vector.broadcast %cst_182 : f32 to vector<1x128xf32>
    %279 = arith.addf %275, %278 : vector<1x128xf32>
    %280 = math.rsqrt %279 : vector<1x128xf32>
    %281 = vector.broadcast %280 : vector<1x128xf32> to vector<4x128xf32>
    %282 = arith.mulf %277, %281 : vector<4x128xf32>
    %283 = arith.negf %282 : vector<4x128xf32>
    %284 = math.exp %283 : vector<4x128xf32>
    %cst_183 = arith.constant 1.000000e+00 : f32
    %285 = vector.broadcast %cst_183 : f32 to vector<4x128xf32>
    %286 = arith.addf %285, %284 : vector<4x128xf32>
    %287 = arith.divf %285, %286 : vector<4x128xf32>
    %288 = arith.mulf %264, %287 : vector<4x128xf32>
    %289 = arith.truncf %288 : vector<4x128xf32> to vector<4x128xbf16>
    %c2_184 = arith.constant 2 : index
    %c0_185 = arith.constant 0 : index
    %290 = vector.load %arg10[%c2_184, %c0_185] : memref<8x128xbf16, #tpu.memory_space<vmem>>, vector<4x128xbf16>
    tpu.vector_store %arg10[%c2_184, %c0_185], %289 {strides = array<i32>} : memref<8x128xbf16, #tpu.memory_space<vmem>>, vector<4x128xbf16>,
    %c0_186 = arith.constant 0 : index
    %c0_187 = arith.constant 0 : index
    %291 = vector.load %arg10[%c0_186, %c0_187] : memref<8x128xbf16, #tpu.memory_space<vmem>>, vector<4x128xbf16>
    %c0_188 = arith.constant 0 : index
    %c0_189 = arith.constant 0 : index
    %c0_190 = arith.constant 0 : index
    %292 = vector.load %arg5[%c0_188, %c0_189, %c0_190] : memref<5x128x256xbf16, #tpu.memory_space<vmem>>, vector<1x128x256xbf16>
    %293 = vector.shape_cast %292 : vector<1x128x256xbf16> to vector<128x256xbf16>
    %cst_191 = arith.constant dense<0.000000e+00> : vector<4x256xf32>
    %294 = tpu.matmul %291, %293, %cst_191 {dimension_numbers = #tpu.dot_dimension_numbers<[1], [0], [0], [1], [0, 0, 1, 1], [], []>} : vector<4x128xbf16>, vector<128x256xbf16>, vector<4x256xf32> -> vector<4x256xf32>
    %c1_192 = arith.constant 1 : index
    %c0_193 = arith.constant 0 : index
    %295 = vector.load %arg10[%c1_192, %c0_193] : memref<8x128xbf16, #tpu.memory_space<vmem>>, vector<4x128xbf16>
    %c1_194 = arith.constant 1 : index
    %c0_195 = arith.constant 0 : index
    %c0_196 = arith.constant 0 : index
    %296 = vector.load %arg5[%c1_194, %c0_195, %c0_196] : memref<5x128x256xbf16, #tpu.memory_space<vmem>>, vector<1x128x256xbf16>
    %297 = vector.shape_cast %296 : vector<1x128x256xbf16> to vector<128x256xbf16>
    %cst_197 = arith.constant dense<0.000000e+00> : vector<4x256xf32>
    %298 = tpu.matmul %295, %297, %cst_197 {dimension_numbers = #tpu.dot_dimension_numbers<[1], [0], [0], [1], [0, 0, 1, 1], [], []>} : vector<4x128xbf16>, vector<128x256xbf16>, vector<4x256xf32> -> vector<4x256xf32>
    %299 = arith.addf %294, %298 : vector<4x256xf32>
    %c2_198 = arith.constant 2 : index
    %c0_199 = arith.constant 0 : index
    %300 = vector.load %arg10[%c2_198, %c0_199] : memref<8x128xbf16, #tpu.memory_space<vmem>>, vector<4x128xbf16>
    %c2_200 = arith.constant 2 : index
    %c0_201 = arith.constant 0 : index
    %c0_202 = arith.constant 0 : index
    %301 = vector.load %arg5[%c2_200, %c0_201, %c0_202] : memref<5x128x256xbf16, #tpu.memory_space<vmem>>, vector<1x128x256xbf16>
    %302 = vector.shape_cast %301 : vector<1x128x256xbf16> to vector<128x256xbf16>
    %cst_203 = arith.constant dense<0.000000e+00> : vector<4x256xf32>
    %303 = tpu.matmul %300, %302, %cst_203 {dimension_numbers = #tpu.dot_dimension_numbers<[1], [0], [0], [1], [0, 0, 1, 1], [], []>} : vector<4x128xbf16>, vector<128x256xbf16>, vector<4x256xf32> -> vector<4x256xf32>
    %304 = arith.addf %299, %303 : vector<4x256xf32>
    %c3_204 = arith.constant 3 : index
    %c0_205 = arith.constant 0 : index
    %305 = vector.load %arg10[%c3_204, %c0_205] : memref<8x128xbf16, #tpu.memory_space<vmem>>, vector<4x128xbf16>
    %c3_206 = arith.constant 3 : index
    %c0_207 = arith.constant 0 : index
    %c0_208 = arith.constant 0 : index
    %306 = vector.load %arg5[%c3_206, %c0_207, %c0_208] : memref<5x128x256xbf16, #tpu.memory_space<vmem>>, vector<1x128x256xbf16>
    %307 = vector.shape_cast %306 : vector<1x128x256xbf16> to vector<128x256xbf16>
    %cst_209 = arith.constant dense<0.000000e+00> : vector<4x256xf32>
    %308 = tpu.matmul %305, %307, %cst_209 {dimension_numbers = #tpu.dot_dimension_numbers<[1], [0], [0], [1], [0, 0, 1, 1], [], []>} : vector<4x128xbf16>, vector<128x256xbf16>, vector<4x256xf32> -> vector<4x256xf32>
    %309 = arith.addf %304, %308 : vector<4x256xf32>
    %c4_210 = arith.constant 4 : index
    %c0_211 = arith.constant 0 : index
    %310 = vector.load %arg10[%c4_210, %c0_211] : memref<8x128xbf16, #tpu.memory_space<vmem>>, vector<4x128xbf16>
    %c4_212 = arith.constant 4 : index
    %c0_213 = arith.constant 0 : index
    %c0_214 = arith.constant 0 : index
    %311 = vector.load %arg5[%c4_212, %c0_213, %c0_214] : memref<5x128x256xbf16, #tpu.memory_space<vmem>>, vector<1x128x256xbf16>
    %312 = vector.shape_cast %311 : vector<1x128x256xbf16> to vector<128x256xbf16>
    %cst_215 = arith.constant dense<0.000000e+00> : vector<4x256xf32>
    %313 = tpu.matmul %310, %312, %cst_215 {dimension_numbers = #tpu.dot_dimension_numbers<[1], [0], [0], [1], [0, 0, 1, 1], [], []>} : vector<4x128xbf16>, vector<128x256xbf16>, vector<4x256xf32> -> vector<4x256xf32>
    %314 = arith.addf %309, %313 : vector<4x256xf32>
    %315 = vector.extract_strided_slice %314 {offsets = [0, 0], sizes = [4, 128], strides = [1, 1]} : vector<4x256xf32> to vector<4x128xf32>
    %316 = vector.extract_strided_slice %314 {offsets = [0, 128], sizes = [4, 128], strides = [1, 1]} : vector<4x256xf32> to vector<4x128xf32>
    %cst_216 = arith.constant dense<0.000000e+00> : vector<128xf32>
    %317 = vector.multi_reduction <add>, %315, %cst_216 [0] : vector<4x128xf32> to vector<128xf32>
    %318 = vector.shape_cast %317 : vector<128xf32> to vector<1x128xf32>
    %cst_217 = arith.constant 4.000000e+00 : f32
    %319 = vector.broadcast %cst_217 : f32 to vector<1x128xf32>
    %320 = arith.divf %318, %319 : vector<1x128xf32>
    %321 = vector.broadcast %320 : vector<1x128xf32> to vector<4x128xf32>
    %322 = arith.subf %315, %321 : vector<4x128xf32>
    %323 = arith.mulf %322, %322 : vector<4x128xf32>
    %cst_218 = arith.constant dense<0.000000e+00> : vector<128xf32>
    %324 = vector.multi_reduction <add>, %323, %cst_218 [0] : vector<4x128xf32> to vector<128xf32>
    %325 = vector.shape_cast %324 : vector<128xf32> to vector<1x128xf32>
    %cst_219 = arith.constant 4.000000e+00 : f32
    %326 = vector.broadcast %cst_219 : f32 to vector<1x128xf32>
    %327 = arith.divf %325, %326 : vector<1x128xf32>
    %328 = vector.broadcast %320 : vector<1x128xf32> to vector<4x128xf32>
    %329 = arith.subf %315, %328 : vector<4x128xf32>
    %cst_220 = arith.constant 9.99999974E-6 : f32
    %330 = vector.broadcast %cst_220 : f32 to vector<1x128xf32>
    %331 = arith.addf %327, %330 : vector<1x128xf32>
    %332 = math.rsqrt %331 : vector<1x128xf32>
    %333 = vector.broadcast %332 : vector<1x128xf32> to vector<4x128xf32>
    %334 = arith.mulf %329, %333 : vector<4x128xf32>
    %cst_221 = arith.constant dense<0.000000e+00> : vector<128xf32>
    %335 = vector.multi_reduction <add>, %316, %cst_221 [0] : vector<4x128xf32> to vector<128xf32>
    %336 = vector.shape_cast %335 : vector<128xf32> to vector<1x128xf32>
    %cst_222 = arith.constant 4.000000e+00 : f32
    %337 = vector.broadcast %cst_222 : f32 to vector<1x128xf32>
    %338 = arith.divf %336, %337 : vector<1x128xf32>
    %339 = vector.broadcast %338 : vector<1x128xf32> to vector<4x128xf32>
    %340 = arith.subf %316, %339 : vector<4x128xf32>
    %341 = arith.mulf %340, %340 : vector<4x128xf32>
    %cst_223 = arith.constant dense<0.000000e+00> : vector<128xf32>
    %342 = vector.multi_reduction <add>, %341, %cst_223 [0] : vector<4x128xf32> to vector<128xf32>
    %343 = vector.shape_cast %342 : vector<128xf32> to vector<1x128xf32>
    %cst_224 = arith.constant 4.000000e+00 : f32
    %344 = vector.broadcast %cst_224 : f32 to vector<1x128xf32>
    %345 = arith.divf %343, %344 : vector<1x128xf32>
    %346 = vector.broadcast %338 : vector<1x128xf32> to vector<4x128xf32>
    %347 = arith.subf %316, %346 : vector<4x128xf32>
    %cst_225 = arith.constant 9.99999974E-6 : f32
    %348 = vector.broadcast %cst_225 : f32 to vector<1x128xf32>
    %349 = arith.addf %345, %348 : vector<1x128xf32>
    %350 = math.rsqrt %349 : vector<1x128xf32>
    %351 = vector.broadcast %350 : vector<1x128xf32> to vector<4x128xf32>
    %352 = arith.mulf %347, %351 : vector<4x128xf32>
    %353 = arith.negf %352 : vector<4x128xf32>
    %354 = math.exp %353 : vector<4x128xf32>
    %cst_226 = arith.constant 1.000000e+00 : f32
    %355 = vector.broadcast %cst_226 : f32 to vector<4x128xf32>
    %356 = arith.addf %355, %354 : vector<4x128xf32>
    %357 = arith.divf %355, %356 : vector<4x128xf32>
    %358 = arith.mulf %334, %357 : vector<4x128xf32>
    %359 = arith.truncf %358 : vector<4x128xf32> to vector<4x128xbf16>
    %c2_227 = arith.constant 2 : index
    %c0_228 = arith.constant 0 : index
    %360 = vector.load %arg11[%c2_227, %c0_228] : memref<8x128xbf16, #tpu.memory_space<vmem>>, vector<4x128xbf16>
    tpu.vector_store %arg11[%c2_227, %c0_228], %359 {strides = array<i32>} : memref<8x128xbf16, #tpu.memory_space<vmem>>, vector<4x128xbf16>,
    %c0_229 = arith.constant 0 : index
    %c0_230 = arith.constant 0 : index
    %361 = vector.load %arg11[%c0_229, %c0_230] : memref<8x128xbf16, #tpu.memory_space<vmem>>, vector<4x128xbf16>
    %c0_231 = arith.constant 0 : index
    %c0_232 = arith.constant 0 : index
    %c0_233 = arith.constant 0 : index
    %362 = vector.load %arg6[%c0_231, %c0_232, %c0_233] : memref<5x128x128xbf16, #tpu.memory_space<vmem>>, vector<1x128x128xbf16>
    %363 = vector.shape_cast %362 : vector<1x128x128xbf16> to vector<128x128xbf16>
    %cst_234 = arith.constant dense<0.000000e+00> : vector<4x128xf32>
    %364 = tpu.matmul %361, %363, %cst_234 {dimension_numbers = #tpu.dot_dimension_numbers<[1], [0], [0], [1], [0, 0, 1, 1], [], []>} : vector<4x128xbf16>, vector<128x128xbf16>, vector<4x128xf32> -> vector<4x128xf32>
    %c1_235 = arith.constant 1 : index
    %c0_236 = arith.constant 0 : index
    %365 = vector.load %arg11[%c1_235, %c0_236] : memref<8x128xbf16, #tpu.memory_space<vmem>>, vector<4x128xbf16>
    %c1_237 = arith.constant 1 : index
    %c0_238 = arith.constant 0 : index
    %c0_239 = arith.constant 0 : index
    %366 = vector.load %arg6[%c1_237, %c0_238, %c0_239] : memref<5x128x128xbf16, #tpu.memory_space<vmem>>, vector<1x128x128xbf16>
    %367 = vector.shape_cast %366 : vector<1x128x128xbf16> to vector<128x128xbf16>
    %cst_240 = arith.constant dense<0.000000e+00> : vector<4x128xf32>
    %368 = tpu.matmul %365, %367, %cst_240 {dimension_numbers = #tpu.dot_dimension_numbers<[1], [0], [0], [1], [0, 0, 1, 1], [], []>} : vector<4x128xbf16>, vector<128x128xbf16>, vector<4x128xf32> -> vector<4x128xf32>
    %369 = arith.addf %364, %368 : vector<4x128xf32>
    %c2_241 = arith.constant 2 : index
    %c0_242 = arith.constant 0 : index
    %370 = vector.load %arg11[%c2_241, %c0_242] : memref<8x128xbf16, #tpu.memory_space<vmem>>, vector<4x128xbf16>
    %c2_243 = arith.constant 2 : index
    %c0_244 = arith.constant 0 : index
    %c0_245 = arith.constant 0 : index
    %371 = vector.load %arg6[%c2_243, %c0_244, %c0_245] : memref<5x128x128xbf16, #tpu.memory_space<vmem>>, vector<1x128x128xbf16>
    %372 = vector.shape_cast %371 : vector<1x128x128xbf16> to vector<128x128xbf16>
    %cst_246 = arith.constant dense<0.000000e+00> : vector<4x128xf32>
    %373 = tpu.matmul %370, %372, %cst_246 {dimension_numbers = #tpu.dot_dimension_numbers<[1], [0], [0], [1], [0, 0, 1, 1], [], []>} : vector<4x128xbf16>, vector<128x128xbf16>, vector<4x128xf32> -> vector<4x128xf32>
    %374 = arith.addf %369, %373 : vector<4x128xf32>
    %c3_247 = arith.constant 3 : index
    %c0_248 = arith.constant 0 : index
    %375 = vector.load %arg11[%c3_247, %c0_248] : memref<8x128xbf16, #tpu.memory_space<vmem>>, vector<4x128xbf16>
    %c3_249 = arith.constant 3 : index
    %c0_250 = arith.constant 0 : index
    %c0_251 = arith.constant 0 : index
    %376 = vector.load %arg6[%c3_249, %c0_250, %c0_251] : memref<5x128x128xbf16, #tpu.memory_space<vmem>>, vector<1x128x128xbf16>
    %377 = vector.shape_cast %376 : vector<1x128x128xbf16> to vector<128x128xbf16>
    %cst_252 = arith.constant dense<0.000000e+00> : vector<4x128xf32>
    %378 = tpu.matmul %375, %377, %cst_252 {dimension_numbers = #tpu.dot_dimension_numbers<[1], [0], [0], [1], [0, 0, 1, 1], [], []>} : vector<4x128xbf16>, vector<128x128xbf16>, vector<4x128xf32> -> vector<4x128xf32>
    %379 = arith.addf %374, %378 : vector<4x128xf32>
    %c4_253 = arith.constant 4 : index
    %c0_254 = arith.constant 0 : index
    %380 = vector.load %arg11[%c4_253, %c0_254] : memref<8x128xbf16, #tpu.memory_space<vmem>>, vector<4x128xbf16>
    %c4_255 = arith.constant 4 : index
    %c0_256 = arith.constant 0 : index
    %c0_257 = arith.constant 0 : index
    %381 = vector.load %arg6[%c4_255, %c0_256, %c0_257] : memref<5x128x128xbf16, #tpu.memory_space<vmem>>, vector<1x128x128xbf16>
    %382 = vector.shape_cast %381 : vector<1x128x128xbf16> to vector<128x128xbf16>
    %cst_258 = arith.constant dense<0.000000e+00> : vector<4x128xf32>
    %383 = tpu.matmul %380, %382, %cst_258 {dimension_numbers = #tpu.dot_dimension_numbers<[1], [0], [0], [1], [0, 0, 1, 1], [], []>} : vector<4x128xbf16>, vector<128x128xbf16>, vector<4x128xf32> -> vector<4x128xf32>
    %384 = arith.addf %379, %383 : vector<4x128xf32>
    %c0_259 = arith.constant 0 : index
    %c0_260 = arith.constant 0 : index
    %c0_261 = arith.constant 0 : index
    %385 = vector.load %arg7[%c0_259, %c0_260, %c0_261] : memref<1x4x128xf32, #tpu.memory_space<vmem>>, vector<1x4x128xf32>
    %386 = vector.shape_cast %385 : vector<1x4x128xf32> to vector<4x128xf32>
    %387 = vector.shape_cast %384 : vector<4x128xf32> to vector<1x4x128xf32>
    tpu.vector_store %arg7[%c0_259, %c0_260, %c0_261], %387 {strides = array<i32>} : memref<1x4x128xf32, #tpu.memory_space<vmem>>, vector<1x4x128xf32>,
    return
  }
  func.func @transform_0(%arg0: i32) -> (i32, i32, i32) {
    %c0_i32 = arith.constant 0 : i32
    %c0_i32_0 = arith.constant 0 : i32
    %c0_i32_1 = arith.constant 0 : i32
    return %arg0, %c0_i32, %c0_i32_0 : i32, i32, i32
  }
  func.func @transform_1(%arg0: i32) -> (i32, i32, i32) {
    %c0_i32 = arith.constant 0 : i32
    %c0_i32_0 = arith.constant 0 : i32
    %c0_i32_1 = arith.constant 0 : i32
    %c0_i32_2 = arith.constant 0 : i32
    return %c0_i32, %c0_i32_0, %c0_i32_1 : i32, i32, i32
  }
  func.func @transform_2(%arg0: i32) -> (i32, i32, i32) {
    %c0_i32 = arith.constant 0 : i32
    %c0_i32_0 = arith.constant 0 : i32
    %c0_i32_1 = arith.constant 0 : i32
    %c0_i32_2 = arith.constant 0 : i32
    return %c0_i32, %c0_i32_0, %c0_i32_1 : i32, i32, i32
  }
  func.func @transform_3(%arg0: i32) -> (i32, i32, i32) {
    %c0_i32 = arith.constant 0 : i32
    %c0_i32_0 = arith.constant 0 : i32
    %c0_i32_1 = arith.constant 0 : i32
    %c0_i32_2 = arith.constant 0 : i32
    return %c0_i32, %c0_i32_0, %c0_i32_1 : i32, i32, i32
  }
  func.func @transform_4(%arg0: i32) -> (i32, i32, i32) {
    %c0_i32 = arith.constant 0 : i32
    %c0_i32_0 = arith.constant 0 : i32
    %c0_i32_1 = arith.constant 0 : i32
    %c0_i32_2 = arith.constant 0 : i32
    return %c0_i32, %c0_i32_0, %c0_i32_1 : i32, i32, i32
  }
  func.func @transform_5(%arg0: i32) -> (i32, i32, i32) {
    %c0_i32 = arith.constant 0 : i32
    %c0_i32_0 = arith.constant 0 : i32
    %c0_i32_1 = arith.constant 0 : i32
    %c0_i32_2 = arith.constant 0 : i32
    return %c0_i32, %c0_i32_0, %c0_i32_1 : i32, i32, i32
  }
  func.func @transform_6(%arg0: i32) -> (i32, i32, i32) {
    %c0_i32 = arith.constant 0 : i32
    %c0_i32_0 = arith.constant 0 : i32
    %c0_i32_1 = arith.constant 0 : i32
    return %arg0, %c0_i32, %c0_i32_0 : i32, i32, i32
  }
}

</mosaic_0001>

<bundles_post_ra>
// kernel: discriminator_forward.1
= control target key start
LH: loop header
LB: loop body
LE: loop exit
PB: predicated region body
PF: predicated region fallthrough
CT: control target
= control target key end

     0   :  { %11 = vsyncpa [#allocation7], 0  ;;  %s8844_s0 = inlined_call_operand.vmem [shape: bf16[2,24,192], index: 0, kind: input, shape index: {}]   ;;  %s8845_s1 = inlined_call_operand.hbm [shape: bf16[9,192,256], index: 1, kind: input, shape index: {}]   ;;  %s8846_s2 = inlined_call_operand.hbm [shape: bf16[8,128,256], index: 2, kind: input, shape index: {}]   ;;  %s8847_s3 = inlined_call_operand.hbm [shape: bf16[8,128,256], index: 3, kind: input, shape index: {}]   ;;  %s8848_s4 = inlined_call_operand.hbm [shape: bf16[5,128,256], index: 4, kind: input, shape index: {}]   ;;  %s8849_s5 = inlined_call_operand.hbm [shape: bf16[5,128,128], index: 5, kind: input, shape index: {}]   ;;  %s8850_s6 = inlined_call_operand.vmem [shape: f32[2,4,128], index: 6, kind: output, shape index: {}]  }
   0x1   :  { %12 = vsyncpa [#allocation9], 0 }
   0x2   :  { %13 = vsyncpa [#allocation12], 0  ;;  %s8348_s21 = smov 0  }
   0x3 LB: > { %s8354_s22 = sadd.s32 4294967295, %s8299_s21   ;;  %p6226_p0 = scmp.ge.s32.totalorder %s8299_s21, 1  ;;  %s8299_s21 = sphi %s8348_s21, %s19_s21  }
   0x4   : > { %p181_p1 = scmp.lt.s32.totalorder %s8299_s21, 3  ;;  %p8851_p2 = scmp.eq.s32.totalorder %s8354_s22, 0 }
   0x5   : > { %s8301_s24 = smov [#allocation8]   ;;  %s8302_s26 = smov [#allocation11]  }
   0x6   : > { %p8359_p3 = pnand %p6226_p0, %p181_p1  ;;  %s206_s25 = sshll.u32 %s8301_s24, 4  ;;  %s8363_s25 = int_to_ptr.vmem [resolvable:$true] %s206_s25 }
   0x7   : > { %s232_s27 = sshll.u32 %s8302_s26, 4  ;;  %s8303_s29 = smov [#allocation6]   ;;  %s8367_s27 = int_to_ptr.vmem [resolvable:$true] %s232_s27 }
   0x8   : > { %s8853_s23 = scalar_select %p8359_p3, 1, 0 }
   0x9   : > { %p7163_p4 = pneg %p8359_p3  ;;  %s193_s30 = sshll.u32 %s8303_s29, 4  ;;  %s8375_s30 = int_to_ptr.vmem [resolvable:$true] %s193_s30 }
   0xa   : > { %s8304_s7 = smov [#allocation10]   ;;  %s8141_s11 = scalar_lea.hbm %s8846_s2, 16384 }
   0xb   : > { %p8371_p5 = pnand %p8851_p2, %p7163_p4  ;;  %s8377_s8 = sshll.u32 %s8304_s7, 4  ;;  %s220_s8 = int_to_ptr.vmem [resolvable:$true] %s8377_s8 }
   0xc   : > { %p8142_p6 = scmp.ne.s32.totalorder %s8846_s2, %s8141_s11  ;;  %p8148_p10 = scmp.lt.u32.totalorder %s8141_s11, %s8846_s2 }
   0xd   : > { %p8387_p7 = pneg %p8371_p5 }
   0xf   : > { %p8144_p8 = pnand %p8387_p7, %p8142_p6 }
  0x11   : > { %p8145_p9 = pneg %p8144_p8 }
  0x13   : > { %p8150_p11 = pnand %p8148_p10, %p8145_p9 }
  0x15   : > { %8153 = shalt.err (!%p8150_p11)
}
  0x16   : > { %s8154_s17 = scalar_lea.vmem %s8363_s25, 16384  ;;  %p8162_p1 = scmp.lt.s32.totalorder %s8363_s25, %s8363_s25 }
  0x17   : > { %p8155_p12 = scmp.ne.s32.totalorder %s8363_s25, %s8154_s17  ;;  %p8163_p4 = scmp.lt.s32.totalorder %s8154_s17, %s8154_s17 }
  0x19   : > { %p8157_p13 = pnand %p8155_p12, %p8387_p7  ;;  %p8164_p6 = por %p8163_p4, %p8162_p1 }
  0x1b   : > { %p8158_p0 = pneg %p8157_p13 }
  0x1d   : > { %p8165_p8 = pnand %p8164_p6, %p8158_p0 }
  0x1f   : > { %8168 = shalt.err (!%p8165_p8)
}
  0x20   : > { %s8305_s18 = smov 128   ;;  %s8306_s19 = smov 8  }
  0x21   : > { %7169 = dma.hbm_to_vmem [thread:$0]  (!%p8371_p5), %s8846_s2, 16384, %s8363_s25, [#allocation9], %s8305_s18, %s8305_s18, %s8306_s19  }
  0x22   : > { %s8169_s7 = scalar_lea.hbm %s8848_s4, 10240 }
  0x23   : > { %p8170_p9 = scmp.ne.s32.totalorder %s8848_s4, %s8169_s7  ;;  %p8176_p12 = scmp.lt.u32.totalorder %s8169_s7, %s8848_s4 }
  0x25   : > { %p8172_p10 = pnand %p8170_p9, %p8387_p7 }
  0x27   : > { %p8173_p11 = pneg %p8172_p10 }
  0x29   : > { %p8178_p13 = pnand %p8176_p12, %p8173_p11 }
  0x2b   : > { %8181 = shalt.err (!%p8178_p13)
}
  0x2c   : > { %s8182_s25 = scalar_lea.vmem %s8367_s27, 10240  ;;  %p8190_p6 = scmp.lt.s32.totalorder %s8367_s27, %s8367_s27 }
  0x2d   : > { %p8183_p0 = scmp.ne.s32.totalorder %s8367_s27, %s8182_s25  ;;  %p8191_p8 = scmp.lt.s32.totalorder %s8182_s25, %s8182_s25 }
  0x2f   : > { %p8185_p1 = pnand %p8183_p0, %p8387_p7  ;;  %p8192_p9 = por %p8191_p8, %p8190_p6 }
  0x31   : > { %p8186_p4 = pneg %p8185_p1 }
  0x33   : > { %p8193_p10 = pnand %p8192_p9, %p8186_p4 }
  0x35   : > { %8196 = shalt.err (!%p8193_p10)
}
  0x36   : > { %7175 = dma.hbm_to_vmem [thread:$0]  (!%p8371_p5), %s8848_s4, 10240, %s8367_s27, [#allocation12], %s8305_s18, %s8305_s18, %s8306_s19  }
  0x37   : > { %s8197_s20 = scalar_lea.hbm %s8845_s1, 27648 }
  0x38   : > { %p8198_p11 = scmp.ne.s32.totalorder %s8845_s1, %s8197_s20  ;;  %p8204_p0 = scmp.lt.u32.totalorder %s8197_s20, %s8845_s1 }
  0x3a   : > { %p8200_p12 = pnand %p8198_p11, %p8387_p7 }
  0x3c   : > { %p8201_p13 = pneg %p8200_p12 }
  0x3e   : > { %p8206_p1 = pnand %p8204_p0, %p8201_p13 }
  0x40   : > { %8209 = shalt.err (!%p8206_p1)
}
  0x41   : > { %s8210_s27 = scalar_lea.vmem %s8375_s30, 27648  ;;  %p8218_p9 = scmp.lt.s32.totalorder %s8375_s30, %s8375_s30 }
  0x42   : > { %p8211_p4 = scmp.ne.s32.totalorder %s8375_s30, %s8210_s27  ;;  %p8219_p10 = scmp.lt.s32.totalorder %s8210_s27, %s8210_s27 }
  0x44   : > { %p8213_p6 = pnand %p8211_p4, %p8387_p7  ;;  %p8220_p11 = por %p8219_p10, %p8218_p9 }
  0x46   : > { %p8214_p8 = pneg %p8213_p6 }
  0x48   : > { %p8221_p12 = pnand %p8220_p11, %p8214_p8 }
  0x4a   : > { %8224 = shalt.err (!%p8221_p12)
}
  0x4b   : > { %7166 = dma.hbm_to_vmem [thread:$0]  (!%p8371_p5), %s8845_s1, 27648, %s8375_s30, [#allocation7], %s8305_s18, %s8305_s18, %s8306_s19  }
  0x4c   : > { %s8225_s25 = scalar_lea.hbm %s8847_s3, 16384 }
  0x4d   : > { %p8226_p13 = scmp.ne.s32.totalorder %s8847_s3, %s8225_s25  ;;  %p8232_p4 = scmp.lt.u32.totalorder %s8225_s25, %s8847_s3 }
  0x4f   : > { %p8228_p0 = pnand %p8226_p13, %p8387_p7 }
  0x51   : > { %p8229_p1 = pneg %p8228_p0 }
  0x53   : > { %p8234_p6 = pnand %p8232_p4, %p8229_p1 }
  0x55   : > { %8237 = shalt.err (!%p8234_p6)
}
  0x56   : > { %s8238_s20 = scalar_lea.vmem %s220_s8, 16384  ;;  %p8246_p11 = scmp.lt.s32.totalorder %s220_s8, %s220_s8 }
  0x57   : > { %p8239_p8 = scmp.ne.s32.totalorder %s220_s8, %s8238_s20  ;;  %p8247_p12 = scmp.lt.s32.totalorder %s8238_s20, %s8238_s20 }
  0x59   : > { %p8241_p9 = pnand %p8239_p8, %p8387_p7  ;;  %p8248_p2 = por %p8247_p12, %p8246_p11 }
  0x5b   : > { %p8242_p10 = pneg %p8241_p9 }
  0x5d   : > { %p8249_p3 = pnand %p8248_p2, %p8242_p10 }
  0x5f   : > { %8252 = shalt.err (!%p8249_p3)
}
  0x60   : > { %7172 = dma.hbm_to_vmem [thread:$0]  (!%p8371_p5), %s8847_s3, 16384, %s220_s8, [#allocation9], %s8305_s18, %s8305_s18, %s8306_s19  }
  0x61   : > { %s8307_s26 = smov [#allocation13]   ;;  %s8253_s9 = scalar_lea.hbm %s8849_s5, 5120 }
  0x62   : > { %s245_s29 = sshll.u32 %s8307_s26, 4  ;;  %p8254_p2 = scmp.ne.s32.totalorder %s8849_s5, %s8253_s9  ;;  %s246_s29 = int_to_ptr.vmem [resolvable:$true] %s245_s29 }
  0x63   : > { %p8260_p0 = scmp.lt.u32.totalorder %s8253_s9, %s8849_s5 }
  0x64   : > { %p8256_p3 = pnand %p8254_p2, %p8387_p7 }
  0x66   : > { %p8257_p13 = pneg %p8256_p3 }
  0x68   : > { %p8262_p1 = pnand %p8260_p0, %p8257_p13 }
  0x6a   : > { %8265 = shalt.err (!%p8262_p1)
}
  0x6b   : > { %s8266_s8 = scalar_lea.vmem %s246_s29, 5120  ;;  %p8274_p9 = scmp.lt.s32.totalorder %s246_s29, %s246_s29 }
  0x6c   : > { %p8267_p4 = scmp.ne.s32.totalorder %s246_s29, %s8266_s8  ;;  %p8275_p10 = scmp.lt.s32.totalorder %s8266_s8, %s8266_s8 }
  0x6e   : > { %p8269_p6 = pnand %p8267_p4, %p8387_p7  ;;  %p8276_p11 = por %p8275_p10, %p8274_p9 }
  0x70   : > { %p8270_p8 = pneg %p8269_p6 }
  0x72   : > { %p8277_p12 = pnand %p8276_p11, %p8270_p8 }
  0x74   : > { %8280 = shalt.err (!%p8277_p12)
}
  0x75   : > { %s8308_s18 = smov 64   ;;  %s8309_s19 = smov 4  }
  0x76   : > { %7178 = dma.hbm_to_vmem [thread:$0]  (!%p8371_p5), %s8849_s5, 5120, %s246_s29, [#allocation12], %s8308_s18, %s8308_s18, %s8309_s19  }
  0x77   : > { %p8856_p2 = scmp.ne.s32.totalorder %s8853_s23, 0 }
  0x78   : > { %p8857_p3 = scmp.eq.s32.totalorder (!%p8856_p2), %s8354_s22, 0 }
  0x79   : > { %269 = sbr.rel (%p8856_p2) target bundleno = 2602 (0xa2a), region = 44 }
  0x80   : > { %8286 = dma.done.wait (%p8857_p3), [#allocation7], 27648   ;;  %p8858_p7 = pmov %p8857_p3 }
  0x81   : > { %p8859_p13 = pmov %p8857_p3 }
  0x82   : > { %8288 = vsyncadd (%p8858_p7), [#allocation7], 4294939648 }
  0x83   : > { %8290 = dma.done.wait (%p8859_p13), [#allocation9], 32768   ;;  %p8860_p0 = pmov %p8857_p3 }
  0x85   : > { %8292 = vsyncadd (%p8860_p0), [#allocation9], 4294934528  ;;  %p8861_p1 = pmov %p8860_p0 }
  0x86   : > { %p8862_p5 = pmov %p8860_p0 }
  0x87   : > { %8294 = dma.done.wait (%p8861_p1), [#allocation12], 15360  }
  0x88   : > { %8296 = vsyncadd (%p8862_p5), [#allocation12], 4294951936  ;;  %v7209_v0 = vld [vmem:[#allocation6 + $0xc4] ss:$8 sps:$4 sm:$0xff]   ;;  %v7211_v1 = vld [vmem:[#allocation6 + $0xc0] ss:$8 sps:$4 sm:$0xff]  }
  0x89   : > { %p314_p4 = scmp.lt.s32.totalorder %s8354_s22, 1  ;;  %547 = vmatprep.subr.bf16.mxu0 %v7209_v0  ;;  %v7212_v2 = vld [vmem:[#allocation6 + $0xd4] ss:$8 sps:$4 sm:$0xff]   ;;  %v7214_v3 = vld [vmem:[#allocation6 + $0xd0] ss:$8 sps:$4 sm:$0xff]   ;;  %vm543_vm1 = vcmask 523264  }
  0x8a   : > { %548 = vmatpush1.bf16.msra.mxu0 %v7211_v1  ;;  %v7215_v4 = vld [vmem:[#allocation6 + $0xe4] ss:$8 sps:$4 sm:$0xff]   ;;  %v7217_v5 = vld [vmem:[#allocation6 + $0xe0] ss:$8 sps:$4 sm:$0xff]   ;;  %v7218_v6 = vld [vmem:[#allocation6 + $0xf4] ss:$8 sps:$4 sm:$0xff]  }
  0x8b   : > { %549 = vmatprep.subr.bf16.mxu0 %v7212_v2  ;;  %s8864_s22 = smov (!%p314_p4, %s8354_s22), 1  ;;  %v7220_v7 = vld [vmem:[#allocation6 + $0xf0] ss:$8 sps:$4 sm:$0xff]   ;;  %v7221_v8 = vld [vmem:[#allocation6 + $0x104] ss:$8 sps:$4 sm:$0xff]   ;;  %vm787_vm2 = vcmask 1046528  }
  0x8c   : > { %s7142_s23 = smul.u32 24, %s8864_s22  ;;  %v7223_v9 = vld [vmem:[#allocation6 + $0x100] ss:$8 sps:$4 sm:$0xff]   ;;  %v7224_v10 = vld [vmem:[#allocation6 + $0x114] ss:$8 sps:$4 sm:$0xff]   ;;  %vm1233_vm4 = vcmask 1045504  }
  0x8d   : > { %v7226_v16 = vld [vmem:[#allocation6 + $0x110] ss:$8 sps:$4 sm:$0xff]   ;;  %v7227_v20 = vld [vmem:[#allocation6 + $0x124] ss:$8 sps:$4 sm:$0xff]   ;;  %vm397_vm0 = vsmask.f32 7424 }
  0x8e   : > { %550 = vmatpush1.bf16.msra.mxu0 %v7214_v3  ;;  %s8525_s16 = scalar_lea.vmem %s8844_s0, %s7142_s23  ;;  %v7229_v23 = vld [vmem:[#allocation6 + $0x120] ss:$8 sps:$4 sm:$0xff]   ;;  %v7230_v25 = vld [vmem:[#allocation6 + $0x134] ss:$8 sps:$4 sm:$0xff]   ;;  %v7232_v27 = vld [vmem:[#allocation6 + $0x130] ss:$8 sps:$4 sm:$0xff]  }
  0x8f   : > { %551 = vmatprep.subr.bf16.mxu0 %v7215_v4  ;;  %v332_v11 = vld [vmem:[%s8525_s16] sm:$0xff]  ;;  %v8529_v12 = vld [vmem:[%s8525_s16 + $0x8] sm:$0xff]  ;;  %v358_v13 = vld [vmem:[%s8525_s16 + $0x10] sm:$0x11]  ;;  %vm996_vm3 = vsmask.f32 6400 }
  0x90   : > { %v6242_v14 = vcombine.high %v332_v11, %v8529_v12  ;;  %v8533_v15 = vcombine.high %v358_v13, %v358_v13  ;;  %v7233_v28 = vld [vmem:[#allocation6 + $0x144] ss:$8 sps:$4 sm:$0xff]   ;;  %v7235_v29 = vld [vmem:[#allocation6 + $0x140] ss:$8 sps:$4 sm:$0xff]   ;;  %v8539_v30 = vcombine.low %v332_v11, %v8529_v12  ;;  %v7236_v31 = vld [vmem:[#allocation6 + $0x154] ss:$8 sps:$4 sm:$0xff]   ;;  %v8541_v33 = vcombine.low %v358_v13, %v358_v13 }
  0x91   : > { %v7238_v32 = vld [vmem:[#allocation6 + $0x150] ss:$8 sps:$4 sm:$0xff]   ;;  %v7239_v35 = vld [vmem:[#allocation6 + $0x164] ss:$8 sps:$4 sm:$0xff]   ;;  %v7241_v36 = vld [vmem:[#allocation6 + $0x160] ss:$8 sps:$4 sm:$0xff]  }
  0x92   : > { %552 = vmatpush1.bf16.msra.mxu0 %v7217_v5  ;;  %v411_v17 = vshrl.u32 %v6242_v14, 16  ;;  %v413_v18 = vshll.u32 %v6242_v14, 16  ;;  %v418_v19 = vshll.u32 %v8533_v15, 16  ;;  %v401_v34 = vshll.u32 %v8539_v30, 16  ;;  %v7242_v40 = vld [vmem:[#allocation6 + $0x174] ss:$8 sps:$4 sm:$0xff]  }
  0x93   : > { %553 = vmatprep.subr.bf16.mxu0 %v7218_v6  ;;  %v399_v37 = vshrl.u32 %v8539_v30, 16  ;;  %v406_v39 = vshll.u32 %v8541_v33, 16  ;;  %v7244_v41 = vld [vmem:[#allocation6 + $0x170] ss:$8 sps:$4 sm:$0xff]   ;;  %v7249_v44 = vld [vmem:[#allocation6 + $0x4] ss:$8 sps:$4 sm:$0xff]  }
  0x94   : > { %v415_v21 = vrot.slane %v413_v18, 1  ;;  %v420_v22 = vrot.slane %v418_v19, 1  ;;  %v403_v38 = vrot.slane %v401_v34, 1  ;;  %v7247_v45 = vld [vmem:[#allocation6] ss:$8 sps:$4 sm:$0xff]   ;;  %vm1679_vm6 = vcmask 1044480  }
  0x95   : > { %v408_v43 = vrot.slane %v406_v39, 1  ;;  %v7254_v47 = vld [vmem:[#allocation6 + $0x14] ss:$8 sps:$4 sm:$0xff]   ;;  %v7252_v48 = vld [vmem:[#allocation6 + $0x10] ss:$8 sps:$4 sm:$0xff]   ;;  %vm4708_vm8 = vcmask 1043456  }
  0x96   : > { %554 = vmatpush1.bf16.msra.mxu0 %v7220_v7  ;;  %v416_v24 = vor.u32 %v415_v21, %v411_v17  ;;  %v404_v42 = vor.u32 %v403_v38, %v399_v37  ;;  %v7257_v49 = vld [vmem:[#allocation6 + $0x24] ss:$8 sps:$4 sm:$0xff]   ;;  %v7255_v50 = vld [vmem:[#allocation6 + $0x20] ss:$8 sps:$4 sm:$0xff]   ;;  %v7260_v51 = vld [vmem:[#allocation6 + $0x34] ss:$8 sps:$4 sm:$0xff]  }
  0x97   : > { %555 = vmatprep.subr.bf16.mxu0 %v7221_v8  ;;  %v7258_v52 = vld [vmem:[#allocation6 + $0x30] ss:$8 sps:$4 sm:$0xff]   ;;  %v7263_v53 = vld [vmem:[#allocation6 + $0x44] ss:$8 sps:$4 sm:$0xff]   ;;  %v7261_v54 = vld [vmem:[#allocation6 + $0x40] ss:$8 sps:$4 sm:$0xff]  }
  0x98   : > { %v421_v26 = vsel %vm397_vm0, %v416_v24, %v420_v22  ;;  %v409_v46 = vsel %vm397_vm0, %v404_v42, %v408_v43  ;;  %v7266_v55 = vld [vmem:[#allocation6 + $0x54] ss:$8 sps:$4 sm:$0xff]   ;;  %v7264_v56 = vld [vmem:[#allocation6 + $0x50] ss:$8 sps:$4 sm:$0xff]   ;;  %v7269_v57 = vld [vmem:[#allocation6 + $0x64] ss:$8 sps:$4 sm:$0xff]  }
  0x99   : > { %6269 = vmatprep.mubr.msk.bf16.mxu0 %vm543_vm1, %v421_v26  ;;  %v7267_v58 = vld [vmem:[#allocation6 + $0x60] ss:$8 sps:$4 sm:$0xff]   ;;  %v7272_v59 = vld [vmem:[#allocation6 + $0x74] ss:$8 sps:$4 sm:$0xff]   ;;  %v7270_v60 = vld [vmem:[#allocation6 + $0x70] ss:$8 sps:$4 sm:$0xff]  }
  0x9a   : > { %556 = vmatpush1.bf16.msra.mxu0 %v7223_v9  ;;  %v7275_v61 = vld [vmem:[#allocation6 + $0x84] ss:$8 sps:$4 sm:$0xff]   ;;  %v7273_v62 = vld [vmem:[#allocation6 + $0x80] ss:$8 sps:$4 sm:$0xff]   ;;  %v7278_v63 = vld [vmem:[#allocation6 + $0x94] ss:$8 sps:$4 sm:$0xff]  }
  0x9b   : > { %557 = vmatprep.subr.bf16.mxu0 %v7224_v10  ;;  %v7276_v0 = vld [vmem:[#allocation6 + $0x90] ss:$8 sps:$4 sm:$0xff]   ;;  %v7281_v1 = vld [vmem:[#allocation6 + $0xa4] ss:$8 sps:$4 sm:$0xff]   ;;  %v7279_v3 = vld [vmem:[#allocation6 + $0xa0] ss:$8 sps:$4 sm:$0xff]  }
  0x9c   : > { %v8549_v2 = vld [vmem:[%s8525_s16] sm:$0xee]  ;;  %v7287_v7 = vld [vmem:[#allocation6 + $0x184] ss:$8 sps:$4 sm:$0xff]   ;;  %v792_v9 = vrot.slane %v8533_v15, 1  ;;  %vm8312_vm9 = vmmov 0  }
  0x9d   : > { %v7284_v4 = vld [vmem:[#allocation6 + $0xb4] ss:$8 sps:$4 sm:$0xff]   ;;  %v8553_v5 = vcombine.high %v8549_v2, %v8529_v12  ;;  %v7282_v6 = vld [vmem:[#allocation6 + $0xb0] ss:$8 sps:$4 sm:$0xff]   ;;  %v7285_v10 = vld [vmem:[#allocation6 + $0x180] ss:$8 sps:$4 sm:$0xff]  }
  0x9e   : > { %558 = vmatpush1.bf16.msra.mxu0 %v7226_v16  ;;  %v7290_v11 = vld [vmem:[#allocation6 + $0x194] ss:$8 sps:$4 sm:$0xff]   ;;  %v7293_v16 = vld [vmem:[#allocation6 + $0x1a4] ss:$8 sps:$4 sm:$0xff]   ;;  %v7291_v17 = vld [vmem:[#allocation6 + $0x1a0] ss:$8 sps:$4 sm:$0xff]  }
  0x9f   : > { %559 = vmatprep.subr.bf16.mxu0 %v7227_v20  ;;  %v791_v8 = vrot.slane %v8553_v5, 1  ;;  %v7296_v18 = vld [vmem:[#allocation6 + $0x1b4] ss:$8 sps:$4 sm:$0xff]   ;;  %v7294_v15 = vld [vmem:[#allocation6 + $0x1b0] ss:$8 sps:$4 sm:$0xff]   ;;  %s6240_s17 = sshll.u32 %s8864_s22, 2 }
  0xa0   : > { %v7299_v19 = vld [vmem:[#allocation6 + $0x1c4] ss:$8 sps:$4 sm:$0xff]   ;;  %v7297_v20 = vld [vmem:[#allocation6 + $0x1c0] ss:$8 sps:$4 sm:$0xff]   ;;  %v7302_v21 = vld [vmem:[#allocation6 + $0x1d4] ss:$8 sps:$4 sm:$0xff]   ;;  %s322_s24 = scalar_lea.vmem %s8850_s6, %s6240_s17 }
  0xa1   : > { %v793_v13 = vsel %vm787_vm2, %v791_v8, %v792_v9  ;;  %v7300_v22 = vld [vmem:[#allocation6 + $0x1d0] ss:$8 sps:$4 sm:$0xff]   ;;  %v7303_v24 = vld [vmem:[#allocation6 + $0x1e0] ss:$8 sps:$4 sm:$0xff]   ;;  %v7317_v34 = vld [vmem:[#allocation6 + $0x224] ss:$8 sps:$4 sm:$0xff]  }
  0xa2   : > { %560 = vmatpush1.bf16.msra.mxu0 %v7229_v23  ;;  %v7305_v23 = vld [vmem:[#allocation6 + $0x1e4] ss:$8 sps:$4 sm:$0xff]   ;;  %v7306_v26 = vld [vmem:[#allocation6 + $0x1f0] ss:$8 sps:$4 sm:$0xff]   ;;  %v7315_v39 = vld [vmem:[#allocation6 + $0x220] ss:$8 sps:$4 sm:$0xff]  }
  0xa3   : > { %561 = vmatprep.subr.bf16.mxu0 %v7230_v25  ;;  %v7308_v25 = vld [vmem:[#allocation6 + $0x1f4] ss:$8 sps:$4 sm:$0xff]   ;;  %v7355_v8 = vld [vmem:[#allocation6 + $0x2e4] ss:$8 sps:$4 sm:$0xff]   ;;  %vm1442_vm5 = vsmask.f32 5376 }
  0xa4   : > { %vm1888_vm7 = vsmask.f32 4352 }
  0xa6   : > { %562 = vmatpush1.bf16.msra.mxu0 %v7232_v27  ;;  %v7311_v27 = vld [vmem:[#allocation6 + $0x204] ss:$8 sps:$4 sm:$0xff]  }
  0xa7   : > { %563 = vmatprep.subr.bf16.mxu0 %v7233_v28  ;;  %v8561_v28 = vld [vmem:[%s8525_s16 + $0x10] sm:$0x33] }
  0xaa   : > { %564 = vmatpush1.bf16.msra.mxu0 %v7235_v29  ;;  %v7309_v29 = vld [vmem:[#allocation6 + $0x200] ss:$8 sps:$4 sm:$0xff]  }
  0xab   : > { %565 = vmatprep.subr.bf16.mxu0 %v7236_v31  ;;  %v8565_v31 = vcombine.high %v8561_v28, %v8561_v28 }
  0xad   : > { %v1023_v37 = vshrl.u32 %v8565_v31, 16  ;;  %v1026_v38 = vshll.u32 %v8565_v31, 16 }
  0xae   : > { %566 = vmatpush1.bf16.msra.mxu0 %v7238_v32  ;;  %v7312_v32 = vld [vmem:[#allocation6 + $0x210] ss:$8 sps:$4 sm:$0xff]  }
  0xaf   : > { %567 = vmatprep.subr.bf16.mxu0 %v7239_v35  ;;  %v1015_v35 = vshrl.u32 %v8553_v5, 16 }
  0xb1   : > { %v1017_v42 = vrot.slane %v1015_v35, 1  ;;  %v7364_v35 = vld [vmem:[#allocation6 + $0x310] ss:$8 sps:$4 sm:$0xff]  }
  0xb2   : > { %568 = vmatpush1.bf16.msra.mxu0 %v7241_v36  ;;  %v1018_v36 = vshll.u32 %v8553_v5, 16  ;;  %v7352_v5 = vld [vmem:[#allocation6 + $0x2d4] ss:$8 sps:$4 sm:$0xff]  }
  0xb3   : > { %569 = vmatprep.subr.bf16.mxu0 %v7242_v40  ;;  %v7320_v40 = vld [vmem:[#allocation6 + $0x234] ss:$8 sps:$4 sm:$0xff]  }
  0xb4   : > { %v1020_v43 = vrot.slane %v1018_v36, 2  ;;  %v7369_v36 = vld [vmem:[#allocation6 + $0x324] ss:$8 sps:$4 sm:$0xff]  }
  0xb6   : > { %570 = vmatpush1.bf16.msra.mxu0 %v7244_v41  ;;  %v8573_v41 = vcombine.low %v8549_v2, %v8529_v12  ;;  %v7344_v2 = vld [vmem:[#allocation6 + $0x2b0] ss:$8 sps:$4 sm:$0xff]  }
  0xb7   : > { %713 = vmatprep.subr.bf16.mxu0 %v7249_v44  ;;  %v1025_v44 = vrot.slane %v1023_v37, 1  ;;  %v7367_v37 = vld [vmem:[#allocation6 + $0x320] ss:$8 sps:$4 sm:$0xff]  }
  0xb8   : > { %v998_v9 = vshrl.u32 %v8573_v41, 16 }
  0xb9   : > { %580 = vmatmul.mubr.bf16.vlgmr.msra.gmra.mrb[0].mxu0 %v409_v46  ;;  %v789_v46 = vrot.slane %v8541_v33, 1  ;;  %v7326_v33 = vld [vmem:[#allocation6 + $0x250] ss:$8 sps:$4 sm:$0xff]  }
  0xba   : > { %714 = vmatpush1.bf16.msra.mxu0 %v7247_v45  ;;  %6294 = vmatprep.mubr.msk.bf16.mxu0 %vm543_vm1, %v6242_v14  ;;  %v7288_v14 = vld [vmem:[#allocation6 + $0x190] ss:$8 sps:$4 sm:$0xff]   ;;  %v1028_v45 = vrot.slane %v1026_v38, 2  ;;  %v7372_v38 = vld [vmem:[#allocation6 + $0x334] ss:$8 sps:$4 sm:$0xff]  }
  0xbb   : > { %715 = vmatprep.subr.bf16.mxu0 %v7254_v47  ;;  %v7318_v47 = vld [vmem:[#allocation6 + $0x230] ss:$8 sps:$4 sm:$0xff]  }
  0xbe   : > { %716 = vmatpush1.bf16.msra.mxu0 %v7252_v48  ;;  %v7324_v48 = vld [vmem:[#allocation6 + $0x244] ss:$8 sps:$4 sm:$0xff]  }
  0xbf   : > { %717 = vmatprep.subr.bf16.mxu0 %v7257_v49  ;;  %v788_v49 = vrot.slane %v8573_v41, 1 }
  0xc1   : > { %v790_v12 = vsel %vm787_vm2, %v788_v49, %v789_v46  ;;  %v7382_v46 = vld [vmem:[#allocation6 + $0x370] ss:$8 sps:$4 sm:$0xff]   ;;  %v7385_v49 = vld [vmem:[#allocation6 + $0x380] ss:$8 sps:$4 sm:$0xff]  }
  0xc2   : > { %718 = vmatpush1.bf16.msra.mxu0 %v7255_v50  ;;  %v1021_v50 = vor.u32 %v1020_v43, %v1017_v42  ;;  %v7376_v42 = vld [vmem:[#allocation6 + $0x350] ss:$8 sps:$4 sm:$0xff]   ;;  %v7381_v43 = vld [vmem:[#allocation6 + $0x364] ss:$8 sps:$4 sm:$0xff]  }
  0xc3   : > { %719 = vmatprep.subr.bf16.mxu0 %v7260_v51  ;;  %v1029_v51 = vor.u32 %v1028_v45, %v1025_v44  ;;  %v7379_v44 = vld [vmem:[#allocation6 + $0x360] ss:$8 sps:$4 sm:$0xff]   ;;  %v7384_v45 = vld [vmem:[#allocation6 + $0x374] ss:$8 sps:$4 sm:$0xff]  }
  0xc6   : > { %720 = vmatpush1.bf16.msra.mxu0 %v7258_v52  ;;  %v7322_v52 = vld [vmem:[#allocation6 + $0x240] ss:$8 sps:$4 sm:$0xff]  }
  0xc7   : > { %721 = vmatprep.subr.bf16.mxu0 %v7263_v53  ;;  %v7328_v53 = vld [vmem:[#allocation6 + $0x254] ss:$8 sps:$4 sm:$0xff]  }
  0xca   : > { %722 = vmatpush1.bf16.msra.mxu0 %v7261_v54  ;;  %v1030_v54 = vsel %vm996_vm3, %v1021_v50, %v1029_v51  ;;  %v7390_v50 = vld [vmem:[#allocation6 + $0x394] ss:$8 sps:$4 sm:$0xff]  }
  0xcb   : > { %723 = vmatprep.subr.bf16.mxu0 %v7266_v55  ;;  %v7331_v55 = vld [vmem:[#allocation6 + $0x264] ss:$8 sps:$4 sm:$0xff]  }
  0xce   : > { %724 = vmatpush1.bf16.msra.mxu0 %v7264_v56  ;;  %v7329_v56 = vld [vmem:[#allocation6 + $0x260] ss:$8 sps:$4 sm:$0xff]  }
  0xcf   : > { %725 = vmatprep.subr.bf16.mxu0 %v7269_v57  ;;  %v7334_v57 = vld [vmem:[#allocation6 + $0x274] ss:$8 sps:$4 sm:$0xff]  }
  0xd2   : > { %726 = vmatpush1.bf16.msra.mxu0 %v7267_v58  ;;  %v7332_v58 = vld [vmem:[#allocation6 + $0x270] ss:$8 sps:$4 sm:$0xff]  }
  0xd3   : > { %727 = vmatprep.subr.bf16.mxu0 %v7272_v59  ;;  %v7337_v59 = vld [vmem:[#allocation6 + $0x284] ss:$8 sps:$4 sm:$0xff]  }
  0xd6   : > { %728 = vmatpush1.bf16.msra.mxu0 %v7270_v60  ;;  %v7335_v60 = vld [vmem:[#allocation6 + $0x280] ss:$8 sps:$4 sm:$0xff]  }
  0xd7   : > { %729 = vmatprep.subr.bf16.mxu0 %v7275_v61  ;;  %v7340_v61 = vld [vmem:[#allocation6 + $0x294] ss:$8 sps:$4 sm:$0xff]  }
  0xda   : > { %730 = vmatpush1.bf16.msra.mxu0 %v7273_v62  ;;  %v7338_v62 = vld [vmem:[#allocation6 + $0x290] ss:$8 sps:$4 sm:$0xff]  }
  0xdb   : > { %731 = vmatprep.subr.bf16.mxu0 %v7278_v63  ;;  %v7343_v63 = vld [vmem:[#allocation6 + $0x2a4] ss:$8 sps:$4 sm:$0xff]  }
  0xde   : > { %732 = vmatpush1.bf16.msra.mxu0 %v7276_v0  ;;  %v7341_v0 = vld [vmem:[#allocation6 + $0x2a0] ss:$8 sps:$4 sm:$0xff]  }
  0xdf   : > { %733 = vmatprep.subr.bf16.mxu0 %v7281_v1  ;;  %v7346_v1 = vld [vmem:[#allocation6 + $0x2b4] ss:$8 sps:$4 sm:$0xff]  }
  0xe2   : > { %734 = vmatpush1.bf16.msra.mxu0 %v7279_v3  ;;  %v7349_v3 = vld [vmem:[#allocation6 + $0x2c4] ss:$8 sps:$4 sm:$0xff]  }
  0xe3   : > { %735 = vmatprep.subr.bf16.mxu0 %v7284_v4  ;;  %v7347_v4 = vld [vmem:[#allocation6 + $0x2c0] ss:$8 sps:$4 sm:$0xff]  }
  0xe6   : > { %736 = vmatpush1.bf16.msra.mxu0 %v7282_v6  ;;  %v8582_v6 = vcombine.low %v8561_v28, %v8561_v28  ;;  %v1238_v28 = vrot.slane %v8565_v31, 2  ;;  %v7370_v31 = vld [vmem:[#allocation6 + $0x330] ss:$8 sps:$4 sm:$0xff]  }
  0xe7   : > { %918 = vmatprep.subr.bf16.mxu0 %v7287_v7  ;;  %v7350_v7 = vld [vmem:[#allocation6 + $0x2d0] ss:$8 sps:$4 sm:$0xff]  }
  0xe9   : > { %746 = vmatmul.mubr.bf16.vlgmr.msra.gmra.mrb[0].mxu0 %v8539_v30  ;;  %v7314_v30 = vld [vmem:[#allocation6 + $0x214] ss:$8 sps:$4 sm:$0xff]  }
  0xea   : > { %919 = vmatpush1.bf16.msra.mxu0 %v7285_v10  ;;  %6321 = vmatprep.mubr.msk.bf16.mxu0 %vm543_vm1, %v793_v13  ;;  %v1001_v10 = vshll.u32 %v8573_v41, 16  ;;  %v1009_v13 = vshll.u32 %v8582_v6, 16  ;;  %v7378_v41 = vld [vmem:[#allocation6 + $0x354] ss:$8 sps:$4 sm:$0xff]  }
  0xeb   : > { %920 = vmatprep.subr.bf16.mxu0 %v7290_v11  ;;  %v1006_v11 = vshrl.u32 %v8582_v6, 16 }
  0xee   : > { %921 = vmatpush1.bf16.msra.mxu0 %v7288_v14  ;;  %v8589_v14 = vld [vmem:[%s8525_s16] sm:$0xcc] }
  0xef   : > { %922 = vmatprep.subr.bf16.mxu0 %v7293_v16  ;;  %v7353_v16 = vld [vmem:[#allocation6 + $0x2e0] ss:$8 sps:$4 sm:$0xff]  }
  0xf2   : > { %923 = vmatpush1.bf16.msra.mxu0 %v7291_v17  ;;  %v1000_v17 = vrot.slane %v998_v9, 1 }
  0xf3   : > { %924 = vmatprep.subr.bf16.mxu0 %v7296_v18  ;;  %v7358_v18 = vld [vmem:[#allocation6 + $0x2f4] ss:$8 sps:$4 sm:$0xff]  }
  0xf6   : > { %925 = vmatpush1.bf16.msra.mxu0 %v7294_v15  ;;  %v1003_v15 = vrot.slane %v1001_v10, 2  ;;  %v7402_v10 = vld [vmem:[#allocation6 + $0x3d0] ss:$8 sps:$4 sm:$0xff]  }
  0xf7   : > { %926 = vmatprep.subr.bf16.mxu0 %v7299_v19  ;;  %v1008_v19 = vrot.slane %v1006_v11, 1  ;;  %v7407_v11 = vld [vmem:[#allocation6 + $0x3e4] ss:$8 sps:$4 sm:$0xff]  }
  0xfa   : > { %927 = vmatpush1.bf16.msra.mxu0 %v7297_v20  ;;  %v1011_v20 = vrot.slane %v1009_v13, 2  ;;  %v7410_v13 = vld [vmem:[#allocation6 + $0x3f4] ss:$8 sps:$4 sm:$0xff]  }
  0xfb   : > { %928 = vmatprep.subr.bf16.mxu0 %v7302_v21  ;;  %v8592_v21 = vld [vmem:[%s8525_s16 + $0x8] sm:$0xff] }
  0xfe   : > { %929 = vmatpush1.bf16.msra.mxu0 %v7300_v22  ;;  %v8596_v22 = vcombine.high %v8589_v14, %v8592_v21 }
  0xff   : > { %930 = vmatprep.subr.bf16.mxu0 %v7305_v23  ;;  %v7356_v23 = vld [vmem:[#allocation6 + $0x2f0] ss:$8 sps:$4 sm:$0xff]  }
 0x102   : > { %931 = vmatpush1.bf16.msra.mxu0 %v7303_v24  ;;  %v7362_v24 = vld [vmem:[#allocation6 + $0x304] ss:$8 sps:$4 sm:$0xff]  }
 0x103   : > { %932 = vmatprep.subr.bf16.mxu0 %v7308_v25  ;;  %v1004_v25 = vor.u32 %v1003_v15, %v1000_v17  ;;  %v7411_v17 = vld [vmem:[#allocation6 + $0x400] ss:$8 sps:$4 sm:$0xff]   ;;  %v7414_v15 = vld [vmem:[#allocation6 + $0x410] ss:$8 sps:$4 sm:$0xff]  }
 0x106   : > { %933 = vmatpush1.bf16.msra.mxu0 %v7306_v26  ;;  %v1012_v26 = vor.u32 %v1011_v20, %v1008_v19  ;;  %v7419_v19 = vld [vmem:[#allocation6 + $0x424] ss:$8 sps:$4 sm:$0xff]   ;;  %v7417_v20 = vld [vmem:[#allocation6 + $0x420] ss:$8 sps:$4 sm:$0xff]  }
 0x107   : > { %934 = vmatprep.subr.bf16.mxu0 %v7311_v27  ;;  %v1237_v27 = vrot.slane %v8596_v22, 2 }
 0x10a   : > { %935 = vmatpush1.bf16.msra.mxu0 %v7309_v29  ;;  %v7360_v29 = vld [vmem:[#allocation6 + $0x300] ss:$8 sps:$4 sm:$0xff]  }
 0x10b   : > { %936 = vmatprep.subr.bf16.mxu0 %v7314_v30  ;;  %v1013_v30 = vsel %vm996_vm3, %v1004_v25, %v1012_v26  ;;  %v7423_v26 = vld [vmem:[#allocation6 + $0x440] ss:$8 sps:$4 sm:$0xff]  }
 0x10e   : > { %937 = vmatpush1.bf16.msra.mxu0 %v7312_v32  ;;  %v7366_v32 = vld [vmem:[#allocation6 + $0x314] ss:$8 sps:$4 sm:$0xff]  }
 0x10f   : > { %938 = vmatprep.subr.bf16.mxu0 %v7317_v34  ;;  %v1239_v34 = vsel %vm1233_vm4, %v1237_v27, %v1238_v28  ;;  %v7428_v27 = vld [vmem:[#allocation6 + $0x454] ss:$8 sps:$4 sm:$0xff]  }
 0x112   : > { %939 = vmatpush1.bf16.msra.mxu0 %v7315_v39  ;;  %v7375_v39 = vld [vmem:[#allocation6 + $0x344] ss:$8 sps:$4 sm:$0xff]  }
 0x113   : > { %940 = vmatprep.subr.bf16.mxu0 %v7320_v40  ;;  %v7373_v40 = vld [vmem:[#allocation6 + $0x340] ss:$8 sps:$4 sm:$0xff]  }
 0x116   : > { %941 = vmatpush1.bf16.msra.mxu0 %v7318_v47  ;;  %v7387_v47 = vld [vmem:[#allocation6 + $0x384] ss:$8 sps:$4 sm:$0xff]  }
 0x117   : > { %1155 = vmatprep.subr.bf16.mxu0 %v7324_v48  ;;  %v8604_v48 = vld [vmem:[%s8525_s16 + $0x10] sm:$0x77] }
 0x118   : > { %v8608_v51 = vcombine.high %v8604_v48, %v8604_v48  ;;  %v8625_v25 = vcombine.low %v8604_v48, %v8604_v48 }
 0x119   : > { %951 = vmatmul.mubr.bf16.vlgmr.msra.gmra.mrb[0].mxu0 %v790_v12  ;;  %v7393_v12 = vld [vmem:[#allocation6 + $0x3a4] ss:$8 sps:$4 sm:$0xff]  }
 0x11a   : > { %1156 = vmatpush1.bf16.msra.mxu0 %v7322_v52  ;;  %6348 = vmatprep.mubr.msk.bf16.mxu0 %vm543_vm1, %v1030_v54  ;;  %v7388_v52 = vld [vmem:[#allocation6 + $0x390] ss:$8 sps:$4 sm:$0xff]   ;;  %v1464_v54 = vshll.u32 %v8596_v22, 16  ;;  %v1684_v48 = vrot.slane %v8608_v51, 3 }
 0x11b   : > { %1157 = vmatprep.subr.bf16.mxu0 %v7328_v53  ;;  %v1461_v53 = vshrl.u32 %v8596_v22, 16  ;;  %v7422_v22 = vld [vmem:[#allocation6 + $0x434] ss:$8 sps:$4 sm:$0xff]  }
 0x11e   : > { %1158 = vmatpush1.bf16.msra.mxu0 %v7326_v33  ;;  %v1469_v33 = vshrl.u32 %v8608_v51, 16 }
 0x11f   : > { %1159 = vmatprep.subr.bf16.mxu0 %v7331_v55  ;;  %v1472_v55 = vshll.u32 %v8608_v51, 16  ;;  %v7448_v51 = vld [vmem:[#allocation6 + $0x4b4] ss:$8 sps:$4 sm:$0xff]  }
 0x122   : > { %1160 = vmatpush1.bf16.msra.mxu0 %v7329_v56  ;;  %v7391_v56 = vld [vmem:[#allocation6 + $0x3a0] ss:$8 sps:$4 sm:$0xff]  }
 0x123   : > { %1161 = vmatprep.subr.bf16.mxu0 %v7334_v57  ;;  %v7396_v57 = vld [vmem:[#allocation6 + $0x3b4] ss:$8 sps:$4 sm:$0xff]  }
 0x126   : > { %1162 = vmatpush1.bf16.msra.mxu0 %v7332_v58  ;;  %v8616_v58 = vcombine.low %v8589_v14, %v8592_v21  ;;  %v7408_v14 = vld [vmem:[#allocation6 + $0x3f0] ss:$8 sps:$4 sm:$0xff]  }
 0x127   : > { %1163 = vmatprep.subr.bf16.mxu0 %v7337_v59  ;;  %v1463_v59 = vrot.slane %v1461_v53, 2  ;;  %v7440_v53 = vld [vmem:[#allocation6 + $0x490] ss:$8 sps:$4 sm:$0xff]  }
 0x128   : > { %v1444_v28 = vshrl.u32 %v8616_v58, 16 }
 0x12a   : > { %1164 = vmatpush1.bf16.msra.mxu0 %v7335_v60  ;;  %v1466_v60 = vrot.slane %v1464_v54, 3  ;;  %v7445_v54 = vld [vmem:[#allocation6 + $0x4a4] ss:$8 sps:$4 sm:$0xff]  }
 0x12b   : > { %1165 = vmatprep.subr.bf16.mxu0 %v7340_v61  ;;  %v1471_v61 = vrot.slane %v1469_v33, 2  ;;  %v7443_v33 = vld [vmem:[#allocation6 + $0x4a0] ss:$8 sps:$4 sm:$0xff]  }
 0x12e   : > { %1166 = vmatpush1.bf16.msra.mxu0 %v7338_v62  ;;  %v1474_v62 = vrot.slane %v1472_v55, 3  ;;  %v7446_v55 = vld [vmem:[#allocation6 + $0x4b0] ss:$8 sps:$4 sm:$0xff]  }
 0x12f   : > { %1167 = vmatprep.subr.bf16.mxu0 %v7343_v63  ;;  %v7394_v63 = vld [vmem:[#allocation6 + $0x3b0] ss:$8 sps:$4 sm:$0xff]  }
 0x132   : > { %1168 = vmatpush1.bf16.msra.mxu0 %v7341_v0  ;;  %v7400_v0 = vld [vmem:[#allocation6 + $0x3c4] ss:$8 sps:$4 sm:$0xff]  }
 0x133   : > { %1169 = vmatprep.subr.bf16.mxu0 %v7346_v1  ;;  %v1234_v1 = vrot.slane %v8616_v58, 2 }
 0x136   : > { %1170 = vmatpush1.bf16.msra.mxu0 %v7344_v2  ;;  %v1235_v2 = vrot.slane %v8582_v6, 2  ;;  %v7405_v6 = vld [vmem:[#allocation6 + $0x3e0] ss:$8 sps:$4 sm:$0xff]  }
 0x137   : > { %1171 = vmatprep.subr.bf16.mxu0 %v7349_v3  ;;  %v1467_v3 = vor.u32 %v1466_v60, %v1463_v59  ;;  %v7452_v59 = vld [vmem:[#allocation6 + $0x4d0] ss:$8 sps:$4 sm:$0xff]   ;;  %v7457_v60 = vld [vmem:[#allocation6 + $0x4e4] ss:$8 sps:$4 sm:$0xff]  }
 0x13a   : > { %1172 = vmatpush1.bf16.msra.mxu0 %v7347_v4  ;;  %v1475_v4 = vor.u32 %v1474_v62, %v1471_v61  ;;  %v7455_v61 = vld [vmem:[#allocation6 + $0x4e0] ss:$8 sps:$4 sm:$0xff]   ;;  %v7460_v62 = vld [vmem:[#allocation6 + $0x4f4] ss:$8 sps:$4 sm:$0xff]  }
 0x13b   : > { %1173 = vmatprep.subr.bf16.mxu0 %v7352_v5  ;;  %v7398_v5 = vld [vmem:[#allocation6 + $0x3c0] ss:$8 sps:$4 sm:$0xff]  }
 0x13c   : > { %v1476_v9 = vsel %vm1442_vm5, %v1467_v3, %v1475_v4  ;;  %v7466_v3 = vld [vmem:[#allocation6 + $0x514] ss:$8 sps:$4 sm:$0xff]  }
 0x13e   : > { %1174 = vmatpush1.bf16.msra.mxu0 %v7350_v7  ;;  %v1236_v7 = vsel %vm1233_vm4, %v1234_v1, %v1235_v2  ;;  %v8644_v1 = vld [vmem:[%s8525_s16 + $0x10] sm:$0xff] }
 0x13f   : > { %1175 = vmatprep.subr.bf16.mxu0 %v7355_v8  ;;  %v7404_v8 = vld [vmem:[#allocation6 + $0x3d4] ss:$8 sps:$4 sm:$0xff]   ;;  %v7461_v2 = vld [vmem:[#allocation6 + $0x500] ss:$8 sps:$4 sm:$0xff]   ;;  %v6431_v4 = vcombine.high %v8644_v1, %v8644_v1 }
 0x142   : > { %1176 = vmatpush1.bf16.msra.mxu0 %v7353_v16  ;;  %v7413_v16 = vld [vmem:[#allocation6 + $0x404] ss:$8 sps:$4 sm:$0xff]  }
 0x143   : > { %1177 = vmatprep.subr.bf16.mxu0 %v7358_v18  ;;  %v7416_v18 = vld [vmem:[#allocation6 + $0x414] ss:$8 sps:$4 sm:$0xff]  }
 0x146   : > { %1178 = vmatpush1.bf16.msra.mxu0 %v7356_v23  ;;  %v7420_v23 = vld [vmem:[#allocation6 + $0x430] ss:$8 sps:$4 sm:$0xff]  }
 0x147   : > { %1364 = vmatprep.subr.bf16.mxu0 %v7362_v24  ;;  %v7425_v24 = vld [vmem:[#allocation6 + $0x444] ss:$8 sps:$4 sm:$0xff]  }
 0x149   : > { %1188 = vmatmul.mubr.bf16.vlgmr.msra.gmra.mrb[0].mxu0 %v1013_v30  ;;  %v1452_v30 = vshrl.u32 %v8625_v25, 16 }
 0x14a   : > { %1365 = vmatpush1.bf16.msra.mxu0 %v7360_v29  ;;  %6375 = vmatprep.mubr.msk.bf16.mxu0 %vm543_vm1, %v1239_v34  ;;  %v1447_v29 = vshll.u32 %v8616_v58, 16  ;;  %v7426_v34 = vld [vmem:[#allocation6 + $0x450] ss:$8 sps:$4 sm:$0xff]   ;;  %v7454_v58 = vld [vmem:[#allocation6 + $0x4d4] ss:$8 sps:$4 sm:$0xff]  }
 0x14b   : > { %1366 = vmatprep.subr.bf16.mxu0 %v7366_v32  ;;  %v1455_v32 = vshll.u32 %v8625_v25, 16 }
 0x14e   : > { %1367 = vmatpush1.bf16.msra.mxu0 %v7364_v35  ;;  %v7431_v35 = vld [vmem:[#allocation6 + $0x464] ss:$8 sps:$4 sm:$0xff]  }
 0x14f   : > { %1368 = vmatprep.subr.bf16.mxu0 %v7369_v36  ;;  %v1446_v36 = vrot.slane %v1444_v28, 2  ;;  %v7480_v28 = vld [vmem:[#allocation6 + $0x554] ss:$8 sps:$4 sm:$0xff]  }
 0x152   : > { %1369 = vmatpush1.bf16.msra.mxu0 %v7367_v37  ;;  %v1449_v37 = vrot.slane %v1447_v29, 3 }
 0x153   : > { %1370 = vmatprep.subr.bf16.mxu0 %v7372_v38  ;;  %v8632_v38 = vld [vmem:[%s8525_s16] sm:$0x88] }
 0x156   : > { %1371 = vmatpush1.bf16.msra.mxu0 %v7370_v31  ;;  %v7429_v31 = vld [vmem:[#allocation6 + $0x460] ss:$8 sps:$4 sm:$0xff]  }
 0x157   : > { %1372 = vmatprep.subr.bf16.mxu0 %v7375_v39  ;;  %v7434_v39 = vld [vmem:[#allocation6 + $0x474] ss:$8 sps:$4 sm:$0xff]  }
 0x15a   : > { %1373 = vmatpush1.bf16.msra.mxu0 %v7373_v40  ;;  %v1454_v40 = vrot.slane %v1452_v30, 2  ;;  %v7478_v30 = vld [vmem:[#allocation6 + $0x550] ss:$8 sps:$4 sm:$0xff]  }
 0x15b   : > { %1374 = vmatprep.subr.bf16.mxu0 %v7378_v41  ;;  %v1457_v41 = vrot.slane %v1455_v32, 3  ;;  %v7481_v32 = vld [vmem:[#allocation6 + $0x560] ss:$8 sps:$4 sm:$0xff]  }
 0x15e   : > { %1375 = vmatpush1.bf16.msra.mxu0 %v7376_v42  ;;  %v8636_v42 = vcombine.high %v8632_v38, %v8592_v21 }
 0x15f   : > { %1376 = vmatprep.subr.bf16.mxu0 %v7381_v43  ;;  %v7432_v43 = vld [vmem:[#allocation6 + $0x470] ss:$8 sps:$4 sm:$0xff]  }
 0x162   : > { %1377 = vmatpush1.bf16.msra.mxu0 %v7379_v44  ;;  %v7438_v44 = vld [vmem:[#allocation6 + $0x484] ss:$8 sps:$4 sm:$0xff]  }
 0x163   : > { %1378 = vmatprep.subr.bf16.mxu0 %v7384_v45  ;;  %v1450_v45 = vor.u32 %v1449_v37, %v1446_v36  ;;  %v7489_v36 = vld [vmem:[#allocation6 + $0x584] ss:$8 sps:$4 sm:$0xff]   ;;  %v7487_v37 = vld [vmem:[#allocation6 + $0x580] ss:$8 sps:$4 sm:$0xff]  }
 0x166   : > { %1379 = vmatpush1.bf16.msra.mxu0 %v7382_v46  ;;  %v1458_v46 = vor.u32 %v1457_v41, %v1454_v40  ;;  %v7493_v40 = vld [vmem:[#allocation6 + $0x5a0] ss:$8 sps:$4 sm:$0xff]   ;;  %v7498_v41 = vld [vmem:[#allocation6 + $0x5b4] ss:$8 sps:$4 sm:$0xff]  }
 0x167   : > { %1380 = vmatprep.subr.bf16.mxu0 %v7387_v47  ;;  %v1683_v47 = vrot.slane %v8636_v42, 3 }
 0x16a   : > { %1381 = vmatpush1.bf16.msra.mxu0 %v7385_v49  ;;  %v7436_v49 = vld [vmem:[#allocation6 + $0x480] ss:$8 sps:$4 sm:$0xff]  }
 0x16b   : > { %1382 = vmatprep.subr.bf16.mxu0 %v7390_v50  ;;  %v1459_v50 = vsel %vm1442_vm5, %v1450_v45, %v1458_v46  ;;  %v6430_v45 = vcombine.low %v8644_v1, %v8644_v1  ;;  %v7504_v46 = vld [vmem:[#allocation6 + $0x5d4] ss:$8 sps:$4 sm:$0xff]  }
 0x16e   : > { %1383 = vmatpush1.bf16.msra.mxu0 %v7388_v52  ;;  %v7442_v52 = vld [vmem:[#allocation6 + $0x494] ss:$8 sps:$4 sm:$0xff]  }
 0x16f   : > { %1384 = vmatprep.subr.bf16.mxu0 %v7393_v12  ;;  %v1685_v12 = vsel %vm1679_vm6, %v1683_v47, %v1684_v48  ;;  %v7502_v47 = vld [vmem:[#allocation6 + $0x5d0] ss:$8 sps:$4 sm:$0xff]  }
 0x172   : > { %1385 = vmatpush1.bf16.msra.mxu0 %v7391_v56  ;;  %v7451_v56 = vld [vmem:[#allocation6 + $0x4c4] ss:$8 sps:$4 sm:$0xff]  }
 0x173   : > { %1386 = vmatprep.subr.bf16.mxu0 %v7396_v57  ;;  %v7449_v57 = vld [vmem:[#allocation6 + $0x4c0] ss:$8 sps:$4 sm:$0xff]  }
 0x176   : > { %1387 = vmatpush1.bf16.msra.mxu0 %v7394_v63  ;;  %v7458_v63 = vld [vmem:[#allocation6 + $0x4f0] ss:$8 sps:$4 sm:$0xff]  }
 0x177   : > { %1601 = vmatprep.subr.bf16.mxu0 %v7400_v0  ;;  %v7463_v0 = vld [vmem:[#allocation6 + $0x504] ss:$8 sps:$4 sm:$0xff]  }
 0x179   : > { %1397 = vmatmul.mubr.bf16.vlgmr.msra.gmra.mrb[0].mxu0 %v1236_v7  ;;  %v7469_v7 = vld [vmem:[#allocation6 + $0x524] ss:$8 sps:$4 sm:$0xff]  }
 0x17a   : > { %1602 = vmatpush1.bf16.msra.mxu0 %v7398_v5  ;;  %6402 = vmatprep.mubr.msk.bf16.mxu0 %vm543_vm1, %v1476_v9  ;;  %v7464_v5 = vld [vmem:[#allocation6 + $0x510] ss:$8 sps:$4 sm:$0xff]   ;;  %v1910_v9 = vshll.u32 %v8636_v42, 16 }
 0x17b   : > { %1603 = vmatprep.subr.bf16.mxu0 %v7404_v8  ;;  %v1907_v8 = vshrl.u32 %v8636_v42, 16  ;;  %v7496_v42 = vld [vmem:[#allocation6 + $0x5b0] ss:$8 sps:$4 sm:$0xff]  }
 0x17e   : > { %1604 = vmatpush1.bf16.msra.mxu0 %v7402_v10  ;;  %v1915_v10 = vshrl.u32 %v6431_v4, 16 }
 0x17f   : > { %1605 = vmatprep.subr.bf16.mxu0 %v7407_v11  ;;  %v1918_v11 = vshll.u32 %v6431_v4, 16  ;;  %v7521_v4 = vld [vmem:[#allocation6 + $0x624] ss:$8 sps:$4 sm:$0xff]  }
 0x182   : > { %1606 = vmatpush1.bf16.msra.mxu0 %v7405_v6  ;;  %v7467_v6 = vld [vmem:[#allocation6 + $0x520] ss:$8 sps:$4 sm:$0xff]  }
 0x183   : > { %1607 = vmatprep.subr.bf16.mxu0 %v7410_v13  ;;  %v8652_v13 = vcombine.low %v8632_v38, %v8592_v21  ;;  %v7474_v21 = vld [vmem:[#allocation6 + $0x540] ss:$8 sps:$4 sm:$0xff]   ;;  %v7492_v38 = vld [vmem:[#allocation6 + $0x594] ss:$8 sps:$4 sm:$0xff]  }
 0x185   : > { %v1890_v48 = vshrl.u32 %v8652_v13, 16 }
 0x186   : > { %1608 = vmatpush1.bf16.msra.mxu0 %v7408_v14  ;;  %v7472_v14 = vld [vmem:[#allocation6 + $0x534] ss:$8 sps:$4 sm:$0xff]  }
 0x187   : > { %1609 = vmatprep.subr.bf16.mxu0 %v7413_v16  ;;  %v1909_v16 = vrot.slane %v1907_v8, 3  ;;  %v7522_v8 = vld [vmem:[#allocation6 + $0x630] ss:$8 sps:$4 sm:$0xff]  }
 0x18a   : > { %1610 = vmatpush1.bf16.msra.mxu0 %v7411_v17  ;;  %v1912_v17 = vrot.slane %v1910_v9, 4  ;;  %v7527_v9 = vld [vmem:[#allocation6 + $0x644] ss:$8 sps:$4 sm:$0xff]  }
 0x18b   : > { %1611 = vmatprep.subr.bf16.mxu0 %v7416_v18  ;;  %v1917_v18 = vrot.slane %v1915_v10, 3  ;;  %v7525_v10 = vld [vmem:[#allocation6 + $0x640] ss:$8 sps:$4 sm:$0xff]  }
 0x18e   : > { %1612 = vmatpush1.bf16.msra.mxu0 %v7414_v15  ;;  %v1920_v15 = vrot.slane %v1918_v11, 4  ;;  %v7530_v11 = vld [vmem:[#allocation6 + $0x654] ss:$8 sps:$4 sm:$0xff]  }
 0x18f   : > { %1613 = vmatprep.subr.bf16.mxu0 %v7419_v19  ;;  %v7470_v19 = vld [vmem:[#allocation6 + $0x530] ss:$8 sps:$4 sm:$0xff]  }
 0x192   : > { %1614 = vmatpush1.bf16.msra.mxu0 %v7417_v20  ;;  %v1680_v20 = vrot.slane %v8652_v13, 3 }
 0x193   : > { %1615 = vmatprep.subr.bf16.mxu0 %v7422_v22  ;;  %v1681_v22 = vrot.slane %v8625_v25, 3  ;;  %v7483_v25 = vld [vmem:[#allocation6 + $0x564] ss:$8 sps:$4 sm:$0xff]  }
 0x196   : > { %1616 = vmatpush1.bf16.msra.mxu0 %v7420_v23  ;;  %v7476_v23 = vld [vmem:[#allocation6 + $0x544] ss:$8 sps:$4 sm:$0xff]  }
 0x197   : > { %1617 = vmatprep.subr.bf16.mxu0 %v7425_v24  ;;  %v1913_v24 = vor.u32 %v1912_v17, %v1909_v16  ;;  %v7536_v16 = vld [vmem:[#allocation6 + $0x674] ss:$8 sps:$4 sm:$0xff]   ;;  %v7534_v17 = vld [vmem:[#allocation6 + $0x670] ss:$8 sps:$4 sm:$0xff]  }
 0x19a   : > { %1618 = vmatpush1.bf16.msra.mxu0 %v7423_v26  ;;  %v1921_v26 = vor.u32 %v1920_v15, %v1917_v18  ;;  %v7539_v18 = vld [vmem:[#allocation6 + $0x684] ss:$8 sps:$4 sm:$0xff]   ;;  %v7537_v15 = vld [vmem:[#allocation6 + $0x680] ss:$8 sps:$4 sm:$0xff]  }
 0x19b   : > { %1619 = vmatprep.subr.bf16.mxu0 %v7428_v27  ;;  %v1682_v27 = vsel %vm1679_vm6, %v1680_v20, %v1681_v22  ;;  %v7540_v20 = vld [vmem:[#allocation6 + $0x690] ss:$8 sps:$4 sm:$0xff]   ;;  %v7545_v22 = vld [vmem:[#allocation6 + $0x6a4] ss:$8 sps:$4 sm:$0xff]  }
 0x19c   : > { %v1922_v29 = vsel %vm1888_vm7, %v1913_v24, %v1921_v26  ;;  %v7548_v24 = vld [vmem:[#allocation6 + $0x6b4] ss:$8 sps:$4 sm:$0xff]   ;;  %v7546_v26 = vld [vmem:[#allocation6 + $0x6b0] ss:$8 sps:$4 sm:$0xff]  }
 0x19e   : > { %1620 = vmatpush1.bf16.msra.mxu0 %v7426_v34  ;;  %v7486_v34 = vld [vmem:[#allocation6 + $0x574] ss:$8 sps:$4 sm:$0xff]  }
 0x19f   : > { %1621 = vmatprep.subr.bf16.mxu0 %v7431_v35  ;;  %v7484_v35 = vld [vmem:[#allocation6 + $0x570] ss:$8 sps:$4 sm:$0xff]  }
 0x1a2   : > { %1622 = vmatpush1.bf16.msra.mxu0 %v7429_v31  ;;  %v7490_v31 = vld [vmem:[#allocation6 + $0x590] ss:$8 sps:$4 sm:$0xff]  }
 0x1a3   : > { %1623 = vmatprep.subr.bf16.mxu0 %v7434_v39  ;;  %v7495_v39 = vld [vmem:[#allocation6 + $0x5a4] ss:$8 sps:$4 sm:$0xff]  }
 0x1a6   : > { %1624 = vmatpush1.bf16.msra.mxu0 %v7432_v43  ;;  %v7501_v43 = vld [vmem:[#allocation6 + $0x5c4] ss:$8 sps:$4 sm:$0xff]  }
 0x1a7   : > { %1810 = vmatprep.subr.bf16.mxu0 %v7438_v44  ;;  %v7499_v44 = vld [vmem:[#allocation6 + $0x5c0] ss:$8 sps:$4 sm:$0xff]  }
 0x1a9   : > { %1634 = vmatmul.mubr.bf16.vlgmr.msra.gmra.mrb[0].mxu0 %v1459_v50  ;;  %v1898_v50 = vshrl.u32 %v6430_v45, 16 }
 0x1aa   : > { %1811 = vmatpush1.bf16.msra.mxu0 %v7436_v49  ;;  %6429 = vmatprep.mubr.msk.bf16.mxu0 %vm543_vm1, %v1685_v12  ;;  %v1893_v49 = vshll.u32 %v8652_v13, 16  ;;  %v7507_v12 = vld [vmem:[#allocation6 + $0x5e4] ss:$8 sps:$4 sm:$0xff]  }
 0x1ab   : > { %1812 = vmatprep.subr.bf16.mxu0 %v7442_v52  ;;  %v1901_v52 = vshll.u32 %v6430_v45, 16  ;;  %v7533_v13 = vld [vmem:[#allocation6 + $0x664] ss:$8 sps:$4 sm:$0xff]   ;;  %v7577_v45 = vld [vmem:[#allocation8 + $0xc0] ss:$8 sps:$4 sm:$0xff]  }
 0x1ae   : > { %1813 = vmatpush1.bf16.msra.mxu0 %v7440_v53  ;;  %v7505_v53 = vld [vmem:[#allocation6 + $0x5e0] ss:$8 sps:$4 sm:$0xff]  }
 0x1af   : > { %1814 = vmatprep.subr.bf16.mxu0 %v7445_v54  ;;  %v1892_v54 = vrot.slane %v1890_v48, 3  ;;  %v7586_v48 = vld [vmem:[#allocation8 + $0x50] ss:$8 sps:$4 sm:$0xff]  }
 0x1b2   : > { %1815 = vmatpush1.bf16.msra.mxu0 %v7443_v33  ;;  %v1895_v33 = vrot.slane %v1893_v49, 4  ;;  %v7583_v49 = vld [vmem:[#allocation8 + $0xd0] ss:$8 sps:$4 sm:$0xff]  }
 0x1b3   : > { %1816 = vmatprep.subr.bf16.mxu0 %v7448_v51  ;;  %v1900_v51 = vrot.slane %v1898_v50, 3  ;;  %v7587_v50 = vld [vmem:[#allocation8 + $0x64] ss:$8 sps:$4 sm:$0xff]  }
 0x1b6   : > { %1817 = vmatpush1.bf16.msra.mxu0 %v7446_v55  ;;  %v1903_v55 = vrot.slane %v1901_v52, 4  ;;  %v7589_v52 = vld [vmem:[#allocation8 + $0xe0] ss:$8 sps:$4 sm:$0xff]  }
 0x1b7   : > { %1818 = vmatprep.subr.bf16.mxu0 %v7451_v56  ;;  %v7510_v56 = vld [vmem:[#allocation6 + $0x5f4] ss:$8 sps:$4 sm:$0xff]  }
 0x1ba   : > { %1819 = vmatpush1.bf16.msra.mxu0 %v7449_v57  ;;  %v7508_v57 = vld [vmem:[#allocation6 + $0x5f0] ss:$8 sps:$4 sm:$0xff]  }
 0x1bb   : > { %1820 = vmatprep.subr.bf16.mxu0 %v7454_v58  ;;  %v1896_v58 = vor.u32 %v1895_v33, %v1892_v54  ;;  %v8310_v54 = vmov 0.0   ;;  %v7593_v33 = vld [vmem:[#allocation8 + $0x74] ss:$8 sps:$4 sm:$0xff]  }
 0x1bc   : > { %324 = vst [vmem:[#allocation2] sm:$0x7] %v8310_v54  ;;  %325 = vst [vmem:[#allocation2 + $0x13] sm:$0x7] %v8310_v54 }
 0x1bd   : > { %326 = vst [vmem:[#allocation3] sm:$0x7] %v8310_v54  ;;  %327 = vst [vmem:[#allocation3 + $0xb] sm:$0x7] %v8310_v54 }
 0x1be   : > { %1821 = vmatpush1.bf16.msra.mxu0 %v7452_v59  ;;  %v1904_v59 = vor.u32 %v1903_v55, %v1900_v51  ;;  %v7597_v51 = vld [vmem:[#allocation8 + $0xf4] ss:$8 sps:$4 sm:$0xff]   ;;  %v7598_v55 = vld [vmem:[#allocation8 + $0x70] ss:$8 sps:$4 sm:$0xff]  }
 0x1bf   : > { %1822 = vmatprep.subr.bf16.mxu0 %v7457_v60  ;;  %v7514_v60 = vld [vmem:[#allocation6 + $0x604] ss:$8 sps:$4 sm:$0xff]  }
 0x1c2   : > { %1823 = vmatpush1.bf16.msra.mxu0 %v7455_v61  ;;  %v7512_v61 = vld [vmem:[#allocation6 + $0x600] ss:$8 sps:$4 sm:$0xff]  }
 0x1c3   : > { %1824 = vmatprep.subr.bf16.mxu0 %v7460_v62  ;;  %v1905_v62 = vsel %vm1888_vm7, %v1896_v58, %v1904_v59  ;;  %v7601_v58 = vld [vmem:[#allocation8 + $0x104] ss:$8 sps:$4 sm:$0xff]  }
 0x1c6   : > { %1825 = vmatpush1.bf16.msra.mxu0 %v7458_v63  ;;  %v8140_v63 = vld [vmem:[%s8525_s16 + $0x8] sm:$0xff] }
 0x1c7   : > { %1826 = vmatprep.subr.bf16.mxu0 %v7463_v0  ;;  %v6458_v0 = vcombine.high %v8140_v63, %v8644_v1 }
 0x1ca   : > { %1827 = vmatpush1.bf16.msra.mxu0 %v7461_v2  ;;  %v7518_v2 = vld [vmem:[#allocation6 + $0x614] ss:$8 sps:$4 sm:$0xff]  }
 0x1cb   : > { %1828 = vmatprep.subr.bf16.mxu0 %v7466_v3  ;;  %v7516_v3 = vld [vmem:[#allocation6 + $0x610] ss:$8 sps:$4 sm:$0xff]  }
 0x1ce   : > { %1829 = vmatpush1.bf16.msra.mxu0 %v7464_v5  ;;  %v7519_v5 = vld [vmem:[#allocation6 + $0x620] ss:$8 sps:$4 sm:$0xff]  }
 0x1cf   : > { %1830 = vmatprep.subr.bf16.mxu0 %v7469_v7  ;;  %v7524_v7 = vld [vmem:[#allocation6 + $0x634] ss:$8 sps:$4 sm:$0xff]  }
 0x1d2   : > { %1831 = vmatpush1.bf16.msra.mxu0 %v7467_v6  ;;  %v7528_v6 = vld [vmem:[#allocation6 + $0x650] ss:$8 sps:$4 sm:$0xff]  }
 0x1d3   : > { %1832 = vmatprep.subr.bf16.mxu0 %v7472_v14  ;;  %v7531_v14 = vld [vmem:[#allocation6 + $0x660] ss:$8 sps:$4 sm:$0xff]  }
 0x1d6   : > { %1833 = vmatpush1.bf16.msra.mxu0 %v7470_v19  ;;  %v7542_v19 = vld [vmem:[#allocation6 + $0x694] ss:$8 sps:$4 sm:$0xff]  }
 0x1d7   : > { %2047 = vmatprep.subr.bf16.mxu0 %v7476_v23  ;;  %v7543_v23 = vld [vmem:[#allocation6 + $0x6a0] ss:$8 sps:$4 sm:$0xff]  }
 0x1d9   : > { %1843 = vmatmul.mubr.bf16.vlgmr.msra.gmra.mrb[0].mxu0 %v1682_v27  ;;  %v7551_v27 = vld [vmem:[#allocation8 + $0x4] ss:$8 sps:$4 sm:$0xff]  }
 0x1da   : > { %2048 = vmatpush1.bf16.msra.mxu0 %v7474_v21  ;;  %6456 = vmatprep.mubr.msk.bf16.mxu0 %vm543_vm1, %v1922_v29  ;;  %v6457_v21 = vcombine.low %v8140_v63, %v8644_v1  ;;  %v7556_v29 = vld [vmem:[#allocation8] ss:$8 sps:$4 sm:$0xff]   ;;  %v7567_v1 = vld [vmem:[#allocation8 + $0xa4] ss:$8 sps:$4 sm:$0xff]  }
 0x1db   : > { %2049 = vmatprep.subr.bf16.mxu0 %v7480_v28  ;;  %v7555_v28 = vld [vmem:[#allocation8 + $0x84] ss:$8 sps:$4 sm:$0xff]   ;;  %2600 = vmatprep.subr.bf16.mxu1 %v7551_v27 }
 0x1dc   : > { %2601 = vmatpush1.bf16.msra.mxu1 %v7556_v29 }
 0x1de   : > { %2050 = vmatpush1.bf16.msra.mxu0 %v7478_v30  ;;  %v7553_v30 = vld [vmem:[#allocation8 + $0x80] ss:$8 sps:$4 sm:$0xff]  }
 0x1df   : > { %2051 = vmatprep.subr.bf16.mxu0 %v7483_v25  ;;  %v7557_v25 = vld [vmem:[#allocation8 + $0x14] ss:$8 sps:$4 sm:$0xff]  }
 0x1e0   : > { %2602 = vmatprep.subr.bf16.mxu1 %v7557_v25 }
 0x1e2   : > { %2052 = vmatpush1.bf16.msra.mxu0 %v7481_v32  ;;  %v7561_v32 = vld [vmem:[#allocation8 + $0x94] ss:$8 sps:$4 sm:$0xff]  }
 0x1e3   : > { %2053 = vmatprep.subr.bf16.mxu0 %v7486_v34  ;;  %v7562_v34 = vld [vmem:[#allocation8 + $0x10] ss:$8 sps:$4 sm:$0xff]  }
 0x1e4   : > { %2603 = vmatpush1.bf16.msra.mxu1 %v7562_v34 }
 0x1e6   : > { %2054 = vmatpush1.bf16.msra.mxu0 %v7484_v35  ;;  %v7559_v35 = vld [vmem:[#allocation8 + $0x90] ss:$8 sps:$4 sm:$0xff]  }
 0x1e7   : > { %2055 = vmatprep.subr.bf16.mxu0 %v7489_v36  ;;  %v7563_v36 = vld [vmem:[#allocation8 + $0x24] ss:$8 sps:$4 sm:$0xff]  }
 0x1e8   : > { %2604 = vmatprep.subr.bf16.mxu1 %v7563_v36 }
 0x1ea   : > { %2056 = vmatpush1.bf16.msra.mxu0 %v7487_v37  ;;  %v7568_v37 = vld [vmem:[#allocation8 + $0x20] ss:$8 sps:$4 sm:$0xff]  }
 0x1eb   : > { %2057 = vmatprep.subr.bf16.mxu0 %v7492_v38  ;;  %v7565_v38 = vld [vmem:[#allocation8 + $0xa0] ss:$8 sps:$4 sm:$0xff]   ;;  %2605 = vmatpush1.bf16.msra.mxu1 %v7568_v37 }
 0x1ee   : > { %2058 = vmatpush1.bf16.msra.mxu0 %v7490_v31  ;;  %v7569_v31 = vld [vmem:[#allocation8 + $0x34] ss:$8 sps:$4 sm:$0xff]  }
 0x1ef   : > { %2059 = vmatprep.subr.bf16.mxu0 %v7495_v39  ;;  %v7573_v39 = vld [vmem:[#allocation8 + $0xb4] ss:$8 sps:$4 sm:$0xff]   ;;  %2606 = vmatprep.subr.bf16.mxu1 %v7569_v31 }
 0x1f2   : > { %2060 = vmatpush1.bf16.msra.mxu0 %v7493_v40  ;;  %v7574_v40 = vld [vmem:[#allocation8 + $0x30] ss:$8 sps:$4 sm:$0xff]  }
 0x1f3   : > { %2061 = vmatprep.subr.bf16.mxu0 %v7498_v41  ;;  %v7571_v41 = vld [vmem:[#allocation8 + $0xb0] ss:$8 sps:$4 sm:$0xff]   ;;  %2607 = vmatpush1.bf16.msra.mxu1 %v7574_v40 }
 0x1f6   : > { %2062 = vmatpush1.bf16.msra.mxu0 %v7496_v42  ;;  %v7575_v42 = vld [vmem:[#allocation8 + $0x44] ss:$8 sps:$4 sm:$0xff]  }
 0x1f7   : > { %2063 = vmatprep.subr.bf16.mxu0 %v7501_v43  ;;  %v7579_v43 = vld [vmem:[#allocation8 + $0xc4] ss:$8 sps:$4 sm:$0xff]   ;;  %2608 = vmatprep.subr.bf16.mxu1 %v7575_v42 }
 0x1fa   : > { %2064 = vmatpush1.bf16.msra.mxu0 %v7499_v44  ;;  %v7580_v44 = vld [vmem:[#allocation8 + $0x40] ss:$8 sps:$4 sm:$0xff]  }
 0x1fb   : > { %2065 = vmatprep.subr.bf16.mxu0 %v7504_v46  ;;  %2609 = vmatpush1.bf16.msra.mxu1 %v7580_v44  ;;  %v7581_v46 = vld [vmem:[#allocation8 + $0x54] ss:$8 sps:$4 sm:$0xff]  }
 0x1fc   : > { %2610 = vmatprep.subr.bf16.mxu1 %v7581_v46 }
 0x1fe   : > { %2066 = vmatpush1.bf16.msra.mxu0 %v7502_v47  ;;  %v7585_v47 = vld [vmem:[#allocation8 + $0xd4] ss:$8 sps:$4 sm:$0xff]  }
 0x1ff   : > { %2067 = vmatprep.subr.bf16.mxu0 %v7507_v12  ;;  %2611 = vmatpush1.bf16.msra.mxu1 %v7586_v48  ;;  %v7591_v12 = vld [vmem:[#allocation8 + $0xe4] ss:$8 sps:$4 sm:$0xff]  }
 0x200   : > { %2612 = vmatprep.subr.bf16.mxu1 %v7587_v50 }
 0x202   : > { %2068 = vmatpush1.bf16.msra.mxu0 %v7505_v53  ;;  %v7592_v53 = vld [vmem:[#allocation8 + $0x60] ss:$8 sps:$4 sm:$0xff]  }
 0x203   : > { %2069 = vmatprep.subr.bf16.mxu0 %v7510_v56  ;;  %2613 = vmatpush1.bf16.msra.mxu1 %v7592_v53  ;;  %v7595_v56 = vld [vmem:[#allocation8 + $0xf0] ss:$8 sps:$4 sm:$0xff]  }
 0x204   : > { %2614 = vmatprep.subr.bf16.mxu1 %v7593_v33 }
 0x206   : > { %2070 = vmatpush1.bf16.msra.mxu0 %v7508_v57  ;;  %v8311_v57 = vmov 0  }
 0x207   : > { %2245 = vmatprep.subr.bf16.mxu0 %v7514_v60  ;;  %328 = vst [vmem:[#allocation4] sm:$0x1] %v8311_v57  ;;  %330 = vst [vmem:[#allocation5] sm:$0x1] %v8311_v57  ;;  %2632 = vmatprep.mubr.bf16.mxu1 %v8311_v57 }
 0x208   : > { %2615 = vmatpush1.bf16.msra.mxu1 %v7598_v55 }
 0x209   : > { %2080 = vmatmul.mubr.bf16.vlgmr.msra.gmra.mrb[0].mxu0 %v1905_v62  ;;  %2746 = vmatprep.subr.bf16.mxu1 %v7601_v58 }
 0x20a   : > { %2246 = vmatpush1.bf16.msra.mxu0 %v7512_v61  ;;  %6483 = vmatprep.mubr.msk.bf16.mxu0 %vm543_vm1, %v6458_v0 }
 0x20b   : > { %2247 = vmatprep.subr.bf16.mxu0 %v7518_v2 }
 0x20e   : > { %2248 = vmatpush1.bf16.msra.mxu0 %v7516_v3 }
 0x20f   : > { %2249 = vmatprep.subr.bf16.mxu0 %v7521_v4 }
 0x212   : > { %2250 = vmatpush1.bf16.msra.mxu0 %v7519_v5 }
 0x213   : > { %2251 = vmatprep.subr.bf16.mxu0 %v7524_v7 }
 0x216   : > { %2252 = vmatpush1.bf16.msra.mxu0 %v7522_v8 }
 0x217   : > { %2253 = vmatprep.subr.bf16.mxu0 %v7527_v9 }
 0x21a   : > { %2254 = vmatpush1.bf16.msra.mxu0 %v7525_v10 }
 0x21b   : > { %2255 = vmatprep.subr.bf16.mxu0 %v7530_v11 }
 0x21e   : > { %2256 = vmatpush1.bf16.msra.mxu0 %v7528_v6 }
 0x21f   : > { %2257 = vmatprep.subr.bf16.mxu0 %v7533_v13 }
 0x222   : > { %2258 = vmatpush1.bf16.msra.mxu0 %v7531_v14 }
 0x223   : > { %2259 = vmatprep.subr.bf16.mxu0 %v7536_v16 }
 0x226   : > { %2260 = vmatpush1.bf16.msra.mxu0 %v7534_v17 }
 0x227   : > { %2261 = vmatprep.subr.bf16.mxu0 %v7539_v18 }
 0x22a   : > { %2262 = vmatpush1.bf16.msra.mxu0 %v7537_v15 }
 0x22b   : > { %2263 = vmatprep.subr.bf16.mxu0 %v7542_v19 }
 0x22e   : > { %2264 = vmatpush1.bf16.msra.mxu0 %v7540_v20 }
 0x22f   : > { %2265 = vmatprep.subr.bf16.mxu0 %v7545_v22 }
 0x232   : > { %2266 = vmatpush1.bf16.msra.mxu0 %v7543_v23 }
 0x233   : > { %2267 = vmatprep.subr.bf16.mxu0 %v7548_v24 }
 0x236   : > { %2268 = vmatpush1.bf16.msra.mxu0 %v7546_v26 }
 0x237   : > { %2479 = vmatprep.subr.bf16.mxu0 %v7555_v28 }
 0x239   : > { %2278 = vmatmul.mubr.bf16.vlgmr.msra.gmra.mrb[0].mxu0 %v6457_v21 }
 0x23a   : > { %2480 = vmatpush1.bf16.msra.mxu0 %v7553_v30  ;;  %2511 = vmatprep.mubr.bf16.mxu0 %v8311_v57 }
 0x23b   : > { %2481 = vmatprep.subr.bf16.mxu0 %v7561_v32 }
 0x23e   : > { %2482 = vmatpush1.bf16.msra.mxu0 %v7559_v35 }
 0x23f   : > { %2483 = vmatprep.subr.bf16.mxu0 %v7567_v1 }
 0x242   : > { %2484 = vmatpush1.bf16.msra.mxu0 %v7565_v38 }
 0x243   : > { %2485 = vmatprep.subr.bf16.mxu0 %v7573_v39 }
 0x246   : > { %2486 = vmatpush1.bf16.msra.mxu0 %v7571_v41 }
 0x247   : > { %2487 = vmatprep.subr.bf16.mxu0 %v7579_v43 }
 0x24a   : > { %2488 = vmatpush1.bf16.msra.mxu0 %v7577_v45 }
 0x24b   : > { %2489 = vmatprep.subr.bf16.mxu0 %v7585_v47 }
 0x24e   : > { %2490 = vmatpush1.bf16.msra.mxu0 %v7583_v49 }
 0x24f   : > { %2491 = vmatprep.subr.bf16.mxu0 %v7591_v12 }
 0x252   : > { %2492 = vmatpush1.bf16.msra.mxu0 %v7589_v52 }
 0x253   : > { %2493 = vmatprep.subr.bf16.mxu0 %v7597_v51 }
 0x256   : > { %2494 = vmatpush1.bf16.msra.mxu0 %v7595_v56 }
 0x30c   : > { %v2279_v59 = vpop.f32.mrb[0].mxu0 }
 0x30d   : > { %v2281_v60 = vpop.f32.mrb[1].mxu0 }
 0x30e   : > { %v2283_v61 = vpop.f32.mrb[2].mxu0 }
 0x30f   : > { %v2292_v62 = vadd.f32 %v2283_v61, %v2279_v59  ;;  %v2285_v63 = vpop.f32.mrb[3].mxu0 }
 0x310   : > { %v2317_v0 = vadd.f32 %v2285_v63, %v2281_v60 }
 0x311   : > { %v2293_v2 = vrot.slane %v2292_v62, 4 }
 0x312   : > { %v2318_v3 = vrot.slane %v2317_v0, 4 }
 0x313   : > { %v2294_v4 = vadd.f32 %v2293_v2, %v2292_v62 }
 0x314   : > { %v2319_v5 = vadd.f32 %v2318_v3, %v2317_v0  ;;  %v7604_v3 = vld [vmem:[#allocation8 + $0x114] ss:$8 sps:$4 sm:$0xff]  }
 0x315   : > { %v2295_v7 = vrot.slane %v2294_v4, 2 }
 0x316   : > { %v2320_v8 = vrot.slane %v2319_v5, 2 }
 0x317   : > { %v2296_v9 = vadd.f32 %v2295_v7, %v2294_v4 }
 0x318   : > { %v2321_v10 = vadd.f32 %v2320_v8, %v2319_v5 }
 0x319   : > { %v2297_v11 = vrot.slane %v2296_v9, 1 }
 0x31a   : > { %v2322_v6 = vrot.slane %v2321_v10, 1 }
 0x31b   : > { %v2298_v13 = vadd.f32 %v2297_v11, %v2296_v9  ;;  %v7602_v9 = vld [vmem:[#allocation8 + $0x110] ss:$8 sps:$4 sm:$0xff]   ;;  %v7607_v11 = vld [vmem:[#allocation8 + $0x124] ss:$8 sps:$4 sm:$0xff]  }
 0x31c   : > { %v2323_v14 = vadd.f32 %v2322_v6, %v2321_v10 }
 0x31d   : > { %v2300_v16 = vmul.f32 0.0625, %v2298_v13 }
 0x31e   : > { %v2324_v17 = vmul.f32 0.0625, %v2323_v14 }
 0x31f   : > { %v2301_v18 = vsub.f32 %v2279_v59, %v2300_v16  ;;  %v2302_v15 = vsub.f32 %v2283_v61, %v2300_v16  ;;  %v7599_v59 = vld [vmem:[#allocation8 + $0x100] ss:$8 sps:$4 sm:$0xff]  }
 0x320   : > { %v2325_v19 = vsub.f32 %v2281_v60, %v2324_v17  ;;  %v2326_v20 = vsub.f32 %v2285_v63, %v2324_v17 }
 0x321   : > { %v2303_v22 = vmul.f32 %v2301_v18, %v2301_v18  ;;  %v2304_v23 = vmul.f32 %v2302_v15, %v2302_v15 }
 0x322   : > { %v2327_v24 = vmul.f32 %v2325_v19, %v2325_v19  ;;  %v2328_v26 = vmul.f32 %v2326_v20, %v2326_v20 }
 0x323   : > { %v2305_v21 = vadd.f32 %v2304_v23, %v2303_v22  ;;  %v7611_v22 = vld [vmem:[#allocation8 + $0x140] ss:$8 sps:$4 sm:$0xff]   ;;  %v7616_v23 = vld [vmem:[#allocation8 + $0x154] ss:$8 sps:$4 sm:$0xff]  }
 0x324   : > { %v2329_v27 = vadd.f32 %v2328_v26, %v2327_v24  ;;  %v7614_v24 = vld [vmem:[#allocation8 + $0x150] ss:$8 sps:$4 sm:$0xff]   ;;  %v7619_v26 = vld [vmem:[#allocation8 + $0x164] ss:$8 sps:$4 sm:$0xff]  }
 0x325   : > { %v2306_v28 = vrot.slane %v2305_v21, 4 }
 0x326   : > { %v2330_v29 = vrot.slane %v2329_v27, 4 }
 0x327   : > { %v2307_v30 = vadd.f32 %v2306_v28, %v2305_v21  ;;  %v7617_v21 = vld [vmem:[#allocation8 + $0x160] ss:$8 sps:$4 sm:$0xff]   ;;  %v7620_v28 = vld [vmem:[#allocation8 + $0x170] ss:$8 sps:$4 sm:$0xff]  }
 0x328   : > { %v2331_v25 = vadd.f32 %v2330_v29, %v2329_v27  ;;  %v7622_v27 = vld [vmem:[#allocation8 + $0x174] ss:$8 sps:$4 sm:$0xff]  }
 0x329   : > { %v2308_v32 = vrot.slane %v2307_v30, 2 }
 0x32a   : > { %v2332_v34 = vrot.slane %v2331_v25, 2 }
 0x32b   : > { %v2309_v35 = vadd.f32 %v2308_v32, %v2307_v30  ;;  %v7625_v30 = vld [vmem:[#allocation8 + $0x184] ss:$8 sps:$4 sm:$0xff]  }
 0x32c   : > { %v2333_v36 = vadd.f32 %v2332_v34, %v2331_v25  ;;  %v7623_v25 = vld [vmem:[#allocation8 + $0x180] ss:$8 sps:$4 sm:$0xff]   ;;  %v7628_v34 = vld [vmem:[#allocation8 + $0x194] ss:$8 sps:$4 sm:$0xff]  }
 0x32d   : > { %v2310_v1 = vrot.slane %v2309_v35, 1 }
 0x32e   : > { %v2334_v37 = vrot.slane %v2333_v36, 1 }
 0x32f   : > { %v2311_v38 = vadd.f32 %v2310_v1, %v2309_v35  ;;  %v7626_v35 = vld [vmem:[#allocation8 + $0x190] ss:$8 sps:$4 sm:$0xff]   ;;  %v7629_v1 = vld [vmem:[#allocation8 + $0x1a0] ss:$8 sps:$4 sm:$0xff]  }
 0x330   : > { %v2335_v31 = vadd.f32 %v2334_v37, %v2333_v36  ;;  %v7631_v36 = vld [vmem:[#allocation8 + $0x1a4] ss:$8 sps:$4 sm:$0xff]   ;;  %v7634_v37 = vld [vmem:[#allocation8 + $0x1b4] ss:$8 sps:$4 sm:$0xff]  }
 0x331   : > { %v2312_v39 = vmul.f32 0.0625, %v2311_v38  ;;  %v7632_v38 = vld [vmem:[#allocation8 + $0x1b0] ss:$8 sps:$4 sm:$0xff]  }
 0x332   : > { %v2336_v40 = vmul.f32 0.0625, %v2335_v31  ;;  %v7637_v31 = vld [vmem:[#allocation8 + $0x1c4] ss:$8 sps:$4 sm:$0xff]  }
 0x333   : > { %v2313_v41 = vadd.f32 1e-05, %v2312_v39  ;;  %v7635_v39 = vld [vmem:[#allocation8 + $0x1c0] ss:$8 sps:$4 sm:$0xff]  }
 0x334   : > { %v2337_v42 = vadd.f32 1e-05, %v2336_v40  ;;  %v7640_v40 = vld [vmem:[#allocation8 + $0x1d4] ss:$8 sps:$4 sm:$0xff]  }
 0x335   : > { %8103 = vrsqrt.f32 %v2313_v41  ;;  %v7638_v41 = vld [vmem:[#allocation8 + $0x1d0] ss:$8 sps:$4 sm:$0xff]  }
 0x336   : > { %8105 = vrsqrt.f32 %v2337_v42  ;;  %v7643_v42 = vld [vmem:[#allocation8 + $0x1e4] ss:$8 sps:$4 sm:$0xff]  }
 0x33f   : > { %v8104_v43 = vpop.eup %8103 }
 0x340   : > { %v8106_v44 = vpop.eup %8105  ;;  %v2315_v45 = vmul.f32 %v8104_v43, %v2301_v18  ;;  %v2316_v46 = vmul.f32 %v8104_v43, %v2302_v15  ;;  %v7605_v18 = vld [vmem:[#allocation8 + $0x120] ss:$8 sps:$4 sm:$0xff]   ;;  %v7610_v15 = vld [vmem:[#allocation8 + $0x134] ss:$8 sps:$4 sm:$0xff]  }
 0x341   : > { %v2339_v47 = vmul.f32 %v8106_v44, %v2325_v19  ;;  %v2340_v48 = vmul.f32 %v8106_v44, %v2326_v20  ;;  %v7608_v19 = vld [vmem:[#allocation8 + $0x130] ss:$8 sps:$4 sm:$0xff]   ;;  %v7613_v20 = vld [vmem:[#allocation8 + $0x144] ss:$8 sps:$4 sm:$0xff]   ;;  %v7641_v43 = vld [vmem:[#allocation8 + $0x1e0] ss:$8 sps:$4 sm:$0xff]  }
 0x342   : > { %v7646_v44 = vld [vmem:[#allocation8 + $0x1f4] ss:$8 sps:$4 sm:$0xff]  }
 0x343   : > { %v6484_v49 = vmul.f32 -1.442695, %v2339_v47  ;;  %v6485_v50 = vmul.f32 -1.442695, %v2340_v48  ;;  %v7649_v47 = vld [vmem:[#allocation8 + $0x204] ss:$8 sps:$4 sm:$0xff]  }
 0x344   : > { %v7647_v48 = vld [vmem:[#allocation8 + $0x200] ss:$8 sps:$4 sm:$0xff]  }
 0x345   : > { %8107 = vpow2.f32 %v6484_v49 }
 0x346   : > { %8109 = vpow2.f32 %v6485_v50  ;;  %v7652_v50 = vld [vmem:[#allocation8 + $0x214] ss:$8 sps:$4 sm:$0xff]  }
 0x34f   : > { %v8108_v52 = vpop.eup %8107 }
 0x350   : > { %v8110_v12 = vpop.eup %8109  ;;  %v2347_v53 = vadd.f32 1.0, %v8108_v52  ;;  %v7650_v52 = vld [vmem:[#allocation8 + $0x210] ss:$8 sps:$4 sm:$0xff]  }
 0x351   : > { %v2348_v33 = vadd.f32 1.0, %v8110_v12  ;;  %v7655_v12 = vld [vmem:[#allocation8 + $0x224] ss:$8 sps:$4 sm:$0xff]  }
 0x352   : > { %8111 = vrcp.f32 %v2347_v53  ;;  %v7653_v53 = vld [vmem:[#allocation8 + $0x220] ss:$8 sps:$4 sm:$0xff]  }
 0x353   : > { %8113 = vrcp.f32 %v2348_v33  ;;  %v7658_v33 = vld [vmem:[#allocation8 + $0x234] ss:$8 sps:$4 sm:$0xff]  }
 0x35c   : > { %v8112_v51 = vpop.eup %8111 }
 0x35d   : > { %v8114_v55 = vpop.eup %8113  ;;  %v2353_v56 = vmul.f32 %v8112_v51, %v2315_v45  ;;  %v7644_v45 = vld [vmem:[#allocation8 + $0x1f0] ss:$8 sps:$4 sm:$0xff]  }
 0x35e   : > { %v2354_v58 = vmul.f32 %v8114_v55, %v2316_v46  ;;  %v7656_v51 = vld [vmem:[#allocation8 + $0x230] ss:$8 sps:$4 sm:$0xff]   ;;  %v7661_v55 = vld [vmem:[#allocation8 + $0x244] ss:$8 sps:$4 sm:$0xff]  }
 0x35f   : > { %2355 = vst [vmem:[#allocation2 + $0x3] sm:$0xff] %v2353_v56  ;;  %v7659_v56 = vld [vmem:[#allocation8 + $0x240] ss:$8 sps:$4 sm:$0xff]  }
 0x360   : > { %2356 = vst [vmem:[#allocation2 + $0xb] sm:$0xff] %v2354_v58  ;;  %v7664_v58 = vld [vmem:[#allocation8 + $0x254] ss:$8 sps:$4 sm:$0xff]  }
 0x367   : > { %v2362_v60 = vld [vmem:[#allocation2 + $0x1] ss:$2 sm:$0xff]  ;;  %v2364_v61 = vld [vmem:[#allocation2 + $0x11] ss:$2 sm:$0x7] }
 0x368   : > { %v8676_v62 = vpack.c.bf16 %v2364_v61, %v2362_v60  ;;  %v2357_v63 = vld [vmem:[#allocation2] ss:$2 sm:$0xff]  ;;  %v2359_v0 = vld [vmem:[#allocation2 + $0x10] ss:$2 sm:$0x7] }
 0x369   : > { %v8678_v2 = vpack.c.bf16 %v2359_v0, %v2357_v63  ;;  %v7667_v60 = vld [vmem:[#allocation8 + $0x264] ss:$8 sps:$4 sm:$0xff]   ;;  %v7665_v61 = vld [vmem:[#allocation8 + $0x260] ss:$8 sps:$4 sm:$0xff]   ;;  %v7670_v63 = vld [vmem:[#allocation8 + $0x274] ss:$8 sps:$4 sm:$0xff]  }
 0x36a   : > { %2512 = vmatmul.mubr.bf16.vlgmr.msra.gmra.mrb[4].mxu0 %v8676_v62  ;;  %v2807_v4 = vshrl.u32 %v8676_v62, 16  ;;  %v2809_v5 = vshll.u32 %v8676_v62, 16  ;;  %v7668_v0 = vld [vmem:[#allocation8 + $0x270] ss:$8 sps:$4 sm:$0xff]  }
 0x36b   : > { %2633 = vmatmul.mubr.bf16.vlgmr.msra.gmra.mrb[0].mxu1 %v8678_v2  ;;  %v2659_v7 = vshrl.u32 %v8678_v2, 16  ;;  %v2661_v8 = vshll.u32 %v8678_v2, 16  ;;  %4924 = vmatprep.mubr.bf16.mxu0 %v8311_v57 }
 0x36c   : > { %2747 = vmatpush1.bf16.msra.mxu1 %v7599_v59  ;;  %2778 = vmatprep.mubr.bf16.mxu1 %v8311_v57  ;;  %v8690_v10 = vrot.slane %v2807_v4, 1  ;;  %v8698_v14 = vrot.slane %v2809_v5, 2  ;;  %v2811_v46 = vrot.slane %v2809_v5, 1  ;;  %v7662_v59 = vld [vmem:[#allocation8 + $0x250] ss:$8 sps:$4 sm:$0xff]   ;;  %v2955_v5 = vrot.slane %v8678_v2, 1 }
 0x36d   : > { %2748 = vmatprep.subr.bf16.mxu1 %v7604_v3  ;;  %v8692_v6 = vrot.slane %v2659_v7, 1  ;;  %v8694_v13 = vrot.slane %v2661_v8, 2  ;;  %v2663_v29 = vrot.slane %v2661_v8, 1  ;;  %v7673_v3 = vld [vmem:[#allocation8 + $0x284] ss:$8 sps:$4 sm:$0xff]  }
 0x36e   : > { %v3386_v17 = vor.u32 %v8698_v14, %v8690_v10  ;;  %v2812_v49 = vor.u32 %v2811_v46, %v2807_v4  ;;  %v7671_v4 = vld [vmem:[#allocation8 + $0x280] ss:$8 sps:$4 sm:$0xff]   ;;  %v7674_v8 = vld [vmem:[#allocation8 + $0x290] ss:$8 sps:$4 sm:$0xff]   ;;  %v7688_v2 = vld [vmem:[#allocation8 + $0x2d4] ss:$8 sps:$4 sm:$0xff]  }
 0x36f   : > { %v3242_v16 = vor.u32 %v8694_v13, %v8692_v6  ;;  %v2664_v32 = vor.u32 %v2663_v29, %v2659_v7  ;;  %v7676_v7 = vld [vmem:[#allocation8 + $0x294] ss:$8 sps:$4 sm:$0xff]   ;;  %v3098_v29 = vrot.slane %v8676_v62, 1  ;;  %v7727_v46 = vld [vmem:[#allocation8 + $0x3a4] ss:$8 sps:$4 sm:$0xff]  }
 0x370   : > { %2749 = vmatpush1.bf16.msra.mxu1 %v7602_v9  ;;  %v7679_v9 = vld [vmem:[#allocation8 + $0x2a4] ss:$8 sps:$4 sm:$0xff]   ;;  %v7712_v62 = vld [vmem:[#allocation8 + $0x354] ss:$8 sps:$4 sm:$0xff]   ;;  %v7734_v6 = vld [vmem:[#allocation8 + $0x3d0] ss:$8 sps:$4 sm:$0xff]  }
 0x371   : > { %2750 = vmatprep.subr.bf16.mxu1 %v7607_v11  ;;  %v7677_v11 = vld [vmem:[#allocation8 + $0x2a0] ss:$8 sps:$4 sm:$0xff]   ;;  %v7739_v13 = vld [vmem:[#allocation8 + $0x3e4] ss:$8 sps:$4 sm:$0xff]   ;;  %v7754_v10 = vld [vmem:[#allocation10 + $0xb4] ss:$8 sps:$4 sm:$0xff]  }
 0x372   : > { %v7752_v14 = vld [vmem:[#allocation10 + $0xb0] ss:$8 sps:$4 sm:$0xff]  }
 0x374   : > { %2751 = vmatpush1.bf16.msra.mxu1 %v7605_v18  ;;  %v7682_v18 = vld [vmem:[#allocation8 + $0x2b4] ss:$8 sps:$4 sm:$0xff]  }
 0x375   : > { %2752 = vmatprep.subr.bf16.mxu1 %v7610_v15  ;;  %v7680_v15 = vld [vmem:[#allocation8 + $0x2b0] ss:$8 sps:$4 sm:$0xff]  }
 0x378   : > { %2753 = vmatpush1.bf16.msra.mxu1 %v7608_v19  ;;  %v7685_v19 = vld [vmem:[#allocation8 + $0x2c4] ss:$8 sps:$4 sm:$0xff]  }
 0x379   : > { %2754 = vmatprep.subr.bf16.mxu1 %v7613_v20  ;;  %v7683_v20 = vld [vmem:[#allocation8 + $0x2c0] ss:$8 sps:$4 sm:$0xff]  }
 0x37c   : > { %2755 = vmatpush1.bf16.msra.mxu1 %v7611_v22  ;;  %v7686_v22 = vld [vmem:[#allocation8 + $0x2d0] ss:$8 sps:$4 sm:$0xff]  }
 0x37d   : > { %2756 = vmatprep.subr.bf16.mxu1 %v7616_v23  ;;  %v7691_v23 = vld [vmem:[#allocation8 + $0x2e4] ss:$8 sps:$4 sm:$0xff]  }
 0x380   : > { %2757 = vmatpush1.bf16.msra.mxu1 %v7614_v24  ;;  %v7689_v24 = vld [vmem:[#allocation8 + $0x2e0] ss:$8 sps:$4 sm:$0xff]  }
 0x381   : > { %2758 = vmatprep.subr.bf16.mxu1 %v7619_v26  ;;  %v7694_v26 = vld [vmem:[#allocation8 + $0x2f4] ss:$8 sps:$4 sm:$0xff]  }
 0x384   : > { %2759 = vmatpush1.bf16.msra.mxu1 %v7617_v21  ;;  %v7692_v21 = vld [vmem:[#allocation8 + $0x2f0] ss:$8 sps:$4 sm:$0xff]  }
 0x385   : > { %2760 = vmatprep.subr.bf16.mxu1 %v7622_v27  ;;  %v7697_v27 = vld [vmem:[#allocation8 + $0x304] ss:$8 sps:$4 sm:$0xff]  }
 0x388   : > { %2761 = vmatpush1.bf16.msra.mxu1 %v7620_v28  ;;  %v7695_v28 = vld [vmem:[#allocation8 + $0x300] ss:$8 sps:$4 sm:$0xff]  }
 0x389   : > { %2894 = vmatprep.subr.bf16.mxu1 %v7625_v30  ;;  %v7700_v30 = vld [vmem:[#allocation8 + $0x314] ss:$8 sps:$4 sm:$0xff]  }
 0x38b   : > { %2779 = vmatmul.mubr.bf16.vlgmr.msra.gmra.mrb[0].mxu1 %v2664_v32  ;;  %v7703_v32 = vld [vmem:[#allocation8 + $0x324] ss:$8 sps:$4 sm:$0xff]  }
 0x38c   : > { %2895 = vmatpush1.bf16.msra.mxu1 %v7623_v25  ;;  %2926 = vmatprep.mubr.bf16.mxu1 %v8311_v57  ;;  %v7698_v25 = vld [vmem:[#allocation8 + $0x310] ss:$8 sps:$4 sm:$0xff]  }
 0x38d   : > { %2896 = vmatprep.subr.bf16.mxu1 %v7628_v34  ;;  %v7701_v34 = vld [vmem:[#allocation8 + $0x320] ss:$8 sps:$4 sm:$0xff]  }
 0x390   : > { %2897 = vmatpush1.bf16.msra.mxu1 %v7626_v35  ;;  %v7706_v35 = vld [vmem:[#allocation8 + $0x334] ss:$8 sps:$4 sm:$0xff]  }
 0x391   : > { %2898 = vmatprep.subr.bf16.mxu1 %v7631_v36  ;;  %v7704_v36 = vld [vmem:[#allocation8 + $0x330] ss:$8 sps:$4 sm:$0xff]  }
 0x394   : > { %2899 = vmatpush1.bf16.msra.mxu1 %v7629_v1  ;;  %v7709_v1 = vld [vmem:[#allocation8 + $0x344] ss:$8 sps:$4 sm:$0xff]  }
 0x395   : > { %2900 = vmatprep.subr.bf16.mxu1 %v7634_v37  ;;  %v7707_v37 = vld [vmem:[#allocation8 + $0x340] ss:$8 sps:$4 sm:$0xff]  }
 0x398   : > { %2901 = vmatpush1.bf16.msra.mxu1 %v7632_v38  ;;  %v7710_v38 = vld [vmem:[#allocation8 + $0x350] ss:$8 sps:$4 sm:$0xff]  }
 0x399   : > { %2902 = vmatprep.subr.bf16.mxu1 %v7637_v31  ;;  %v7715_v31 = vld [vmem:[#allocation8 + $0x364] ss:$8 sps:$4 sm:$0xff]  }
 0x39c   : > { %2903 = vmatpush1.bf16.msra.mxu1 %v7635_v39  ;;  %v7713_v39 = vld [vmem:[#allocation8 + $0x360] ss:$8 sps:$4 sm:$0xff]  }
 0x39d   : > { %2904 = vmatprep.subr.bf16.mxu1 %v7640_v40  ;;  %v7718_v40 = vld [vmem:[#allocation8 + $0x374] ss:$8 sps:$4 sm:$0xff]  }
 0x3a0   : > { %2905 = vmatpush1.bf16.msra.mxu1 %v7638_v41  ;;  %v7716_v41 = vld [vmem:[#allocation8 + $0x370] ss:$8 sps:$4 sm:$0xff]  }
 0x3a1   : > { %2906 = vmatprep.subr.bf16.mxu1 %v7643_v42  ;;  %v7721_v42 = vld [vmem:[#allocation8 + $0x384] ss:$8 sps:$4 sm:$0xff]  }
 0x3a4   : > { %2907 = vmatpush1.bf16.msra.mxu1 %v7641_v43  ;;  %v7719_v43 = vld [vmem:[#allocation8 + $0x380] ss:$8 sps:$4 sm:$0xff]  }
 0x3a5   : > { %2908 = vmatprep.subr.bf16.mxu1 %v7646_v44  ;;  %v7724_v44 = vld [vmem:[#allocation8 + $0x394] ss:$8 sps:$4 sm:$0xff]  }
 0x3a8   : > { %2909 = vmatpush1.bf16.msra.mxu1 %v7644_v45  ;;  %v7722_v45 = vld [vmem:[#allocation8 + $0x390] ss:$8 sps:$4 sm:$0xff]  }
 0x3a9   : > { %3037 = vmatprep.subr.bf16.mxu1 %v7649_v47  ;;  %v7725_v47 = vld [vmem:[#allocation8 + $0x3a0] ss:$8 sps:$4 sm:$0xff]  }
 0x3ab   : > { %2927 = vmatmul.mubr.bf16.vlgmr.msra.gmra.mrb[0].mxu1 %v2812_v49  ;;  %v7728_v49 = vld [vmem:[#allocation8 + $0x3b0] ss:$8 sps:$4 sm:$0xff]  }
 0x3ac   : > { %3038 = vmatpush1.bf16.msra.mxu1 %v7647_v48  ;;  %3069 = vmatprep.mubr.bf16.mxu1 %v8311_v57  ;;  %v7730_v48 = vld [vmem:[#allocation8 + $0x3b4] ss:$8 sps:$4 sm:$0xff]  }
 0x3ad   : > { %3039 = vmatprep.subr.bf16.mxu1 %v7652_v50  ;;  %v7733_v50 = vld [vmem:[#allocation8 + $0x3c4] ss:$8 sps:$4 sm:$0xff]  }
 0x3b0   : > { %3040 = vmatpush1.bf16.msra.mxu1 %v7650_v52  ;;  %v7731_v52 = vld [vmem:[#allocation8 + $0x3c0] ss:$8 sps:$4 sm:$0xff]  }
 0x3b1   : > { %3041 = vmatprep.subr.bf16.mxu1 %v7655_v12  ;;  %v7736_v12 = vld [vmem:[#allocation8 + $0x3d4] ss:$8 sps:$4 sm:$0xff]  }
 0x3b4   : > { %3042 = vmatpush1.bf16.msra.mxu1 %v7653_v53  ;;  %v7742_v53 = vld [vmem:[#allocation8 + $0x3f4] ss:$8 sps:$4 sm:$0xff]  }
 0x3b5   : > { %3043 = vmatprep.subr.bf16.mxu1 %v7658_v33  ;;  %v7740_v33 = vld [vmem:[#allocation8 + $0x3f0] ss:$8 sps:$4 sm:$0xff]  }
 0x3b8   : > { %3044 = vmatpush1.bf16.msra.mxu1 %v7656_v51 }
 0x3b9   : > { %3045 = vmatprep.subr.bf16.mxu1 %v7661_v55 }
 0x3bc   : > { %3046 = vmatpush1.bf16.msra.mxu1 %v7659_v56 }
 0x3bd   : > { %3047 = vmatprep.subr.bf16.mxu1 %v7664_v58 }
 0x3c0   : > { %3048 = vmatpush1.bf16.msra.mxu1 %v7662_v59  ;;  %v7745_v59 = vld [vmem:[#allocation10 + $0x84] ss:$8 sps:$4 sm:$0xff]  }
 0x3c1   : > { %3049 = vmatprep.subr.bf16.mxu1 %v7667_v60  ;;  %v7743_v60 = vld [vmem:[#allocation10 + $0x80] ss:$8 sps:$4 sm:$0xff]  }
 0x3c4   : > { %3050 = vmatpush1.bf16.msra.mxu1 %v7665_v61  ;;  %v7748_v61 = vld [vmem:[#allocation10 + $0x94] ss:$8 sps:$4 sm:$0xff]  }
 0x3c5   : > { %3051 = vmatprep.subr.bf16.mxu1 %v7670_v63  ;;  %v7746_v63 = vld [vmem:[#allocation10 + $0x90] ss:$8 sps:$4 sm:$0xff]  }
 0x3c8   : > { %3052 = vmatpush1.bf16.msra.mxu1 %v7668_v0  ;;  %v7751_v0 = vld [vmem:[#allocation10 + $0xa4] ss:$8 sps:$4 sm:$0xff]  }
 0x3c9   : > { %3180 = vmatprep.subr.bf16.mxu1 %v7673_v3  ;;  %v7749_v3 = vld [vmem:[#allocation10 + $0xa0] ss:$8 sps:$4 sm:$0xff]  }
 0x3cb   : > { %3070 = vmatmul.mubr.bf16.vlgmr.msra.gmra.mrb[0].mxu1 %v2955_v5  ;;  %v7760_v5 = vld [vmem:[#allocation10 + $0xd4] ss:$8 sps:$4 sm:$0xff]  }
 0x3cc   : > { %3181 = vmatpush1.bf16.msra.mxu1 %v7671_v4  ;;  %3212 = vmatprep.mubr.bf16.mxu1 %v8311_v57  ;;  %v7755_v4 = vld [vmem:[#allocation10 + $0xc0] ss:$8 sps:$4 sm:$0xff]  }
 0x3cd   : > { %3182 = vmatprep.subr.bf16.mxu1 %v7676_v7  ;;  %v7758_v7 = vld [vmem:[#allocation10 + $0xd0] ss:$8 sps:$4 sm:$0xff]  }
 0x3d0   : > { %3183 = vmatpush1.bf16.msra.mxu1 %v7674_v8  ;;  %v7763_v8 = vld [vmem:[#allocation10 + $0xe4] ss:$8 sps:$4 sm:$0xff]  }
 0x3d1   : > { %3184 = vmatprep.subr.bf16.mxu1 %v7679_v9  ;;  %v7761_v9 = vld [vmem:[#allocation10 + $0xe0] ss:$8 sps:$4 sm:$0xff]  }
 0x3d4   : > { %3185 = vmatpush1.bf16.msra.mxu1 %v7677_v11  ;;  %v7766_v11 = vld [vmem:[#allocation10 + $0xf4] ss:$8 sps:$4 sm:$0xff]  }
 0x3d5   : > { %3186 = vmatprep.subr.bf16.mxu1 %v7682_v18  ;;  %v7764_v18 = vld [vmem:[#allocation10 + $0xf0] ss:$8 sps:$4 sm:$0xff]  }
 0x3d8   : > { %3187 = vmatpush1.bf16.msra.mxu1 %v7680_v15  ;;  %v7769_v15 = vld [vmem:[#allocation10 + $0x4] ss:$8 sps:$4 sm:$0xff]  }
 0x3d9   : > { %3188 = vmatprep.subr.bf16.mxu1 %v7685_v19 }
 0x3dc   : > { %3189 = vmatpush1.bf16.msra.mxu1 %v7683_v20 }
 0x3dd   : > { %3190 = vmatprep.subr.bf16.mxu1 %v7688_v2 }
 0x3e0   : > { %3191 = vmatpush1.bf16.msra.mxu1 %v7686_v22 }
 0x3e1   : > { %3192 = vmatprep.subr.bf16.mxu1 %v7691_v23 }
 0x3e4   : > { %3193 = vmatpush1.bf16.msra.mxu1 %v7689_v24 }
 0x3e5   : > { %3194 = vmatprep.subr.bf16.mxu1 %v7694_v26 }
 0x3e8   : > { %3195 = vmatpush1.bf16.msra.mxu1 %v7692_v21 }
 0x3e9   : > { %3324 = vmatprep.subr.bf16.mxu1 %v7697_v27 }
 0x3eb   : > { %3213 = vmatmul.mubr.bf16.vlgmr.msra.gmra.mrb[0].mxu1 %v3098_v29 }
 0x3ec   : > { %3325 = vmatpush1.bf16.msra.mxu1 %v7695_v28  ;;  %3356 = vmatprep.mubr.bf16.mxu1 %v8311_v57 }
 0x3ed   : > { %3326 = vmatprep.subr.bf16.mxu1 %v7700_v30 }
 0x3f0   : > { %3327 = vmatpush1.bf16.msra.mxu1 %v7698_v25 }
 0x3f1   : > { %3328 = vmatprep.subr.bf16.mxu1 %v7703_v32 }
 0x3f4   : > { %3329 = vmatpush1.bf16.msra.mxu1 %v7701_v34 }
 0x3f5   : > { %3330 = vmatprep.subr.bf16.mxu1 %v7706_v35 }
 0x3f8   : > { %3331 = vmatpush1.bf16.msra.mxu1 %v7704_v36 }
 0x3f9   : > { %3332 = vmatprep.subr.bf16.mxu1 %v7709_v1 }
 0x3fc   : > { %3333 = vmatpush1.bf16.msra.mxu1 %v7707_v37 }
 0x3fd   : > { %3334 = vmatprep.subr.bf16.mxu1 %v7712_v62 }
 0x400   : > { %3335 = vmatpush1.bf16.msra.mxu1 %v7710_v38 }
 0x401   : > { %3336 = vmatprep.subr.bf16.mxu1 %v7715_v31 }
 0x404   : > { %3337 = vmatpush1.bf16.msra.mxu1 %v7713_v39 }
 0x405   : > { %3338 = vmatprep.subr.bf16.mxu1 %v7718_v40 }
 0x408   : > { %3339 = vmatpush1.bf16.msra.mxu1 %v7716_v41 }
 0x409   : > { %3468 = vmatprep.subr.bf16.mxu1 %v7721_v42 }
 0x40b   : > { %3357 = vmatmul.mubr.bf16.vlgmr.msra.gmra.mrb[0].mxu1 %v3242_v16  ;;  %v7737_v16 = vld [vmem:[#allocation8 + $0x3e0] ss:$8 sps:$4 sm:$0xff]  }
 0x40c   : > { %3469 = vmatpush1.bf16.msra.mxu1 %v7719_v43  ;;  %3500 = vmatprep.mubr.bf16.mxu1 %v8311_v57 }
 0x40d   : > { %3470 = vmatprep.subr.bf16.mxu1 %v7724_v44 }
 0x410   : > { %3471 = vmatpush1.bf16.msra.mxu1 %v7722_v45 }
 0x411   : > { %3472 = vmatprep.subr.bf16.mxu1 %v7727_v46 }
 0x414   : > { %3473 = vmatpush1.bf16.msra.mxu1 %v7725_v47 }
 0x415   : > { %3474 = vmatprep.subr.bf16.mxu1 %v7730_v48 }
 0x418   : > { %3475 = vmatpush1.bf16.msra.mxu1 %v7728_v49 }
 0x419   : > { %3476 = vmatprep.subr.bf16.mxu1 %v7733_v50 }
 0x41c   : > { %3477 = vmatpush1.bf16.msra.mxu1 %v7731_v52 }
 0x41d   : > { %3478 = vmatprep.subr.bf16.mxu1 %v7736_v12 }
 0x420   : > { %3479 = vmatpush1.bf16.msra.mxu1 %v7734_v6 }
 0x421   : > { %3480 = vmatprep.subr.bf16.mxu1 %v7739_v13 }
 0x424   : > { %3481 = vmatpush1.bf16.msra.mxu1 %v7737_v16 }
 0x425   : > { %3482 = vmatprep.subr.bf16.mxu1 %v7742_v53 }
 0x428   : > { %3483 = vmatpush1.bf16.msra.mxu1 %v7740_v33 }
 0x429   : > { %3676 = vmatprep.subr.bf16.mxu1 %v7745_v59 }
 0x42b   : > { %3501 = vmatmul.mubr.bf16.vlgmr.msra.gmra.mrb[0].mxu1 %v3386_v17  ;;  %v7757_v17 = vld [vmem:[#allocation10 + $0xc4] ss:$8 sps:$4 sm:$0xff]  }
 0x42c   : > { %3708 = vmatprep.mubr.bf16.mxu1 %v8311_v57  ;;  %3677 = vmatpush1.bf16.msra.mxu1 %v7743_v60 }
 0x42d   : > { %3678 = vmatprep.subr.bf16.mxu1 %v7748_v61 }
 0x430   : > { %3679 = vmatpush1.bf16.msra.mxu1 %v7746_v63 }
 0x431   : > { %3680 = vmatprep.subr.bf16.mxu1 %v7751_v0  ;;  %v7767_v0 = vld [vmem:[#allocation10] ss:$8 sps:$4 sm:$0xff]  }
 0x434   : > { %3681 = vmatpush1.bf16.msra.mxu1 %v7749_v3 }
 0x435   : > { %3682 = vmatprep.subr.bf16.mxu1 %v7754_v10 }
 0x438   : > { %3683 = vmatpush1.bf16.msra.mxu1 %v7752_v14 }
 0x439   : > { %3684 = vmatprep.subr.bf16.mxu1 %v7757_v17  ;;  %v7772_v17 = vld [vmem:[#allocation10 + $0x14] ss:$8 sps:$4 sm:$0xff]  }
 0x43c   : > { %3685 = vmatpush1.bf16.msra.mxu1 %v7755_v4 }
 0x43d   : > { %v2513_v51 = vpop.f32.mrb[4].mxu0  ;;  %3686 = vmatprep.subr.bf16.mxu1 %v7760_v5 }
 0x43e   : > { %v2515_v55 = vpop.f32.mrb[5].mxu0 }
 0x43f   : > { %v2517_v56 = vpop.f32.mrb[6].mxu0 }
 0x440   : > { %v2518_v58 = vpop.f32.mrb[7].mxu0  ;;  %3687 = vmatpush1.bf16.msra.mxu1 %v7758_v7 }
 0x441   : > { %3688 = vmatprep.subr.bf16.mxu1 %v7763_v8 }
 0x444   : > { %3689 = vmatpush1.bf16.msra.mxu1 %v7761_v9 }
 0x445   : > { %3690 = vmatprep.subr.bf16.mxu1 %v7766_v11  ;;  %v7770_v11 = vld [vmem:[#allocation10 + $0x10] ss:$8 sps:$4 sm:$0xff]  }
 0x448   : > { %3691 = vmatpush1.bf16.msra.mxu1 %v7764_v18  ;;  %v7775_v18 = vld [vmem:[#allocation10 + $0x24] ss:$8 sps:$4 sm:$0xff]  }
 0x449   : > { %3797 = vmatprep.subr.bf16.mxu1 %v7769_v15 }
 0x4fe   : > { %v3502_v19 = vpop.f32.mrb[0].mxu1 }
 0x4ff   : > { %v7024_v20 = vadd.f32 %v3502_v19, %v2513_v51  ;;  %v3504_v2 = vpop.f32.mrb[1].mxu1 }
 0x500   : > { %v7025_v22 = vadd.f32 %v3504_v2, %v2515_v55  ;;  %v3506_v23 = vpop.f32.mrb[2].mxu1 }
 0x501   : > { %v3511_v24 = vrot.slane %v7024_v20, 4  ;;  %v3507_v26 = vpop.f32.mrb[3].mxu1  ;;  %v7773_v23 = vld [vmem:[#allocation10 + $0x20] ss:$8 sps:$4 sm:$0xff]  }
 0x502   : > { %v3531_v21 = vrot.slane %v7025_v22, 4  ;;  %v7778_v26 = vld [vmem:[#allocation10 + $0x34] ss:$8 sps:$4 sm:$0xff]  }
 0x503   : > { %v3512_v27 = vadd.f32 %v7024_v20, %v3511_v24 }
 0x504   : > { %v3532_v28 = vadd.f32 %v7025_v22, %v3531_v21  ;;  %v7776_v21 = vld [vmem:[#allocation10 + $0x30] ss:$8 sps:$4 sm:$0xff]  }
 0x505   : > { %v3513_v29 = vrot.slane %v3512_v27, 2 }
 0x506   : > { %v3533_v30 = vrot.slane %v3532_v28, 2 }
 0x507   : > { %v3514_v25 = vadd.f32 %v3513_v29, %v3512_v27  ;;  %v7781_v27 = vld [vmem:[#allocation10 + $0x44] ss:$8 sps:$4 sm:$0xff]   ;;  %v7784_v29 = vld [vmem:[#allocation10 + $0x54] ss:$8 sps:$4 sm:$0xff]  }
 0x508   : > { %v3534_v32 = vadd.f32 %v3533_v30, %v3532_v28  ;;  %v7779_v28 = vld [vmem:[#allocation10 + $0x40] ss:$8 sps:$4 sm:$0xff]   ;;  %v7782_v30 = vld [vmem:[#allocation10 + $0x50] ss:$8 sps:$4 sm:$0xff]  }
 0x509   : > { %v3515_v34 = vrot.slane %v3514_v25, 1 }
 0x50a   : > { %v3535_v35 = vrot.slane %v3534_v32, 1 }
 0x50b   : > { %v3516_v36 = vadd.f32 %v3515_v34, %v3514_v25  ;;  %v7787_v25 = vld [vmem:[#allocation10 + $0x64] ss:$8 sps:$4 sm:$0xff]   ;;  %v7790_v34 = vld [vmem:[#allocation10 + $0x74] ss:$8 sps:$4 sm:$0xff]  }
 0x50c   : > { %v3536_v1 = vadd.f32 %v3535_v35, %v3534_v32  ;;  %v7785_v32 = vld [vmem:[#allocation10 + $0x60] ss:$8 sps:$4 sm:$0xff]   ;;  %v7788_v35 = vld [vmem:[#allocation10 + $0x70] ss:$8 sps:$4 sm:$0xff]  }
 0x50d   : > { %v3518_v62 = vmul.f32 0.125, %v3516_v36  ;;  %v7793_v36 = vld [vmem:[#allocation10 + $0x104] ss:$8 sps:$4 sm:$0xff]  }
 0x50e   : > { %v3537_v37 = vmul.f32 0.125, %v3536_v1  ;;  %v7791_v1 = vld [vmem:[#allocation10 + $0x100] ss:$8 sps:$4 sm:$0xff]  }
 0x50f   : > { %v3519_v39 = vsub.f32 %v7024_v20, %v3518_v62  ;;  %v7794_v62 = vld [vmem:[#allocation10 + $0x110] ss:$8 sps:$4 sm:$0xff]  }
 0x510   : > { %v3538_v38 = vsub.f32 %v7025_v22, %v3537_v37  ;;  %v7796_v37 = vld [vmem:[#allocation10 + $0x114] ss:$8 sps:$4 sm:$0xff]  }
 0x511   : > { %v3520_v42 = vmul.f32 %v3519_v39, %v3519_v39 }
 0x512   : > { %v3539_v31 = vmul.f32 %v3538_v38, %v3538_v38 }
 0x513   : > { %v3521_v45 = vrot.slane %v3520_v42, 4 }
 0x514   : > { %v3540_v40 = vrot.slane %v3539_v31, 4 }
 0x515   : > { %v3522_v48 = vadd.f32 %v3521_v45, %v3520_v42  ;;  %v7803_v42 = vld [vmem:[#allocation10 + $0x140] ss:$8 sps:$4 sm:$0xff]   ;;  %v7811_v45 = vld [vmem:[#allocation10 + $0x164] ss:$8 sps:$4 sm:$0xff]  }
 0x516   : > { %v3541_v41 = vadd.f32 %v3540_v40, %v3539_v31  ;;  %v7797_v31 = vld [vmem:[#allocation10 + $0x120] ss:$8 sps:$4 sm:$0xff]   ;;  %v7800_v40 = vld [vmem:[#allocation10 + $0x130] ss:$8 sps:$4 sm:$0xff]  }
 0x517   : > { %v3523_v52 = vrot.slane %v3522_v48, 2 }
 0x518   : > { %v3542_v43 = vrot.slane %v3541_v41, 2 }
 0x519   : > { %v3524_v12 = vadd.f32 %v3523_v52, %v3522_v48  ;;  %v7812_v48 = vld [vmem:[#allocation10 + $0x170] ss:$8 sps:$4 sm:$0xff]   ;;  %v7815_v52 = vld [vmem:[#allocation10 + $0x180] ss:$8 sps:$4 sm:$0xff]  }
 0x51a   : > { %v3543_v44 = vadd.f32 %v3542_v43, %v3541_v41  ;;  %v7805_v41 = vld [vmem:[#allocation10 + $0x144] ss:$8 sps:$4 sm:$0xff]   ;;  %v7808_v43 = vld [vmem:[#allocation10 + $0x154] ss:$8 sps:$4 sm:$0xff]  }
 0x51b   : > { %v3525_v6 = vrot.slane %v3524_v12, 1 }
 0x51c   : > { %v3544_v46 = vrot.slane %v3543_v44, 1 }
 0x51d   : > { %v3526_v53 = vadd.f32 %v3525_v6, %v3524_v12  ;;  %v7820_v6 = vld [vmem:[#allocation10 + $0x194] ss:$8 sps:$4 sm:$0xff]  }
 0x51e   : > { %v3545_v47 = vadd.f32 %v3544_v46, %v3543_v44  ;;  %v7806_v44 = vld [vmem:[#allocation10 + $0x150] ss:$8 sps:$4 sm:$0xff]   ;;  %v7809_v46 = vld [vmem:[#allocation10 + $0x160] ss:$8 sps:$4 sm:$0xff]  }
 0x51f   : > { %v3527_v51 = vmul.f32 0.125, %v3526_v53  ;;  %v7821_v53 = vld [vmem:[#allocation10 + $0x1a0] ss:$8 sps:$4 sm:$0xff]  }
 0x520   : > { %v3546_v49 = vmul.f32 0.125, %v3545_v47  ;;  %v7814_v47 = vld [vmem:[#allocation10 + $0x174] ss:$8 sps:$4 sm:$0xff]  }
 0x521   : > { %v3528_v55 = vadd.f32 1e-05, %v3527_v51  ;;  %v7824_v51 = vld [vmem:[#allocation10 + $0x1b0] ss:$8 sps:$4 sm:$0xff]  }
 0x522   : > { %v3547_v50 = vadd.f32 1e-05, %v3546_v49 }
 0x524   : > { %8115 = vrsqrt.f32 %v3547_v50  ;;  %v7817_v50 = vld [vmem:[#allocation10 + $0x184] ss:$8 sps:$4 sm:$0xff]  }
 0x52e   : > { %v8116_v13 = vpop.eup %8115 }
 0x52f   : > { %v3549_v16 = vmul.f32 %v8116_v13, %v3538_v38  ;;  %v7799_v38 = vld [vmem:[#allocation10 + $0x124] ss:$8 sps:$4 sm:$0xff]   ;;  %v7818_v13 = vld [vmem:[#allocation10 + $0x190] ss:$8 sps:$4 sm:$0xff]  }
 0x531   : > { %v6614_v33 = vmul.f32 -1.442695, %v3549_v16  ;;  %v7823_v16 = vld [vmem:[#allocation10 + $0x1a4] ss:$8 sps:$4 sm:$0xff]  }
 0x533   : > { %8117 = vpow2.f32 %v6614_v33  ;;  %v7826_v33 = vld [vmem:[#allocation10 + $0x1b4] ss:$8 sps:$4 sm:$0xff]  }
 0x534   : > { %8119 = vrsqrt.f32 %v3528_v55  ;;  %v7829_v55 = vld [vmem:[#allocation10 + $0x1c4] ss:$8 sps:$4 sm:$0xff]  }
 0x53d   : > { %v8118_v56 = vpop.eup %8117 }
 0x53e   : > { %v3553_v58 = vadd.f32 1.0, %v8118_v56  ;;  %v8120_v59 = vpop.eup %8119  ;;  %v7827_v56 = vld [vmem:[#allocation10 + $0x1c0] ss:$8 sps:$4 sm:$0xff]  }
 0x53f   : > { %v3530_v60 = vmul.f32 %v8120_v59, %v3519_v39  ;;  %v7802_v39 = vld [vmem:[#allocation10 + $0x134] ss:$8 sps:$4 sm:$0xff]   ;;  %v7830_v59 = vld [vmem:[#allocation10 + $0x1d0] ss:$8 sps:$4 sm:$0xff]  }
 0x540   : > { %8121 = vrcp.f32 %v3553_v58  ;;  %v7832_v58 = vld [vmem:[#allocation10 + $0x1d4] ss:$8 sps:$4 sm:$0xff]  }
 0x54a   : > { %v8122_v61 = vpop.eup %8121 }
 0x54b   : > { %v3556_v63 = vmul.f32 %v8122_v61, %v3530_v60  ;;  %v7835_v60 = vld [vmem:[#allocation10 + $0x1e4] ss:$8 sps:$4 sm:$0xff]   ;;  %v7833_v61 = vld [vmem:[#allocation10 + $0x1e0] ss:$8 sps:$4 sm:$0xff]  }
 0x54d   : > { %3557 = vst [vmem:[#allocation3 + $0x3] sm:$0xff] %v3556_v63  ;;  %v7838_v63 = vld [vmem:[#allocation10 + $0x1f4] ss:$8 sps:$4 sm:$0xff]  }
 0x554   : > { %v3561_v3 = vld [vmem:[#allocation3 + $0x1] ss:$2 sm:$0x7f]  ;;  %v3558_v10 = vld [vmem:[#allocation3] ss:$2 sm:$0x7f] }
 0x555   : > { %v8722_v14 = vpack.c.bf16 %v3561_v3, %v3561_v3  ;;  %v8724_v4 = vpack.c.bf16 %v3558_v10, %v3558_v10  ;;  %v7841_v10 = vld [vmem:[#allocation10 + $0x204] ss:$8 sps:$4 sm:$0xff]  }
 0x557   : > { %3709 = vmatmul.mubr.bf16.vlgmr.msra.gmra.mrb[4].mxu1 %v8722_v14  ;;  %v3856_v5 = vshrl.u32 %v8724_v4, 16  ;;  %v3858_v7 = vshll.u32 %v8724_v4, 16  ;;  %v4004_v8 = vshrl.u32 %v8722_v14, 16  ;;  %v4006_v9 = vshll.u32 %v8722_v14, 16 }
 0x558   : > { %3798 = vmatpush1.bf16.msra.mxu1 %v7767_v0  ;;  %3829 = vmatprep.mubr.bf16.mxu1 %v8311_v57  ;;  %v7836_v0 = vld [vmem:[#allocation10 + $0x1f0] ss:$8 sps:$4 sm:$0xff]  }
 0x559   : > { %3799 = vmatprep.subr.bf16.mxu1 %v7772_v17  ;;  %v8734_v15 = vrot.slane %v3856_v5, 1  ;;  %v8738_v19 = vrot.slane %v3858_v7, 2  ;;  %v8742_v20 = vrot.slane %v4004_v8, 1  ;;  %v8746_v2 = vrot.slane %v4006_v9, 2  ;;  %v7839_v17 = vld [vmem:[#allocation10 + $0x200] ss:$8 sps:$4 sm:$0xff]  }
 0x55a   : > { %v3860_v49 = vrot.slane %v3858_v7, 1  ;;  %v4008_v3 = vrot.slane %v4006_v9, 1  ;;  %v7844_v7 = vld [vmem:[#allocation10 + $0x214] ss:$8 sps:$4 sm:$0xff]   ;;  %v7848_v9 = vld [vmem:[#allocation10 + $0x230] ss:$8 sps:$4 sm:$0xff]  }
 0x55b   : > { %v4439_v22 = vor.u32 %v8738_v19, %v8734_v15  ;;  %v4583_v24 = vor.u32 %v8746_v2, %v8742_v20  ;;  %v7926_v15 = vld [vmem:[#allocation10 + $0x3d0] ss:$8 sps:$4 sm:$0xff]   ;;  %v7931_v19 = vld [vmem:[#allocation10 + $0x3e4] ss:$8 sps:$4 sm:$0xff]   ;;  %v7952_v2 = vld [vmem:[#allocation11 + $0xd4] ss:$8 sps:$4 sm:$0xff]  }
 0x55c   : > { %3800 = vmatpush1.bf16.msra.mxu1 %v7770_v11  ;;  %v3861_v12 = vor.u32 %v3860_v49, %v3856_v5  ;;  %v4009_v5 = vor.u32 %v4008_v3, %v4004_v8  ;;  %v7842_v11 = vld [vmem:[#allocation10 + $0x210] ss:$8 sps:$4 sm:$0xff]   ;;  %v7856_v8 = vld [vmem:[#allocation10 + $0x254] ss:$8 sps:$4 sm:$0xff]   ;;  %v4295_v49 = vrot.slane %v8722_v14, 1 }
 0x55d   : > { %3801 = vmatprep.subr.bf16.mxu1 %v7775_v18  ;;  %v7847_v18 = vld [vmem:[#allocation10 + $0x224] ss:$8 sps:$4 sm:$0xff]   ;;  %v7904_v14 = vld [vmem:[#allocation10 + $0x354] ss:$8 sps:$4 sm:$0xff]   ;;  %v7950_v20 = vld [vmem:[#allocation11 + $0xd0] ss:$8 sps:$4 sm:$0xff]  }
 0x55e   : > { %v7919_v3 = vld [vmem:[#allocation10 + $0x3a4] ss:$8 sps:$4 sm:$0xff]  }
 0x560   : > { %3802 = vmatpush1.bf16.msra.mxu1 %v7773_v23  ;;  %v7845_v23 = vld [vmem:[#allocation10 + $0x220] ss:$8 sps:$4 sm:$0xff]  }
 0x561   : > { %3803 = vmatprep.subr.bf16.mxu1 %v7778_v26  ;;  %v7850_v26 = vld [vmem:[#allocation10 + $0x234] ss:$8 sps:$4 sm:$0xff]  }
 0x564   : > { %3804 = vmatpush1.bf16.msra.mxu1 %v7776_v21  ;;  %v7853_v21 = vld [vmem:[#allocation10 + $0x244] ss:$8 sps:$4 sm:$0xff]  }
 0x565   : > { %3805 = vmatprep.subr.bf16.mxu1 %v7781_v27  ;;  %v7851_v27 = vld [vmem:[#allocation10 + $0x240] ss:$8 sps:$4 sm:$0xff]  }
 0x568   : > { %3806 = vmatpush1.bf16.msra.mxu1 %v7779_v28  ;;  %v7854_v28 = vld [vmem:[#allocation10 + $0x250] ss:$8 sps:$4 sm:$0xff]  }
 0x569   : > { %3807 = vmatprep.subr.bf16.mxu1 %v7784_v29  ;;  %v7859_v29 = vld [vmem:[#allocation10 + $0x264] ss:$8 sps:$4 sm:$0xff]  }
 0x56c   : > { %3808 = vmatpush1.bf16.msra.mxu1 %v7782_v30  ;;  %v7857_v30 = vld [vmem:[#allocation10 + $0x260] ss:$8 sps:$4 sm:$0xff]  }
 0x56d   : > { %3809 = vmatprep.subr.bf16.mxu1 %v7787_v25  ;;  %v7862_v25 = vld [vmem:[#allocation10 + $0x274] ss:$8 sps:$4 sm:$0xff]  }
 0x570   : > { %3810 = vmatpush1.bf16.msra.mxu1 %v7785_v32  ;;  %v7860_v32 = vld [vmem:[#allocation10 + $0x270] ss:$8 sps:$4 sm:$0xff]  }
 0x571   : > { %3811 = vmatprep.subr.bf16.mxu1 %v7790_v34  ;;  %v7865_v34 = vld [vmem:[#allocation10 + $0x284] ss:$8 sps:$4 sm:$0xff]  }
 0x574   : > { %3812 = vmatpush1.bf16.msra.mxu1 %v7788_v35  ;;  %v7863_v35 = vld [vmem:[#allocation10 + $0x280] ss:$8 sps:$4 sm:$0xff]  }
 0x575   : > { %3943 = vmatprep.subr.bf16.mxu1 %v7793_v36  ;;  %v4152_v36 = vrot.slane %v8724_v4, 1 }
 0x577   : > { %3830 = vmatmul.mubr.bf16.vlgmr.msra.gmra.mrb[4].mxu1 %v8724_v4  ;;  %v7880_v4 = vld [vmem:[#allocation10 + $0x2d4] ss:$8 sps:$4 sm:$0xff]  }
 0x578   : > { %3944 = vmatpush1.bf16.msra.mxu1 %v7791_v1  ;;  %3975 = vmatprep.mubr.bf16.mxu1 %v8311_v57  ;;  %v7868_v1 = vld [vmem:[#allocation10 + $0x294] ss:$8 sps:$4 sm:$0xff]  }
 0x579   : > { %3945 = vmatprep.subr.bf16.mxu1 %v7796_v37  ;;  %v7866_v37 = vld [vmem:[#allocation10 + $0x290] ss:$8 sps:$4 sm:$0xff]  }
 0x57c   : > { %3946 = vmatpush1.bf16.msra.mxu1 %v7794_v62  ;;  %v7871_v62 = vld [vmem:[#allocation10 + $0x2a4] ss:$8 sps:$4 sm:$0xff]  }
 0x57d   : > { %3947 = vmatprep.subr.bf16.mxu1 %v7799_v38  ;;  %v7869_v38 = vld [vmem:[#allocation10 + $0x2a0] ss:$8 sps:$4 sm:$0xff]  }
 0x580   : > { %3948 = vmatpush1.bf16.msra.mxu1 %v7797_v31  ;;  %v7874_v31 = vld [vmem:[#allocation10 + $0x2b4] ss:$8 sps:$4 sm:$0xff]  }
 0x581   : > { %3949 = vmatprep.subr.bf16.mxu1 %v7802_v39  ;;  %v7872_v39 = vld [vmem:[#allocation10 + $0x2b0] ss:$8 sps:$4 sm:$0xff]  }
 0x584   : > { %3950 = vmatpush1.bf16.msra.mxu1 %v7800_v40  ;;  %v7877_v40 = vld [vmem:[#allocation10 + $0x2c4] ss:$8 sps:$4 sm:$0xff]  }
 0x585   : > { %3951 = vmatprep.subr.bf16.mxu1 %v7805_v41  ;;  %v7875_v41 = vld [vmem:[#allocation10 + $0x2c0] ss:$8 sps:$4 sm:$0xff]  }
 0x588   : > { %3952 = vmatpush1.bf16.msra.mxu1 %v7803_v42  ;;  %v7878_v42 = vld [vmem:[#allocation10 + $0x2d0] ss:$8 sps:$4 sm:$0xff]  }
 0x589   : > { %3953 = vmatprep.subr.bf16.mxu1 %v7808_v43  ;;  %v7883_v43 = vld [vmem:[#allocation10 + $0x2e4] ss:$8 sps:$4 sm:$0xff]  }
 0x58c   : > { %3954 = vmatpush1.bf16.msra.mxu1 %v7806_v44  ;;  %v7881_v44 = vld [vmem:[#allocation10 + $0x2e0] ss:$8 sps:$4 sm:$0xff]  }
 0x58d   : > { %3955 = vmatprep.subr.bf16.mxu1 %v7811_v45  ;;  %v7886_v45 = vld [vmem:[#allocation10 + $0x2f4] ss:$8 sps:$4 sm:$0xff]  }
 0x590   : > { %3956 = vmatpush1.bf16.msra.mxu1 %v7809_v46  ;;  %v7884_v46 = vld [vmem:[#allocation10 + $0x2f0] ss:$8 sps:$4 sm:$0xff]  }
 0x591   : > { %3957 = vmatprep.subr.bf16.mxu1 %v7814_v47  ;;  %v7889_v47 = vld [vmem:[#allocation10 + $0x304] ss:$8 sps:$4 sm:$0xff]  }
 0x594   : > { %3958 = vmatpush1.bf16.msra.mxu1 %v7812_v48  ;;  %v7887_v48 = vld [vmem:[#allocation10 + $0x300] ss:$8 sps:$4 sm:$0xff]  }
 0x595   : > { %4091 = vmatprep.subr.bf16.mxu1 %v7817_v50  ;;  %v7892_v50 = vld [vmem:[#allocation10 + $0x314] ss:$8 sps:$4 sm:$0xff]  }
 0x597   : > { %3976 = vmatmul.mubr.bf16.vlgmr.msra.gmra.mrb[4].mxu1 %v3861_v12  ;;  %v7895_v12 = vld [vmem:[#allocation10 + $0x324] ss:$8 sps:$4 sm:$0xff]  }
 0x598   : > { %4092 = vmatpush1.bf16.msra.mxu1 %v7815_v52  ;;  %4123 = vmatprep.mubr.bf16.mxu1 %v8311_v57  ;;  %v7890_v52 = vld [vmem:[#allocation10 + $0x310] ss:$8 sps:$4 sm:$0xff]  }
 0x599   : > { %4093 = vmatprep.subr.bf16.mxu1 %v7820_v6  ;;  %v7893_v6 = vld [vmem:[#allocation10 + $0x320] ss:$8 sps:$4 sm:$0xff]  }
 0x59c   : > { %4094 = vmatpush1.bf16.msra.mxu1 %v7818_v13  ;;  %v7898_v13 = vld [vmem:[#allocation10 + $0x334] ss:$8 sps:$4 sm:$0xff]  }
 0x59d   : > { %4095 = vmatprep.subr.bf16.mxu1 %v7823_v16  ;;  %v7896_v16 = vld [vmem:[#allocation10 + $0x330] ss:$8 sps:$4 sm:$0xff]  }
 0x5a0   : > { %4096 = vmatpush1.bf16.msra.mxu1 %v7821_v53  ;;  %v7901_v53 = vld [vmem:[#allocation10 + $0x344] ss:$8 sps:$4 sm:$0xff]  }
 0x5a1   : > { %4097 = vmatprep.subr.bf16.mxu1 %v7826_v33  ;;  %v7899_v33 = vld [vmem:[#allocation10 + $0x340] ss:$8 sps:$4 sm:$0xff]  }
 0x5a4   : > { %4098 = vmatpush1.bf16.msra.mxu1 %v7824_v51  ;;  %v7902_v51 = vld [vmem:[#allocation10 + $0x350] ss:$8 sps:$4 sm:$0xff]  }
 0x5a5   : > { %4099 = vmatprep.subr.bf16.mxu1 %v7829_v55  ;;  %v7907_v55 = vld [vmem:[#allocation10 + $0x364] ss:$8 sps:$4 sm:$0xff]  }
 0x5a8   : > { %4100 = vmatpush1.bf16.msra.mxu1 %v7827_v56  ;;  %v7905_v56 = vld [vmem:[#allocation10 + $0x360] ss:$8 sps:$4 sm:$0xff]  }
 0x5a9   : > { %4101 = vmatprep.subr.bf16.mxu1 %v7832_v58  ;;  %v7910_v58 = vld [vmem:[#allocation10 + $0x374] ss:$8 sps:$4 sm:$0xff]  }
 0x5ac   : > { %4102 = vmatpush1.bf16.msra.mxu1 %v7830_v59  ;;  %v7908_v59 = vld [vmem:[#allocation10 + $0x370] ss:$8 sps:$4 sm:$0xff]  }
 0x5ad   : > { %4103 = vmatprep.subr.bf16.mxu1 %v7835_v60  ;;  %v7913_v60 = vld [vmem:[#allocation10 + $0x384] ss:$8 sps:$4 sm:$0xff]  }
 0x5b0   : > { %4104 = vmatpush1.bf16.msra.mxu1 %v7833_v61  ;;  %v7911_v61 = vld [vmem:[#allocation10 + $0x380] ss:$8 sps:$4 sm:$0xff]  }
 0x5b1   : > { %4105 = vmatprep.subr.bf16.mxu1 %v7838_v63  ;;  %v7916_v63 = vld [vmem:[#allocation10 + $0x394] ss:$8 sps:$4 sm:$0xff]  }
 0x5b4   : > { %4106 = vmatpush1.bf16.msra.mxu1 %v7836_v0  ;;  %v7914_v0 = vld [vmem:[#allocation10 + $0x390] ss:$8 sps:$4 sm:$0xff]  }
 0x5b5   : > { %4234 = vmatprep.subr.bf16.mxu1 %v7841_v10  ;;  %v7917_v10 = vld [vmem:[#allocation10 + $0x3a0] ss:$8 sps:$4 sm:$0xff]  }
 0x5b7   : > { %4124 = vmatmul.mubr.bf16.vlgmr.msra.gmra.mrb[4].mxu1 %v4009_v5  ;;  %v7920_v5 = vld [vmem:[#allocation10 + $0x3b0] ss:$8 sps:$4 sm:$0xff]  }
 0x5b8   : > { %4235 = vmatpush1.bf16.msra.mxu1 %v7839_v17  ;;  %4266 = vmatprep.mubr.bf16.mxu1 %v8311_v57  ;;  %v7922_v17 = vld [vmem:[#allocation10 + $0x3b4] ss:$8 sps:$4 sm:$0xff]  }
 0x5b9   : > { %4236 = vmatprep.subr.bf16.mxu1 %v7844_v7  ;;  %v7925_v7 = vld [vmem:[#allocation10 + $0x3c4] ss:$8 sps:$4 sm:$0xff]  }
 0x5bc   : > { %4237 = vmatpush1.bf16.msra.mxu1 %v7842_v11  ;;  %v7923_v11 = vld [vmem:[#allocation10 + $0x3c0] ss:$8 sps:$4 sm:$0xff]  }
 0x5bd   : > { %4238 = vmatprep.subr.bf16.mxu1 %v7847_v18  ;;  %v7928_v18 = vld [vmem:[#allocation10 + $0x3d4] ss:$8 sps:$4 sm:$0xff]  }
 0x5c0   : > { %4239 = vmatpush1.bf16.msra.mxu1 %v7845_v23  ;;  %v7934_v23 = vld [vmem:[#allocation10 + $0x3f4] ss:$8 sps:$4 sm:$0xff]  }
 0x5c1   : > { %4240 = vmatprep.subr.bf16.mxu1 %v7850_v26  ;;  %v7932_v26 = vld [vmem:[#allocation10 + $0x3f0] ss:$8 sps:$4 sm:$0xff]  }
 0x5c4   : > { %4241 = vmatpush1.bf16.msra.mxu1 %v7848_v9  ;;  %v7937_v9 = vld [vmem:[#allocation11 + $0x84] ss:$8 sps:$4 sm:$0xff]  }
 0x5c5   : > { %4242 = vmatprep.subr.bf16.mxu1 %v7853_v21  ;;  %v7935_v21 = vld [vmem:[#allocation11 + $0x80] ss:$8 sps:$4 sm:$0xff]   ;;  %4892 = vmatprep.subr.bf16.mxu0 %v7937_v9 }
 0x5c6   : > { %4893 = vmatpush1.bf16.msra.mxu0 %v7935_v21 }
 0x5c8   : > { %4243 = vmatpush1.bf16.msra.mxu1 %v7851_v27  ;;  %v7940_v27 = vld [vmem:[#allocation11 + $0x94] ss:$8 sps:$4 sm:$0xff]  }
 0x5c9   : > { %4244 = vmatprep.subr.bf16.mxu1 %v7856_v8  ;;  %v7938_v8 = vld [vmem:[#allocation11 + $0x90] ss:$8 sps:$4 sm:$0xff]   ;;  %4894 = vmatprep.subr.bf16.mxu0 %v7940_v27 }
 0x5ca   : > { %4895 = vmatpush1.bf16.msra.mxu0 %v7938_v8 }
 0x5cc   : > { %4245 = vmatpush1.bf16.msra.mxu1 %v7854_v28  ;;  %v7943_v28 = vld [vmem:[#allocation11 + $0xa4] ss:$8 sps:$4 sm:$0xff]  }
 0x5cd   : > { %4246 = vmatprep.subr.bf16.mxu1 %v7859_v29  ;;  %v7941_v29 = vld [vmem:[#allocation11 + $0xa0] ss:$8 sps:$4 sm:$0xff]   ;;  %4896 = vmatprep.subr.bf16.mxu0 %v7943_v28 }
 0x5ce   : > { %4897 = vmatpush1.bf16.msra.mxu0 %v7941_v29 }
 0x5d0   : > { %4247 = vmatpush1.bf16.msra.mxu1 %v7857_v30  ;;  %v7946_v30 = vld [vmem:[#allocation11 + $0xb4] ss:$8 sps:$4 sm:$0xff]  }
 0x5d1   : > { %4248 = vmatprep.subr.bf16.mxu1 %v7862_v25  ;;  %v7944_v25 = vld [vmem:[#allocation11 + $0xb0] ss:$8 sps:$4 sm:$0xff]   ;;  %4898 = vmatprep.subr.bf16.mxu0 %v7946_v30 }
 0x5d2   : > { %4899 = vmatpush1.bf16.msra.mxu0 %v7944_v25 }
 0x5d4   : > { %4249 = vmatpush1.bf16.msra.mxu1 %v7860_v32  ;;  %v7949_v32 = vld [vmem:[#allocation11 + $0xc4] ss:$8 sps:$4 sm:$0xff]  }
 0x5d5   : > { %4377 = vmatprep.subr.bf16.mxu1 %v7865_v34  ;;  %v7947_v34 = vld [vmem:[#allocation11 + $0xc0] ss:$8 sps:$4 sm:$0xff]   ;;  %4900 = vmatprep.subr.bf16.mxu0 %v7949_v32  ;;  %v7962_v32 = vld [vmem:[#allocation4] ss:$0 sps:$4 sm:$0x77]  }
 0x5d6   : > { %4901 = vmatpush1.bf16.msra.mxu0 %v7947_v34  ;;  %v4807_v34 = vshll.u32 %v7962_v32, 16 }
 0x5d7   : > { %4267 = vmatmul.mubr.bf16.vlgmr.msra.gmra.mrb[4].mxu1 %v4152_v36  ;;  %4902 = vmatprep.subr.bf16.mxu0 %v7952_v2  ;;  %v7958_v36 = vld [vmem:[#allocation11 + $0xf4] ss:$8 sps:$4 sm:$0xff]  }
 0x5d8   : > { %4378 = vmatpush1.bf16.msra.mxu1 %v7863_v35  ;;  %4409 = vmatprep.mubr.bf16.mxu1 %v8311_v57  ;;  %v7953_v35 = vld [vmem:[#allocation11 + $0xe0] ss:$8 sps:$4 sm:$0xff]   ;;  %v4809_v2 = vrot.slane %v4807_v34, 1  ;;  %v8039_v34 = vld [vmem:[#allocation11 + $0x214] ss:$8 sps:$4 sm:$0xff]  }
 0x5d9   : > { %4379 = vmatprep.subr.bf16.mxu1 %v7868_v1  ;;  %v7956_v1 = vld [vmem:[#allocation11 + $0xf0] ss:$8 sps:$4 sm:$0xff]  }
 0x5da   : > { %4903 = vmatpush1.bf16.msra.mxu0 %v7950_v20  ;;  %v4805_v20 = vshrl.u32 %v7962_v32, 16 }
 0x5dc   : > { %4380 = vmatpush1.bf16.msra.mxu1 %v7866_v37  ;;  %v7961_v37 = vld [vmem:[#allocation11 + $0x4] ss:$8 sps:$4 sm:$0xff]  }
 0x5dd   : > { %4381 = vmatprep.subr.bf16.mxu1 %v7871_v62 }
 0x5e0   : > { %4382 = vmatpush1.bf16.msra.mxu1 %v7869_v38 }
 0x5e1   : > { %4383 = vmatprep.subr.bf16.mxu1 %v7874_v31 }
 0x5e4   : > { %4384 = vmatpush1.bf16.msra.mxu1 %v7872_v39 }
 0x5e5   : > { %4385 = vmatprep.subr.bf16.mxu1 %v7877_v40 }
 0x5e8   : > { %4386 = vmatpush1.bf16.msra.mxu1 %v7875_v41 }
 0x5e9   : > { %4387 = vmatprep.subr.bf16.mxu1 %v7880_v4 }
 0x5ec   : > { %4388 = vmatpush1.bf16.msra.mxu1 %v7878_v42 }
 0x5ed   : > { %4389 = vmatprep.subr.bf16.mxu1 %v7883_v43 }
 0x5f0   : > { %4390 = vmatpush1.bf16.msra.mxu1 %v7881_v44 }
 0x5f1   : > { %4391 = vmatprep.subr.bf16.mxu1 %v7886_v45 }
 0x5f4   : > { %4392 = vmatpush1.bf16.msra.mxu1 %v7884_v46 }
 0x5f5   : > { %4521 = vmatprep.subr.bf16.mxu1 %v7889_v47 }
 0x5f7   : > { %4410 = vmatmul.mubr.bf16.vlgmr.msra.gmra.mrb[4].mxu1 %v4295_v49 }
 0x5f8   : > { %4522 = vmatpush1.bf16.msra.mxu1 %v7887_v48  ;;  %4553 = vmatprep.mubr.bf16.mxu1 %v8311_v57 }
 0x5f9   : > { %4523 = vmatprep.subr.bf16.mxu1 %v7892_v50 }
 0x5fc   : > { %4524 = vmatpush1.bf16.msra.mxu1 %v7890_v52 }
 0x5fd   : > { %4525 = vmatprep.subr.bf16.mxu1 %v7895_v12 }
 0x600   : > { %4526 = vmatpush1.bf16.msra.mxu1 %v7893_v6 }
 0x601   : > { %4527 = vmatprep.subr.bf16.mxu1 %v7898_v13 }
 0x604   : > { %4528 = vmatpush1.bf16.msra.mxu1 %v7896_v16 }
 0x605   : > { %4529 = vmatprep.subr.bf16.mxu1 %v7901_v53 }
 0x608   : > { %4530 = vmatpush1.bf16.msra.mxu1 %v7899_v33 }
 0x609   : > { %4531 = vmatprep.subr.bf16.mxu1 %v7904_v14 }
 0x60c   : > { %4532 = vmatpush1.bf16.msra.mxu1 %v7902_v51 }
 0x60d   : > { %4533 = vmatprep.subr.bf16.mxu1 %v7907_v55 }
 0x610   : > { %4534 = vmatpush1.bf16.msra.mxu1 %v7905_v56 }
 0x611   : > { %4535 = vmatprep.subr.bf16.mxu1 %v7910_v58 }
 0x614   : > { %4536 = vmatpush1.bf16.msra.mxu1 %v7908_v59 }
 0x615   : > { %4665 = vmatprep.subr.bf16.mxu1 %v7913_v60 }
 0x617   : > { %4554 = vmatmul.mubr.bf16.vlgmr.msra.gmra.mrb[4].mxu1 %v4439_v22  ;;  %v7929_v22 = vld [vmem:[#allocation10 + $0x3e0] ss:$8 sps:$4 sm:$0xff]  }
 0x618   : > { %4666 = vmatpush1.bf16.msra.mxu1 %v7911_v61  ;;  %4697 = vmatprep.mubr.bf16.mxu1 %v8311_v57 }
 0x619   : > { %4667 = vmatprep.subr.bf16.mxu1 %v7916_v63 }
 0x61c   : > { %4668 = vmatpush1.bf16.msra.mxu1 %v7914_v0 }
 0x61d   : > { %4669 = vmatprep.subr.bf16.mxu1 %v7919_v3 }
 0x620   : > { %4670 = vmatpush1.bf16.msra.mxu1 %v7917_v10 }
 0x621   : > { %4671 = vmatprep.subr.bf16.mxu1 %v7922_v17 }
 0x624   : > { %4672 = vmatpush1.bf16.msra.mxu1 %v7920_v5 }
 0x625   : > { %4673 = vmatprep.subr.bf16.mxu1 %v7925_v7 }
 0x628   : > { %4674 = vmatpush1.bf16.msra.mxu1 %v7923_v11 }
 0x629   : > { %4675 = vmatprep.subr.bf16.mxu1 %v7928_v18 }
 0x62c   : > { %4676 = vmatpush1.bf16.msra.mxu1 %v7926_v15 }
 0x62d   : > { %4677 = vmatprep.subr.bf16.mxu1 %v7931_v19 }
 0x630   : > { %4678 = vmatpush1.bf16.msra.mxu1 %v7929_v22 }
 0x631   : > { %4679 = vmatprep.subr.bf16.mxu1 %v7934_v23 }
 0x634   : > { %4680 = vmatpush1.bf16.msra.mxu1 %v7932_v26 }
 0x635   : > { %6924 = vmatprep.subr.bf16.mxu1 %v8310_v54 }
 0x637   : > { %4698 = vmatmul.mubr.bf16.vlgmr.msra.gmra.mrb[4].mxu1 %v4583_v24  ;;  %v7955_v24 = vld [vmem:[#allocation11 + $0xe4] ss:$8 sps:$4 sm:$0xff]  }
 0x638   : > { %4904 = vmatprep.subr.bf16.mxu0 %v7955_v24  ;;  %v7959_v24 = vld [vmem:[#allocation11] ss:$8 sps:$4 sm:$0xff]   ;;  %6940 = vmatprep.mubr.msk.bf16.mxu1 %vm8312_vm9, %v8310_v54 }
 0x639   : > { %4905 = vmatpush1.bf16.msra.mxu0 %v7953_v35  ;;  %v4810_v35 = vor.u32 %v4809_v2, %v4805_v20  ;;  %v8037_v20 = vld [vmem:[#allocation11 + $0x210] ss:$8 sps:$4 sm:$0xff]   ;;  %v8042_v2 = vld [vmem:[#allocation11 + $0x224] ss:$8 sps:$4 sm:$0xff]  }
 0x63a   : > { %4906 = vmatprep.subr.bf16.mxu0 %v7958_v36  ;;  %v7965_v36 = vld [vmem:[#allocation11 + $0x14] ss:$8 sps:$4 sm:$0xff]  }
 0x63d   : > { %4907 = vmatpush1.bf16.msra.mxu0 %v7956_v1  ;;  %v7963_v1 = vld [vmem:[#allocation11 + $0x10] ss:$8 sps:$4 sm:$0xff]  }
 0x63e   : > { %5013 = vmatprep.subr.bf16.mxu0 %v7961_v37  ;;  %v7968_v37 = vld [vmem:[#allocation11 + $0x24] ss:$8 sps:$4 sm:$0xff]  }
 0x640   : > { %4925 = vmatmul.mubr.bf16.vlgmr.msra.gmra.mrb[8].mxu0 %v4810_v35  ;;  %v8045_v35 = vld [vmem:[#allocation11 + $0x234] ss:$8 sps:$4 sm:$0xff]  }
 0x641   : > { %5014 = vmatpush1.bf16.msra.mxu0 %v7959_v24  ;;  %5045 = vmatprep.mubr.bf16.mxu0 %v8311_v57  ;;  %v8040_v24 = vld [vmem:[#allocation11 + $0x220] ss:$8 sps:$4 sm:$0xff]  }
 0x642   : > { %5015 = vmatprep.subr.bf16.mxu0 %v7965_v36  ;;  %v8043_v36 = vld [vmem:[#allocation11 + $0x230] ss:$8 sps:$4 sm:$0xff]  }
 0x645   : > { %5016 = vmatpush1.bf16.msra.mxu0 %v7963_v1  ;;  %v8048_v1 = vld [vmem:[#allocation11 + $0x244] ss:$8 sps:$4 sm:$0xff]  }
 0x646   : > { %5017 = vmatprep.subr.bf16.mxu0 %v7968_v37  ;;  %v8046_v37 = vld [vmem:[#allocation11 + $0x240] ss:$8 sps:$4 sm:$0xff]  }
 0x70a   : > { %v4699_v62 = vpop.f32.mrb[4].mxu1 }
 0x70b   : > { %v4709_v38 = vsel %vm4708_vm8, %v4699_v62, 0.0  ;;  %v4701_v31 = vpop.f32.mrb[5].mxu1 }
 0x70c   : > { %v4710_v39 = vrot.slane %v4709_v38, 4  ;;  %v4731_v40 = vsel %vm4708_vm8, %v4701_v31, 0.0  ;;  %v4703_v41 = vpop.f32.mrb[6].mxu1 }
 0x70d   : > { %v4732_v4 = vrot.slane %v4731_v40, 4  ;;  %v4704_v42 = vpop.f32.mrb[7].mxu1  ;;  %v7977_v41 = vld [vmem:[#allocation11 + $0x54] ss:$8 sps:$4 sm:$0xff]  }
 0x70e   : > { %v4711_v43 = vadd.f32 %v4710_v39, %v4709_v38  ;;  %v7971_v38 = vld [vmem:[#allocation11 + $0x34] ss:$8 sps:$4 sm:$0xff]   ;;  %v7974_v39 = vld [vmem:[#allocation11 + $0x44] ss:$8 sps:$4 sm:$0xff]  }
 0x70f   : > { %v4733_v44 = vadd.f32 %v4732_v4, %v4731_v40  ;;  %v7972_v40 = vld [vmem:[#allocation11 + $0x40] ss:$8 sps:$4 sm:$0xff]   ;;  %v7975_v4 = vld [vmem:[#allocation11 + $0x50] ss:$8 sps:$4 sm:$0xff]   ;;  %v7980_v42 = vld [vmem:[#allocation11 + $0x64] ss:$8 sps:$4 sm:$0xff]  }
 0x710   : > { %v4712_v45 = vrot.slane %v4711_v43, 2 }
 0x711   : > { %v4734_v46 = vrot.slane %v4733_v44, 2 }
 0x712   : > { %v4713_v47 = vadd.f32 %v4712_v45, %v4711_v43  ;;  %v7978_v43 = vld [vmem:[#allocation11 + $0x60] ss:$8 sps:$4 sm:$0xff]   ;;  %v7981_v45 = vld [vmem:[#allocation11 + $0x70] ss:$8 sps:$4 sm:$0xff]  }
 0x713   : > { %v4735_v48 = vadd.f32 %v4734_v46, %v4733_v44  ;;  %v7983_v44 = vld [vmem:[#allocation11 + $0x74] ss:$8 sps:$4 sm:$0xff]   ;;  %v7986_v46 = vld [vmem:[#allocation11 + $0x104] ss:$8 sps:$4 sm:$0xff]  }
 0x714   : > { %v4714_v49 = vrot.slane %v4713_v47, 1 }
 0x715   : > { %v4736_v50 = vrot.slane %v4735_v48, 1 }
 0x716   : > { %v4715_v52 = vadd.f32 %v4714_v49, %v4713_v47  ;;  %v7984_v47 = vld [vmem:[#allocation11 + $0x100] ss:$8 sps:$4 sm:$0xff]  }
 0x717   : > { %v4737_v12 = vadd.f32 %v4736_v50, %v4735_v48  ;;  %v7989_v48 = vld [vmem:[#allocation11 + $0x114] ss:$8 sps:$4 sm:$0xff]   ;;  %v7987_v50 = vld [vmem:[#allocation11 + $0x110] ss:$8 sps:$4 sm:$0xff]  }
 0x718   : > { %v4717_v6 = vmul.f32 0.25, %v4715_v52  ;;  %v7992_v52 = vld [vmem:[#allocation11 + $0x124] ss:$8 sps:$4 sm:$0xff]  }
 0x719   : > { %v4738_v13 = vmul.f32 0.25, %v4737_v12  ;;  %v7990_v12 = vld [vmem:[#allocation11 + $0x120] ss:$8 sps:$4 sm:$0xff]  }
 0x71a   : > { %v4718_v53 = vsub.f32 %v4699_v62, %v4717_v6  ;;  %v7966_v62 = vld [vmem:[#allocation11 + $0x20] ss:$8 sps:$4 sm:$0xff]   ;;  %v7995_v6 = vld [vmem:[#allocation11 + $0x134] ss:$8 sps:$4 sm:$0xff]  }
 0x71b   : > { %v4739_v16 = vsub.f32 %v4701_v31, %v4738_v13  ;;  %5018 = vmatpush1.bf16.msra.mxu0 %v7966_v62  ;;  %v7969_v31 = vld [vmem:[#allocation11 + $0x30] ss:$8 sps:$4 sm:$0xff]   ;;  %v8051_v62 = vld [vmem:[#allocation11 + $0x254] ss:$8 sps:$4 sm:$0xff]  }
 0x71c   : > { %v4719_v55 = vmul.f32 %v4718_v53, %v4718_v53  ;;  %5019 = vmatprep.subr.bf16.mxu0 %v7971_v38  ;;  %v7993_v13 = vld [vmem:[#allocation11 + $0x130] ss:$8 sps:$4 sm:$0xff]  }
 0x71d   : > { %v4740_v33 = vmul.f32 %v4739_v16, %v4739_v16  ;;  %v8049_v38 = vld [vmem:[#allocation11 + $0x250] ss:$8 sps:$4 sm:$0xff]  }
 0x71e   : > { %v4720_v59 = vsel %vm4708_vm8, %v4719_v55, 0.0  ;;  %v8002_v55 = vld [vmem:[#allocation11 + $0x160] ss:$8 sps:$4 sm:$0xff]  }
 0x71f   : > { %v4741_v14 = vsel %vm4708_vm8, %v4740_v33, 0.0  ;;  %v4721_v61 = vrot.slane %v4720_v59, 4  ;;  %5020 = vmatpush1.bf16.msra.mxu0 %v7969_v31  ;;  %v8001_v33 = vld [vmem:[#allocation11 + $0x154] ss:$8 sps:$4 sm:$0xff]   ;;  %v8054_v31 = vld [vmem:[#allocation11 + $0x264] ss:$8 sps:$4 sm:$0xff]  }
 0x720   : > { %v4742_v51 = vrot.slane %v4741_v14, 4  ;;  %5021 = vmatprep.subr.bf16.mxu0 %v7974_v39  ;;  %v8057_v39 = vld [vmem:[#allocation11 + $0x274] ss:$8 sps:$4 sm:$0xff]  }
 0x721   : > { %v4722_v3 = vadd.f32 %v4721_v61, %v4720_v59  ;;  %v8008_v59 = vld [vmem:[#allocation4] ss:$0 sps:$4 sm:$0x66]   ;;  %v8009_v61 = vld [vmem:[#allocation11 + $0x180] ss:$8 sps:$4 sm:$0xff]  }
 0x722   : > { %v4743_v56 = vadd.f32 %v4742_v51, %v4741_v14  ;;  %v7999_v14 = vld [vmem:[#allocation11 + $0x150] ss:$8 sps:$4 sm:$0xff]   ;;  %v8004_v51 = vld [vmem:[#allocation11 + $0x164] ss:$8 sps:$4 sm:$0xff]  }
 0x723   : > { %v4723_v5 = vrot.slane %v4722_v3, 2  ;;  %5022 = vmatpush1.bf16.msra.mxu0 %v7972_v40  ;;  %v8055_v40 = vld [vmem:[#allocation11 + $0x270] ss:$8 sps:$4 sm:$0xff]  }
 0x724   : > { %v4744_v58 = vrot.slane %v4743_v56, 2  ;;  %5023 = vmatprep.subr.bf16.mxu0 %v7977_v41  ;;  %v8058_v41 = vld [vmem:[#allocation4] ss:$0 sps:$4 sm:$0xcc]  }
 0x725   : > { %v4724_v7 = vadd.f32 %v4723_v5, %v4722_v3  ;;  %v8012_v3 = vld [vmem:[#allocation11 + $0x190] ss:$8 sps:$4 sm:$0xff]   ;;  %v8020_v5 = vld [vmem:[#allocation11 + $0x1b4] ss:$8 sps:$4 sm:$0xff]  }
 0x726   : > { %v4745_v60 = vadd.f32 %v4744_v58, %v4743_v56  ;;  %v8007_v56 = vld [vmem:[#allocation11 + $0x174] ss:$8 sps:$4 sm:$0xff]   ;;  %v8005_v58 = vld [vmem:[#allocation11 + $0x170] ss:$8 sps:$4 sm:$0xff]  }
 0x727   : > { %v4725_v11 = vrot.slane %v4724_v7, 1  ;;  %5024 = vmatpush1.bf16.msra.mxu0 %v7975_v4  ;;  %v5374_v4 = vrot.slane %v8058_v41, 2  ;;  %v8067_v41 = vld [vmem:[#allocation5] ss:$0 sps:$4 sm:$0x77]  }
 0x728   : > { %v4746_v63 = vrot.slane %v4745_v60, 1  ;;  %5025 = vmatprep.subr.bf16.mxu0 %v7980_v42  ;;  %v8059_v42 = vld [vmem:[#allocation13 + $0x40] sm:$0xff]  }
 0x729   : > { %v4726_v19 = vadd.f32 %v4725_v11, %v4724_v7  ;;  %v8018_v7 = vld [vmem:[#allocation11 + $0x1b0] ss:$8 sps:$4 sm:$0xff]   ;;  %v8023_v11 = vld [vmem:[#allocation11 + $0x1c4] ss:$8 sps:$4 sm:$0xff]   ;;  %6925 = vmatpush3.bf16.msra.mxu1 %v8059_v42  ;;  %v5594_v42 = vshrl.u32 %v8067_v41, 16 }
 0x72a   : > { %v4747_v0 = vadd.f32 %v4746_v63, %v4745_v60  ;;  %v8011_v60 = vld [vmem:[#allocation11 + $0x184] ss:$8 sps:$4 sm:$0xff]   ;;  %v5075_v63 = vrot.slane %v8008_v59, 1  ;;  %6926 = vmatprep.subr.bf16.mxu1 %v8310_v54 }
 0x72b   : > { %v4727_v23 = vmul.f32 0.25, %v4726_v19  ;;  %5026 = vmatpush1.bf16.msra.mxu0 %v7978_v43  ;;  %v8024_v19 = vld [vmem:[#allocation11 + $0x1d0] ss:$8 sps:$4 sm:$0xff]   ;;  %v8060_v43 = vld [vmem:[#allocation13 + $0x48] sm:$0xff]  }
 0x72c   : > { %v4748_v10 = vmul.f32 0.25, %v4747_v0  ;;  %5027 = vmatprep.subr.bf16.mxu0 %v7983_v44  ;;  %v8014_v0 = vld [vmem:[#allocation11 + $0x194] ss:$8 sps:$4 sm:$0xff]  }
 0x72d   : > { %v4728_v26 = vadd.f32 1e-05, %v4727_v23  ;;  %v8033_v23 = vld [vmem:[#allocation4] ss:$0 sps:$4 sm:$0xee]   ;;  %6927 = vmatpush3.bf16.msra.mxu1 %v8060_v43  ;;  %v8061_v44 = vld [vmem:[#allocation13 + $0x50] sm:$0xff]  }
 0x72e   : > { %v4749_v17 = vadd.f32 1e-05, %v4748_v10  ;;  %v8017_v10 = vld [vmem:[#allocation11 + $0x1a4] ss:$8 sps:$4 sm:$0xff]   ;;  %6928 = vmatprep.subr.bf16.mxu1 %v8310_v54 }
 0x72f   : > { %5028 = vmatpush1.bf16.msra.mxu0 %v7981_v45  ;;  %v8062_v45 = vld [vmem:[#allocation13 + $0x58] sm:$0xff]  }
 0x730   : > { %8123 = vrsqrt.f32 %v4749_v17  ;;  %5157 = vmatprep.subr.bf16.mxu0 %v7986_v46  ;;  %v8015_v17 = vld [vmem:[#allocation11 + $0x1a0] ss:$8 sps:$4 sm:$0xff]  }
 0x731   : > { %6929 = vmatpush3.bf16.msra.mxu1 %v8061_v44  ;;  %v8063_v46 = vld [vmem:[#allocation13 + $0x60] sm:$0xff]  }
 0x732   : > { %6930 = vmatprep.subr.bf16.mxu1 %v8310_v54  ;;  %v8068_v44 = vld [vmem:[#allocation13] sm:$0xff]  }
 0x735   : > { %6931 = vmatpush3.bf16.msra.mxu1 %v8062_v45 }
 0x736   : > { %6932 = vmatprep.subr.bf16.mxu1 %v8310_v54 }
 0x739   : > { %6933 = vmatpush3.bf16.msra.mxu1 %v8063_v46  ;;  %v8069_v46 = vld [vmem:[#allocation13 + $0x8] sm:$0xff]  }
 0x73a   : > { %v8124_v18 = vpop.eup %8123  ;;  %6934 = vmatprep.subr.bf16.mxu1 %v8310_v54 }
 0x73b   : > { %v4751_v15 = vmul.f32 %v8124_v18, %v4739_v16  ;;  %v7998_v16 = vld [vmem:[#allocation11 + $0x144] ss:$8 sps:$4 sm:$0xff]   ;;  %v8021_v18 = vld [vmem:[#allocation11 + $0x1c0] ss:$8 sps:$4 sm:$0xff]  }
 0x73d   : > { %v6743_v22 = vmul.f32 -1.442695, %v4751_v15  ;;  %v8026_v15 = vld [vmem:[#allocation11 + $0x1d4] ss:$8 sps:$4 sm:$0xff]  }
 0x73f   : > { %8125 = vpow2.f32 %v6743_v22  ;;  %v8029_v22 = vld [vmem:[#allocation11 + $0x1e4] ss:$8 sps:$4 sm:$0xff]  }
 0x740   : > { %8127 = vrsqrt.f32 %v4728_v26  ;;  %v8027_v26 = vld [vmem:[#allocation11 + $0x1e0] ss:$8 sps:$4 sm:$0xff]  }
 0x749   : > { %v8126_v9 = vpop.eup %8125 }
 0x74a   : > { %v4755_v21 = vadd.f32 1.0, %v8126_v9  ;;  %v8128_v27 = vpop.eup %8127  ;;  %v8032_v9 = vld [vmem:[#allocation11 + $0x1f4] ss:$8 sps:$4 sm:$0xff]  }
 0x74b   : > { %v4730_v8 = vmul.f32 %v8128_v27, %v4718_v53  ;;  %v7996_v53 = vld [vmem:[#allocation11 + $0x140] ss:$8 sps:$4 sm:$0xff]   ;;  %v5225_v27 = vshll.u32 %v8033_v23, 16 }
 0x74c   : > { %8129 = vrcp.f32 %v4755_v21  ;;  %v5222_v21 = vshrl.u32 %v8033_v23, 16 }
 0x756   : > { %v8130_v28 = vpop.eup %8129 }
 0x757   : > { %v4758_v29 = vmul.f32 %v8130_v28, %v4730_v8  ;;  %v8030_v8 = vld [vmem:[#allocation11 + $0x1f0] ss:$8 sps:$4 sm:$0xff]   ;;  %v5224_v28 = vrot.slane %v5222_v21, 1 }
 0x759   : > { %v6877_v30 = vpack.c.bf16 %v4758_v29, %v4758_v29  ;;  %v5227_v29 = vrot.slane %v5225_v27, 2 }
 0x75b   : > { %v4763_v25 = vrot.slane %v6877_v30, 7  ;;  %v8036_v30 = vld [vmem:[#allocation11 + $0x204] ss:$8 sps:$4 sm:$0xff]   ;;  %v5228_v32 = vor.u32 %v5227_v29, %v5224_v28 }
 0x75d   : > { %4765 = vst [vmem:[#allocation4] sm:$0x6] %v4763_v25  ;;  %v8034_v25 = vld [vmem:[#allocation11 + $0x200] ss:$8 sps:$4 sm:$0xff]  }
 0x764   : > { %v4766_v49 = vld [vmem:[#allocation4] sm:$0x3] }
 0x765   : > { %5046 = vmatmul.mubr.bf16.vlgmr.msra.gmra.mrb[8].mxu0 %v4766_v49  ;;  %v8066_v49 = vld [vmem:[#allocation13 + $0x78] sm:$0xff]  }
 0x766   : > { %5158 = vmatpush1.bf16.msra.mxu0 %v7984_v47  ;;  %5189 = vmatprep.mubr.bf16.mxu0 %v8311_v57  ;;  %v8064_v47 = vld [vmem:[#allocation13 + $0x68] sm:$0xff]  }
 0x767   : > { %5159 = vmatprep.subr.bf16.mxu0 %v7989_v48  ;;  %6935 = vmatpush3.bf16.msra.mxu1 %v8064_v47  ;;  %v8065_v48 = vld [vmem:[#allocation13 + $0x70] sm:$0xff]  }
 0x768   : > { %6936 = vmatprep.subr.bf16.mxu1 %v8310_v54  ;;  %v8070_v47 = vld [vmem:[#allocation13 + $0x10] sm:$0xff]  }
 0x76a   : > { %5160 = vmatpush1.bf16.msra.mxu0 %v7987_v50 }
 0x76b   : > { %5161 = vmatprep.subr.bf16.mxu0 %v7992_v52  ;;  %6937 = vmatpush3.bf16.msra.mxu1 %v8065_v48  ;;  %v8071_v48 = vld [vmem:[#allocation13 + $0x18] sm:$0xff]  }
 0x76c   : > { %6938 = vmatprep.subr.bf16.mxu1 %v8310_v54 }
 0x76e   : > { %5162 = vmatpush1.bf16.msra.mxu0 %v7990_v12 }
 0x76f   : > { %5163 = vmatprep.subr.bf16.mxu0 %v7995_v6  ;;  %6939 = vmatpush3.bf16.msra.mxu1 %v8066_v49  ;;  %v8072_v49 = vld [vmem:[#allocation13 + $0x20] sm:$0xff]  }
 0x770   : > { %6944 = vmatprep.subr.bf16.mxu1 %v8310_v54 }
 0x772   : > { %5164 = vmatpush1.bf16.msra.mxu0 %v7993_v13 }
 0x773   : > { %5165 = vmatprep.subr.bf16.mxu0 %v7998_v16 }
 0x776   : > { %5166 = vmatpush1.bf16.msra.mxu0 %v7996_v53 }
 0x777   : > { %5167 = vmatprep.subr.bf16.mxu0 %v8001_v33 }
 0x77a   : > { %5168 = vmatpush1.bf16.msra.mxu0 %v7999_v14 }
 0x77b   : > { %5169 = vmatprep.subr.bf16.mxu0 %v8004_v51 }
 0x77e   : > { %5170 = vmatpush1.bf16.msra.mxu0 %v8002_v55 }
 0x77f   : > { %5171 = vmatprep.subr.bf16.mxu0 %v8007_v56 }
 0x782   : > { %5172 = vmatpush1.bf16.msra.mxu0 %v8005_v58 }
 0x783   : > { %5310 = vmatprep.subr.bf16.mxu0 %v8011_v60 }
 0x785   : > { %5190 = vmatmul.mubr.bf16.vlgmr.msra.gmra.mrb[8].mxu0 %v5075_v63 }
 0x786   : > { %5311 = vmatpush1.bf16.msra.mxu0 %v8009_v61  ;;  %5342 = vmatprep.mubr.bf16.mxu0 %v8311_v57 }
 0x787   : > { %5312 = vmatprep.subr.bf16.mxu0 %v8014_v0 }
 0x78a   : > { %5313 = vmatpush1.bf16.msra.mxu0 %v8012_v3 }
 0x78b   : > { %5314 = vmatprep.subr.bf16.mxu0 %v8017_v10 }
 0x78e   : > { %5315 = vmatpush1.bf16.msra.mxu0 %v8015_v17 }
 0x78f   : > { %5316 = vmatprep.subr.bf16.mxu0 %v8020_v5 }
 0x792   : > { %5317 = vmatpush1.bf16.msra.mxu0 %v8018_v7 }
 0x793   : > { %5318 = vmatprep.subr.bf16.mxu0 %v8023_v11 }
 0x796   : > { %5319 = vmatpush1.bf16.msra.mxu0 %v8021_v18 }
 0x797   : > { %5320 = vmatprep.subr.bf16.mxu0 %v8026_v15 }
 0x79a   : > { %5321 = vmatpush1.bf16.msra.mxu0 %v8024_v19 }
 0x79b   : > { %5322 = vmatprep.subr.bf16.mxu0 %v8029_v22 }
 0x79e   : > { %5323 = vmatpush1.bf16.msra.mxu0 %v8027_v26 }
 0x79f   : > { %5324 = vmatprep.subr.bf16.mxu0 %v8032_v9 }
 0x7a2   : > { %5325 = vmatpush1.bf16.msra.mxu0 %v8030_v8 }
 0x7a3   : > { %5456 = vmatprep.subr.bf16.mxu0 %v8036_v30 }
 0x7a5   : > { %5343 = vmatmul.mubr.bf16.vlgmr.msra.gmra.mrb[8].mxu0 %v5228_v32 }
 0x7a6   : > { %5457 = vmatpush1.bf16.msra.mxu0 %v8034_v25  ;;  %5488 = vmatprep.mubr.bf16.mxu0 %v8311_v57  ;;  %v8052_v57 = vld [vmem:[#allocation11 + $0x260] ss:$8 sps:$4 sm:$0xff]  }
 0x7a7   : > { %5458 = vmatprep.subr.bf16.mxu0 %v8039_v34 }
 0x7aa   : > { %5459 = vmatpush1.bf16.msra.mxu0 %v8037_v20 }
 0x7ab   : > { %5460 = vmatprep.subr.bf16.mxu0 %v8042_v2 }
 0x7ae   : > { %5461 = vmatpush1.bf16.msra.mxu0 %v8040_v24 }
 0x7af   : > { %5462 = vmatprep.subr.bf16.mxu0 %v8045_v35 }
 0x7b2   : > { %5463 = vmatpush1.bf16.msra.mxu0 %v8043_v36 }
 0x7b3   : > { %5464 = vmatprep.subr.bf16.mxu0 %v8048_v1 }
 0x7b6   : > { %5465 = vmatpush1.bf16.msra.mxu0 %v8046_v37 }
 0x7b7   : > { %5466 = vmatprep.subr.bf16.mxu0 %v8051_v62 }
 0x7ba   : > { %5467 = vmatpush1.bf16.msra.mxu0 %v8049_v38 }
 0x7bb   : > { %5468 = vmatprep.subr.bf16.mxu0 %v8054_v31 }
 0x7be   : > { %5469 = vmatpush1.bf16.msra.mxu0 %v8052_v57 }
 0x7bf   : > { %5470 = vmatprep.subr.bf16.mxu0 %v8057_v39 }
 0x7c2   : > { %5471 = vmatpush1.bf16.msra.mxu0 %v8055_v40 }
 0x7c5   : > { %5489 = vmatmul.mubr.bf16.vlgmr.msra.gmra.mrb[8].mxu0 %v5374_v4  ;;  %v5596_v4 = vshll.u32 %v8067_v41, 16 }
 0x7c7   : > { %v5598_v43 = vrot.slane %v5596_v4, 1 }
 0x7c9   : > { %v5599_v45 = vor.u32 %v5598_v43, %v5594_v42 }
 0x7cb   : > { %6941 = vmatmul.mubr.bf16.vlgmr.msra.gmra.mrb[8].mxu1 %v5599_v45 }
 0x7cc   : > { %6945 = vmatpush3.bf16.msra.mxu1 %v8068_v44  ;;  %6960 = vmatprep.mubr.msk.bf16.mxu1 %vm8312_vm9, %v8310_v54 }
 0x7cd   : > { %6946 = vmatprep.subr.bf16.mxu1 %v8310_v54 }
 0x7d0   : > { %6947 = vmatpush3.bf16.msra.mxu1 %v8069_v46 }
 0x7d1   : > { %6948 = vmatprep.subr.bf16.mxu1 %v8310_v54 }
 0x7d4   : > { %6949 = vmatpush3.bf16.msra.mxu1 %v8070_v47 }
 0x7d5   : > { %6950 = vmatprep.subr.bf16.mxu1 %v8310_v54 }
 0x7d8   : > { %6951 = vmatpush3.bf16.msra.mxu1 %v8071_v48 }
 0x7d9   : > { %6952 = vmatprep.subr.bf16.mxu1 %v8310_v54 }
 0x7dc   : > { %6953 = vmatpush3.bf16.msra.mxu1 %v8072_v49 }
 0x7dd   : > { %6954 = vmatprep.subr.bf16.mxu1 %v8310_v54 }
 0x898   : > { %v5490_v50 = vpop.f32.mrb[8].mxu0 }
 0x899   : > { %v5499_v52 = vsel %vm4708_vm8, %v5490_v50, 0.0  ;;  %v5492_v12 = vpop.f32.mrb[9].mxu0 }
 0x89a   : > { %v5500_v6 = vrot.slane %v5499_v52, 4  ;;  %v5520_v13 = vsel %vm4708_vm8, %v5492_v12, 0.0  ;;  %v5494_v16 = vpop.f32.mrb[10].mxu0 }
 0x89b   : > { %v5521_v53 = vrot.slane %v5520_v13, 4  ;;  %v5495_v33 = vpop.f32.mrb[11].mxu0  ;;  %v8077_v16 = vld [vmem:[#allocation13 + $0x88] sm:$0xff]  }
 0x89c   : > { %v5501_v14 = vadd.f32 %v5500_v6, %v5499_v52  ;;  %v8074_v52 = vld [vmem:[#allocation13 + $0x30] sm:$0xff]   ;;  %v8076_v6 = vld [vmem:[#allocation13 + $0x80] sm:$0xff]   ;;  %v8079_v33 = vld [vmem:[#allocation13 + $0x98] sm:$0xff]  }
 0x89d   : > { %v5522_v51 = vadd.f32 %v5521_v53, %v5520_v13  ;;  %v8078_v53 = vld [vmem:[#allocation13 + $0x90] sm:$0xff]  }
 0x89e   : > { %v5502_v55 = vrot.slane %v5501_v14, 2 }
 0x89f   : > { %v5523_v56 = vrot.slane %v5522_v51, 2 }
 0x8a0   : > { %v5503_v58 = vadd.f32 %v5502_v55, %v5501_v14  ;;  %v8080_v14 = vld [vmem:[#allocation13 + $0xa0] sm:$0xff]   ;;  %v8082_v55 = vld [vmem:[#allocation13 + $0xb0] sm:$0xff]  }
 0x8a1   : > { %v5524_v59 = vadd.f32 %v5523_v56, %v5522_v51  ;;  %v8081_v51 = vld [vmem:[#allocation13 + $0xa8] sm:$0xff]   ;;  %v8083_v56 = vld [vmem:[#allocation13 + $0xb8] sm:$0xff]  }
 0x8a2   : > { %v5504_v60 = vrot.slane %v5503_v58, 1 }
 0x8a3   : > { %v5525_v61 = vrot.slane %v5524_v59, 1 }
 0x8a4   : > { %v5505_v63 = vadd.f32 %v5504_v60, %v5503_v58  ;;  %v8084_v58 = vld [vmem:[#allocation5] ss:$0 sps:$4 sm:$0x66]  }
 0x8a5   : > { %v5526_v0 = vadd.f32 %v5525_v61, %v5524_v59  ;;  %v8085_v59 = vld [vmem:[#allocation13 + $0xc0] sm:$0xff]   ;;  %v5798_v60 = vrot.slane %v8084_v58, 1  ;;  %v8086_v61 = vld [vmem:[#allocation13 + $0xc8] sm:$0xff]  }
 0x8a6   : > { %v5506_v3 = vmul.f32 0.25, %v5505_v63  ;;  %v8087_v63 = vld [vmem:[#allocation13 + $0xd0] sm:$0xff]  }
 0x8a7   : > { %v5527_v10 = vmul.f32 0.25, %v5526_v0  ;;  %v8088_v0 = vld [vmem:[#allocation13 + $0xd8] sm:$0xff]  }
 0x8a8   : > { %v5507_v5 = vsub.f32 %v5490_v50, %v5506_v3  ;;  %v8073_v50 = vld [vmem:[#allocation13 + $0x28] sm:$0xff]   ;;  %v8089_v3 = vld [vmem:[#allocation13 + $0xe0] sm:$0xff]  }
 0x8a9   : > { %v5528_v17 = vsub.f32 %v5492_v12, %v5527_v10  ;;  %6955 = vmatpush3.bf16.msra.mxu1 %v8073_v50  ;;  %v8075_v12 = vld [vmem:[#allocation13 + $0x38] sm:$0xff]   ;;  %v8090_v10 = vld [vmem:[#allocation13 + $0xe8] sm:$0xff]  }
 0x8aa   : > { %v5508_v15 = vmul.f32 %v5507_v5, %v5507_v5  ;;  %6956 = vmatprep.subr.bf16.mxu1 %v8310_v54 }
 0x8ab   : > { %v5529_v7 = vmul.f32 %v5528_v17, %v5528_v17 }
 0x8ac   : > { %v5509_v23 = vsel %vm4708_vm8, %v5508_v15, 0.0 }
 0x8ad   : > { %v5530_v11 = vsel %vm4708_vm8, %v5529_v7, 0.0  ;;  %v5510_v9 = vrot.slane %v5509_v23, 4  ;;  %6957 = vmatpush3.bf16.msra.mxu1 %v8074_v52 }
 0x8ae   : > { %v5531_v18 = vrot.slane %v5530_v11, 4  ;;  %6958 = vmatprep.subr.bf16.mxu1 %v8310_v54 }
 0x8af   : > { %v5511_v8 = vadd.f32 %v5510_v9, %v5509_v23  ;;  %v8096_v9 = vld [vmem:[#allocation13 + $0x110] sm:$0xff]  }
 0x8b0   : > { %v5532_v19 = vadd.f32 %v5531_v18, %v5530_v11  ;;  %v8092_v18 = vld [vmem:[#allocation13 + $0xf8] sm:$0xff]  }
 0x8b1   : > { %v5512_v30 = vrot.slane %v5511_v8, 2  ;;  %6959 = vmatpush3.bf16.msra.mxu1 %v8075_v12 }
 0x8b2   : > { %v5533_v22 = vrot.slane %v5532_v19, 2  ;;  %6964 = vmatprep.subr.bf16.mxu1 %v8310_v54 }
 0x8b3   : > { %v5513_v25 = vadd.f32 %v5512_v30, %v5511_v8  ;;  %v8099_v8 = vld [vmem:[#allocation13 + $0x128] sm:$0xff]   ;;  %v8102_v30 = vld [vmem:[#allocation5] ss:$0 sps:$4 sm:$0xcc]  }
 0x8b4   : > { %v5534_v26 = vadd.f32 %v5533_v22, %v5532_v19  ;;  %v8094_v22 = vld [vmem:[#allocation13 + $0x100] sm:$0xff]  }
 0x8b5   : > { %v5514_v32 = vrot.slane %v5513_v25, 1 }
 0x8b6   : > { %v5535_v21 = vrot.slane %v5534_v26, 1 }
 0x8b7   : > { %v5515_v2 = vadd.f32 %v5514_v32, %v5513_v25  ;;  %v6029_v25 = vrot.slane %v8102_v30, 2 }
 0x8b8   : > { %v5536_v27 = vadd.f32 %v5535_v21, %v5534_v26  ;;  %v8095_v26 = vld [vmem:[#allocation13 + $0x108] sm:$0xff]   ;;  %v8097_v21 = vld [vmem:[#allocation13 + $0x118] sm:$0xff]  }
 0x8b9   : > { %v5516_v35 = vmul.f32 0.25, %v5515_v2 }
 0x8ba   : > { %v5537_v28 = vmul.f32 0.25, %v5536_v27  ;;  %v8098_v27 = vld [vmem:[#allocation13 + $0x120] sm:$0xff]  }
 0x8bb   : > { %v5517_v36 = vadd.f32 1e-05, %v5516_v35 }
 0x8bc   : > { %v5538_v29 = vadd.f32 1e-05, %v5537_v28  ;;  %v8100_v28 = vld [vmem:[#allocation13 + $0x130] sm:$0xff]  }
 0x8be   : > { %8131 = vrsqrt.f32 %v5538_v29  ;;  %v8101_v29 = vld [vmem:[#allocation13 + $0x138] sm:$0xff]  }
 0x8c8   : > { %v8132_v34 = vpop.eup %8131 }
 0x8c9   : > { %v5540_v20 = vmul.f32 %v8132_v34, %v5528_v17  ;;  %v8093_v17 = vld [vmem:[#allocation5] ss:$0 sps:$4 sm:$0xee]  }
 0x8ca   : > { %v5911_v7 = vshrl.u32 %v8093_v17, 16  ;;  %v5914_v11 = vshll.u32 %v8093_v17, 16 }
 0x8cb   : > { %v6829_v24 = vmul.f32 -1.442695, %v5540_v20 }
 0x8cc   : > { %v5913_v15 = vrot.slane %v5911_v7, 1  ;;  %v5916_v19 = vrot.slane %v5914_v11, 2 }
 0x8cd   : > { %8133 = vpow2.f32 %v6829_v24 }
 0x8ce   : > { %8135 = vrsqrt.f32 %v5517_v36  ;;  %v5917_v23 = vor.u32 %v5916_v19, %v5913_v15 }
 0x8d7   : > { %v8134_v1 = vpop.eup %8133 }
 0x8d8   : > { %v5544_v37 = vadd.f32 1.0, %v8134_v1  ;;  %v8136_v62 = vpop.eup %8135 }
 0x8d9   : > { %v5519_v38 = vmul.f32 %v8136_v62, %v5507_v5  ;;  %v8091_v5 = vld [vmem:[#allocation13 + $0xf0] sm:$0xff]  }
 0x8da   : > { %8137 = vrcp.f32 %v5544_v37 }
 0x8e4   : > { %v8138_v31 = vpop.eup %8137 }
 0x8e5   : > { %v5547_v57 = vmul.f32 %v8138_v31, %v5519_v38 }
 0x8e7   : > { %v6878_v39 = vpack.c.bf16 %v5547_v57, %v5547_v57 }
 0x8e9   : > { %v5552_v40 = vrot.slane %v6878_v39, 7 }
 0x8eb   : > { %5554 = vst [vmem:[#allocation5] sm:$0x6] %v5552_v40 }
 0x8f2   : > { %v5555_v13 = vld [vmem:[#allocation5] sm:$0x3] }
 0x8f3   : > { %6961 = vmatmul.mubr.bf16.vlgmr.msra.gmra.mrb[8].mxu1 %v5555_v13 }
 0x8f4   : > { %6965 = vmatpush3.bf16.msra.mxu1 %v8076_v6  ;;  %6980 = vmatprep.mubr.msk.bf16.mxu1 %vm8312_vm9, %v8310_v54 }
 0x8f5   : > { %6966 = vmatprep.subr.bf16.mxu1 %v8310_v54 }
 0x8f8   : > { %6967 = vmatpush3.bf16.msra.mxu1 %v8077_v16 }
 0x8f9   : > { %6968 = vmatprep.subr.bf16.mxu1 %v8310_v54 }
 0x8fc   : > { %6969 = vmatpush3.bf16.msra.mxu1 %v8078_v53 }
 0x8fd   : > { %6970 = vmatprep.subr.bf16.mxu1 %v8310_v54 }
 0x900   : > { %6971 = vmatpush3.bf16.msra.mxu1 %v8079_v33 }
 0x901   : > { %6972 = vmatprep.subr.bf16.mxu1 %v8310_v54 }
 0x904   : > { %6973 = vmatpush3.bf16.msra.mxu1 %v8080_v14 }
 0x905   : > { %6974 = vmatprep.subr.bf16.mxu1 %v8310_v54 }
 0x908   : > { %6975 = vmatpush3.bf16.msra.mxu1 %v8081_v51 }
 0x909   : > { %6976 = vmatprep.subr.bf16.mxu1 %v8310_v54 }
 0x90c   : > { %6977 = vmatpush3.bf16.msra.mxu1 %v8082_v55 }
 0x90d   : > { %6978 = vmatprep.subr.bf16.mxu1 %v8310_v54 }
 0x910   : > { %6979 = vmatpush3.bf16.msra.mxu1 %v8083_v56 }
 0x911   : > { %6984 = vmatprep.subr.bf16.mxu1 %v8310_v54 }
 0x913   : > { %6981 = vmatmul.mubr.bf16.vlgmr.msra.gmra.mrb[8].mxu1 %v5798_v60 }
 0x914   : > { %6985 = vmatpush3.bf16.msra.mxu1 %v8085_v59  ;;  %7000 = vmatprep.mubr.msk.bf16.mxu1 %vm8312_vm9, %v8310_v54 }
 0x915   : > { %6986 = vmatprep.subr.bf16.mxu1 %v8310_v54 }
 0x918   : > { %6987 = vmatpush3.bf16.msra.mxu1 %v8086_v61 }
 0x919   : > { %6988 = vmatprep.subr.bf16.mxu1 %v8310_v54 }
 0x91c   : > { %6989 = vmatpush3.bf16.msra.mxu1 %v8087_v63 }
 0x91d   : > { %6990 = vmatprep.subr.bf16.mxu1 %v8310_v54 }
 0x920   : > { %6991 = vmatpush3.bf16.msra.mxu1 %v8088_v0 }
 0x921   : > { %6992 = vmatprep.subr.bf16.mxu1 %v8310_v54 }
 0x924   : > { %6993 = vmatpush3.bf16.msra.mxu1 %v8089_v3 }
 0x925   : > { %6994 = vmatprep.subr.bf16.mxu1 %v8310_v54 }
 0x928   : > { %6995 = vmatpush3.bf16.msra.mxu1 %v8090_v10 }
 0x929   : > { %6996 = vmatprep.subr.bf16.mxu1 %v8310_v54 }
 0x92c   : > { %6997 = vmatpush3.bf16.msra.mxu1 %v8091_v5 }
 0x92d   : > { %6998 = vmatprep.subr.bf16.mxu1 %v8310_v54 }
 0x930   : > { %6999 = vmatpush3.bf16.msra.mxu1 %v8092_v18 }
 0x931   : > { %7004 = vmatprep.subr.bf16.mxu1 %v8310_v54 }
 0x933   : > { %7001 = vmatmul.mubr.bf16.vlgmr.msra.gmra.mrb[8].mxu1 %v5917_v23 }
 0x934   : > { %7005 = vmatpush3.bf16.msra.mxu1 %v8094_v22  ;;  %7020 = vmatprep.mubr.msk.bf16.mxu1 %vm8312_vm9, %v8310_v54 }
 0x935   : > { %7006 = vmatprep.subr.bf16.mxu1 %v8310_v54 }
 0x938   : > { %7007 = vmatpush3.bf16.msra.mxu1 %v8095_v26 }
 0x939   : > { %7008 = vmatprep.subr.bf16.mxu1 %v8310_v54 }
 0x93c   : > { %7009 = vmatpush3.bf16.msra.mxu1 %v8096_v9 }
 0x93d   : > { %7010 = vmatprep.subr.bf16.mxu1 %v8310_v54 }
 0x940   : > { %7011 = vmatpush3.bf16.msra.mxu1 %v8097_v21 }
 0x941   : > { %7012 = vmatprep.subr.bf16.mxu1 %v8310_v54 }
 0x944   : > { %7013 = vmatpush3.bf16.msra.mxu1 %v8098_v27 }
 0x945   : > { %7014 = vmatprep.subr.bf16.mxu1 %v8310_v54 }
 0x948   : > { %7015 = vmatpush3.bf16.msra.mxu1 %v8099_v8 }
 0x949   : > { %7016 = vmatprep.subr.bf16.mxu1 %v8310_v54 }
 0x94c   : > { %7017 = vmatpush3.bf16.msra.mxu1 %v8100_v28 }
 0x94d   : > { %7018 = vmatprep.subr.bf16.mxu1 %v8310_v54 }
 0x950   : > { %7019 = vmatpush3.bf16.msra.mxu1 %v8101_v29 }
 0x953   : > { %7021 = vmatmul.mubr.bf16.vlgmr.msra.gmra.mrb[8].mxu1 %v6029_v25 }
 0xa26   : > { %v6113_v32 = vpop.f32.mrb[8].mxu1 }
 0xa27   : > { %6120 = vst [vmem:[%s322_s24] sm:$0xf] %v6113_v32  ;;  %v7022_v34 = vpop.f32.mrb[9].mxu1 }
 0xa28   : > { %v6116_v20 = vpop.f32.mrb[10].mxu1 }
 0xa29   : > { %v7023_v2 = vpop.f32.mrb[11].mxu1 }
 0xa2a PF: > { %s19_s21 = sadd.s32 1, %s8299_s21  }
 0xa2b   : > { %p16_p6 = scmp.ge.s32.totalorder %s19_s21, 4  }
 0xa2d   :  { %18 = sbr.rel (!%p16_p6) target bundleno = 3 (0x3), region = 129 }
 0xa34   :  { %6140 = vsyncpa [#allocation7], 1 }
 0xa35   :  { %6142 = vsyncpa [#allocation7 + $0x1], 1 }
 0xa36   :  { %6143 = vsyncpa [#allocation9], 1 }
 0xa37   :  { %6144 = vsyncpa [#allocation12], 1 }

</bundles_post_ra>
